<compile_context>
chip_gen: v7x
topology: tpu7x:2x2x1
jax: 0.10.0
libtpu: 0.0.40
codegen_flags: <defaults>
</compile_context>

<pallas_src>
import functools

import jax
import jax.numpy as jnp
from jax.experimental import pallas as pl
from jax.experimental.pallas import tpu as pltpu


# ----------------------------------------------------------------------------
# Pallas kernel: fused 3x3 conv (single K=9*Cin matmul) + folded-BN bias + ReLU
# ----------------------------------------------------------------------------
def _conv3x3_bn_relu_kernel(x_ref, w_ref, b_ref, o_ref, patch_ref):
    # x_ref     : (1, 1, th+2, tw+2, Cin) bf16  halo input tile (padded rows/cols)
    # w_ref     : (9*Cin, Cout)           bf16  HWIO-flat weights, BN scale folded
    # b_ref     : (1, Cout)               f32   folded conv+BN bias
    # o_ref     : (1, th*tw, Cout)        bf16  output tile (row-major spatial)
    # patch_ref : (th*tw, 9*Cin)          bf16  VMEM im2col scratch
    thp2, twp2, cin = x_ref.shape[2], x_ref.shape[3], x_ref.shape[4]
    th, tw = thp2 - 2, twp2 - 2

    # Build the im2col patch in VMEM: 9 shifted (th, tw, Cin) views of the halo
    # tile, laid out tap-major along the K axis.  No HBM traffic here.
    for dh in range(3):
        for dw in range(3):
            t = dh * 3 + dw
            tap = x_ref[0, 0, dh:dh + th, dw:dw + tw, :]            # (th, tw, Cin)
            patch_ref[:, t * cin:(t + 1) * cin] = tap.reshape(th * tw, cin)

    # One MXU matmul with K = 9*Cin, bf16 operands, f32 accumulation.
    acc = jnp.dot(patch_ref[...], w_ref[...], preferred_element_type=jnp.float32)

    # Epilogue: folded bias + ReLU (BN scale already folded into the weights).
    y = acc + b_ref[...]
    # NOTE: for small Cout (<128) the store is lane-masked; production channel
    # counts (>=128) make this lane-dense automatically.
    o_ref[0] = jnp.maximum(y, 0.0).astype(o_ref.dtype)


# ----------------------------------------------------------------------------
# Tiling helper + pallas_call wrapper
# ----------------------------------------------------------------------------
def _pick_tile_rows(h, w, cin, cout, tile_rows=None):
    """Largest divisor of `h` whose per-tile working set fits a VMEM budget."""
    if tile_rows is None:
        budget = 8 * 1024 * 1024                      # well under v7x 64 MiB VMEM
        per_row = ((w + 2) * cin * 2 * 2              # halo input, double-buffered
                   + w * 9 * cin * 2                  # im2col patch (bf16)
                   + w * cout * 4                     # f32 accumulator
                   + w * cout * 2 * 2)                # bf16 output, double-buffered
        tile_rows = max(1, budget // max(per_row, 1))
    best = None
    for d in range(1, h + 1):
        if h % d == 0 and d <= tile_rows and ((d * w) % 8 == 0 or d == h):
            best = d
    return best if best is not None else h


def conv3x3_bn_relu(x_nhwc, w2d, bias, *, tile_rows=None):
    """Conv3x3(padding=1) + BatchNorm(eval, folded) + ReLU.  bf16 NHWC in/out."""
    n, h, w, cin = x_nhwc.shape
    cout = w2d.shape[1]
    th = _pick_tile_rows(h, w, cin, cout, tile_rows)
    nt = h // th

    # One padded copy, restructured into per-row-tile halo windows ((th+2) rows
    # each) so plain Blocked BlockSpecs can stream overlapping row windows.
    # Overhead ~(1 + 2/th)x of the bf16 activation, vs 9x for HBM im2col.
    xp = jnp.pad(x_nhwc, ((0, 0), (1, 1), (1, 1), (0, 0)))
    tiles = jnp.stack([xp[:, i * th:i * th + th + 2] for i in range(nt)], axis=1)
    # tiles: (n, nt, th+2, w+2, cin)

    out = pl.pallas_call(
        _conv3x3_bn_relu_kernel,
        out_shape=jax.ShapeDtypeStruct((n, h * w, cout), jnp.bfloat16),
        grid_spec=pltpu.PrefetchScalarGridSpec(
            num_scalar_prefetch=0,
            grid=(n, nt),
            in_specs=[
                pl.BlockSpec((1, 1, th + 2, w + 2, cin),
                             lambda b, i: (b, i, 0, 0, 0)),
                pl.BlockSpec((9 * cin, cout), lambda b, i: (0, 0)),   # resident
                pl.BlockSpec((1, cout), lambda b, i: (0, 0)),         # resident
            ],
            out_specs=pl.BlockSpec((1, th * w, cout), lambda b, i: (b, i, 0)),
            scratch_shapes=[pltpu.VMEM((th * w, 9 * cin), jnp.bfloat16)],
        ),
        compiler_params=pltpu.CompilerParams(
            dimension_semantics=("parallel", "parallel"),   # both TCs on v7x
            vmem_limit_bytes=48 * 1024 * 1024,
        ),
    )(tiles, w2d, bias.reshape(1, cout))
    return out.reshape(n, h, w, cout)


# ----------------------------------------------------------------------------
# Module glue: upsample, crop, concat, parameter construction
# ----------------------------------------------------------------------------
def _upsample_nearest_2x(x_nhwc):
    x = jnp.repeat(x_nhwc, 2, axis=1)
    return jnp.repeat(x, 2, axis=2)


def _center_crop(target_hw, skip_nhwc):
    th, tw = target_hw
    _, hs, ws, _ = skip_nhwc.shape
    oh = (hs - th) // 2
    ow = (ws - tw) // 2
    return skip_nhwc[:, oh:oh + th, ow:ow + tw, :]


def _make_conv_bn_params(key, cin, cout, eps=1e-5):
    """Synthetic Conv2d(3x3) + BatchNorm2d(eval) params with BN folded in."""
    k1, k2, k3, k4, k5, k6 = jax.random.split(key, 6)
    w = 0.1 * jax.random.normal(k1, (cout, cin, 3, 3), jnp.float32)   # torch OIHW
    b = 0.1 * jax.random.normal(k2, (cout,), jnp.float32)
    gamma = 1.0 + 0.1 * jax.random.normal(k3, (cout,), jnp.float32)
    beta = 0.1 * jax.random.normal(k4, (cout,), jnp.float32)
    running_mean = 0.1 * jax.random.normal(k5, (cout,), jnp.float32)
    running_var = 0.9 + 0.1 * jnp.abs(jax.random.normal(k6, (cout,), jnp.float32))
    scale = gamma / jnp.sqrt(running_var + eps)
    bias = (b - running_mean) * scale + beta
    # OIHW -> (kh, kw, Cin, Cout) -> (9*Cin, Cout); tap index = kh*3 + kw
    # (matches the in-kernel tap ordering).  Fold BN scale into the weights.
    w2d = jnp.transpose(w, (2, 3, 1, 0)).reshape(9 * cin, cout)
    w2d = (w2d * scale[None, :]).astype(jnp.bfloat16)
    return (w2d, bias.astype(jnp.float32))


def make_decoder_block_params(key, in_channels):
    half = in_channels // 2
    k_up, k_c1, k_c2 = jax.random.split(key, 3)
    return {
        "up": _make_conv_bn_params(k_up, in_channels, half),   # after upsample
        "c1": _make_conv_bn_params(k_c1, in_channels, half),   # after concat
        "c2": _make_conv_bn_params(k_c2, half, half),
    }


@functools.partial(jax.jit, static_argnames=("tile_rows",))
def decoder_block_forward(x_nchw, skip_nchw, params, tile_rows=None):
    """DecoderBlock forward.  NCHW in/out (PyTorch convention); bf16 internals."""
    x = jnp.transpose(x_nchw, (0, 2, 3, 1)).astype(jnp.bfloat16)        # NHWC
    skip = jnp.transpose(skip_nchw, (0, 2, 3, 1)).astype(jnp.bfloat16)  # NHWC

    # upsample branch: nearest 2x -> conv -> BN -> ReLU
    # (XLA fuses the repeat/pad/halo-restructure into the kernel-input prep.)
    x = _upsample_nearest_2x(x)
    x = conv3x3_bn_relu(x, *params["up"], tile_rows=tile_rows)

    # center_crop_tensor(x.shape, skip) ; torch.cat((skip, x), dim=1)
    skip = _center_crop(x.shape[1:3], skip)
    x = jnp.concatenate([skip, x], axis=-1)

    # convolutions: (conv -> BN -> ReLU) x2
    x = conv3x3_bn_relu(x, *params["c1"], tile_rows=tile_rows)
    x = conv3x3_bn_relu(x, *params["c2"], tile_rows=tile_rows)

    return jnp.transpose(x, (0, 3, 1, 2)).astype(jnp.float32)           # NCHW


if __name__ == "__main__":
    key = jax.random.PRNGKey(0)
    k_x, k_skip, k_params = jax.random.split(key, 3)

    N, C, H, W = 2, 8, 8, 8                       # x: (N, C, H, W) NCHW
    HALF = C // 2
    # skip has in_channels//2 channels and a larger spatial extent (gets cropped)
    x = jax.random.normal(k_x, (N, C, H, W), jnp.float32)
    skip = jax.random.normal(k_skip, (N, HALF, 2 * H + 4, 2 * W + 4), jnp.float32)

    params = make_decoder_block_params(k_params, C)

    # tile_rows=8 -> 2 row-tiles per 16-row image: exercises the halo tiling
    # and the 2-D (batch, row_tile) grid even at this small test size.
    out = decoder_block_forward(x, skip, params, tile_rows=8)
    out = jax.block_until_ready(out)

    expected_shape = (N, HALF, 2 * H, 2 * W)
    assert out.shape == expected_shape, (out.shape, expected_shape)
    assert bool(jnp.all(jnp.isfinite(out)))
    print("KERNEL_OK")
</pallas_src>

<mosaic_0001>
module attributes {stable_mosaic.version = 11 : i64} {
  func.func @_conv3x3_bn_relu_kernel(%arg0: i32, %arg1: i32, %arg2: memref<1x1x10x18x8xbf16, #tpu.memory_space<vmem>>, %arg3: memref<72x4xbf16, #tpu.memory_space<vmem>>, %arg4: memref<1x4xf32, #tpu.memory_space<vmem>>, %arg5: memref<1x128x4xbf16, #tpu.memory_space<vmem>>, %arg6: memref<128x72xbf16, #tpu.memory_space<vmem>>) attributes {dimension_semantics = [#tpu.dimension_semantics<parallel>, #tpu.dimension_semantics<parallel>], iteration_bounds = array<i64: 2, 2>, scalar_prefetch = 0 : i64, scratch_operands = 1 : i64, tpu.core_type = #tpu.core_type<tc>, window_params = [{transform_indices = @transform_0, window_bounds = array<i64: 1, 1, 10, 18, 8>}, {pipeline_mode = #tpu.pipeline_mode<synchronous>, transform_indices = @transform_1, window_bounds = array<i64: 72, 4>}, {pipeline_mode = #tpu.pipeline_mode<synchronous>, transform_indices = @transform_2, window_bounds = array<i64: 1, 4>}, {transform_indices = @transform_3, window_bounds = array<i64: 1, 128, 4>}]} {
    %c0 = arith.constant 0 : index
    %c0_0 = arith.constant 0 : index
    %c0_1 = arith.constant 0 : index
    %c0_2 = arith.constant 0 : index
    %c0_3 = arith.constant 0 : index
    %0 = vector.load %arg2[%c0, %c0_0, %c0_1, %c0_2, %c0_3] : memref<1x1x10x18x8xbf16, #tpu.memory_space<vmem>>, vector<1x1x8x16x8xbf16>
    %1 = vector.shape_cast %0 : vector<1x1x8x16x8xbf16> to vector<8x16x8xbf16>
    %2 = vector.shape_cast %1 : vector<8x16x8xbf16> to vector<128x8xbf16>
    %c0_4 = arith.constant 0 : index
    %c0_5 = arith.constant 0 : index
    %3 = vector.load %arg6[%c0_4, %c0_5] : memref<128x72xbf16, #tpu.memory_space<vmem>>, vector<128x8xbf16>
    tpu.vector_store %arg6[%c0_4, %c0_5], %2 {strides = array<i32>} : memref<128x72xbf16, #tpu.memory_space<vmem>>, vector<128x8xbf16>,
    %c0_6 = arith.constant 0 : index
    %c0_7 = arith.constant 0 : index
    %c0_8 = arith.constant 0 : index
    %c1 = arith.constant 1 : index
    %c0_9 = arith.constant 0 : index
    %4 = vector.load %arg2[%c0_6, %c0_7, %c0_8, %c1, %c0_9] : memref<1x1x10x18x8xbf16, #tpu.memory_space<vmem>>, vector<1x1x8x16x8xbf16>
    %5 = vector.shape_cast %4 : vector<1x1x8x16x8xbf16> to vector<8x16x8xbf16>
    %6 = vector.shape_cast %5 : vector<8x16x8xbf16> to vector<128x8xbf16>
    %c0_10 = arith.constant 0 : index
    %c8 = arith.constant 8 : index
    %7 = vector.load %arg6[%c0_10, %c8] : memref<128x72xbf16, #tpu.memory_space<vmem>>, vector<128x8xbf16>
    tpu.vector_store %arg6[%c0_10, %c8], %6 {strides = array<i32>} : memref<128x72xbf16, #tpu.memory_space<vmem>>, vector<128x8xbf16>,
    %c0_11 = arith.constant 0 : index
    %c0_12 = arith.constant 0 : index
    %c0_13 = arith.constant 0 : index
    %c2 = arith.constant 2 : index
    %c0_14 = arith.constant 0 : index
    %8 = vector.load %arg2[%c0_11, %c0_12, %c0_13, %c2, %c0_14] : memref<1x1x10x18x8xbf16, #tpu.memory_space<vmem>>, vector<1x1x8x16x8xbf16>
    %9 = vector.shape_cast %8 : vector<1x1x8x16x8xbf16> to vector<8x16x8xbf16>
    %10 = vector.shape_cast %9 : vector<8x16x8xbf16> to vector<128x8xbf16>
    %c0_15 = arith.constant 0 : index
    %c16 = arith.constant 16 : index
    %11 = vector.load %arg6[%c0_15, %c16] : memref<128x72xbf16, #tpu.memory_space<vmem>>, vector<128x8xbf16>
    tpu.vector_store %arg6[%c0_15, %c16], %10 {strides = array<i32>} : memref<128x72xbf16, #tpu.memory_space<vmem>>, vector<128x8xbf16>,
    %c0_16 = arith.constant 0 : index
    %c0_17 = arith.constant 0 : index
    %c1_18 = arith.constant 1 : index
    %c0_19 = arith.constant 0 : index
    %c0_20 = arith.constant 0 : index
    %12 = vector.load %arg2[%c0_16, %c0_17, %c1_18, %c0_19, %c0_20] : memref<1x1x10x18x8xbf16, #tpu.memory_space<vmem>>, vector<1x1x8x16x8xbf16>
    %13 = vector.shape_cast %12 : vector<1x1x8x16x8xbf16> to vector<8x16x8xbf16>
    %14 = vector.shape_cast %13 : vector<8x16x8xbf16> to vector<128x8xbf16>
    %c0_21 = arith.constant 0 : index
    %c24 = arith.constant 24 : index
    %15 = vector.load %arg6[%c0_21, %c24] : memref<128x72xbf16, #tpu.memory_space<vmem>>, vector<128x8xbf16>
    tpu.vector_store %arg6[%c0_21, %c24], %14 {strides = array<i32>} : memref<128x72xbf16, #tpu.memory_space<vmem>>, vector<128x8xbf16>,
    %c0_22 = arith.constant 0 : index
    %c0_23 = arith.constant 0 : index
    %c1_24 = arith.constant 1 : index
    %c1_25 = arith.constant 1 : index
    %c0_26 = arith.constant 0 : index
    %16 = vector.load %arg2[%c0_22, %c0_23, %c1_24, %c1_25, %c0_26] : memref<1x1x10x18x8xbf16, #tpu.memory_space<vmem>>, vector<1x1x8x16x8xbf16>
    %17 = vector.shape_cast %16 : vector<1x1x8x16x8xbf16> to vector<8x16x8xbf16>
    %18 = vector.shape_cast %17 : vector<8x16x8xbf16> to vector<128x8xbf16>
    %c0_27 = arith.constant 0 : index
    %c32 = arith.constant 32 : index
    %19 = vector.load %arg6[%c0_27, %c32] : memref<128x72xbf16, #tpu.memory_space<vmem>>, vector<128x8xbf16>
    tpu.vector_store %arg6[%c0_27, %c32], %18 {strides = array<i32>} : memref<128x72xbf16, #tpu.memory_space<vmem>>, vector<128x8xbf16>,
    %c0_28 = arith.constant 0 : index
    %c0_29 = arith.constant 0 : index
    %c1_30 = arith.constant 1 : index
    %c2_31 = arith.constant 2 : index
    %c0_32 = arith.constant 0 : index
    %20 = vector.load %arg2[%c0_28, %c0_29, %c1_30, %c2_31, %c0_32] : memref<1x1x10x18x8xbf16, #tpu.memory_space<vmem>>, vector<1x1x8x16x8xbf16>
    %21 = vector.shape_cast %20 : vector<1x1x8x16x8xbf16> to vector<8x16x8xbf16>
    %22 = vector.shape_cast %21 : vector<8x16x8xbf16> to vector<128x8xbf16>
    %c0_33 = arith.constant 0 : index
    %c40 = arith.constant 40 : index
    %23 = vector.load %arg6[%c0_33, %c40] : memref<128x72xbf16, #tpu.memory_space<vmem>>, vector<128x8xbf16>
    tpu.vector_store %arg6[%c0_33, %c40], %22 {strides = array<i32>} : memref<128x72xbf16, #tpu.memory_space<vmem>>, vector<128x8xbf16>,
    %c0_34 = arith.constant 0 : index
    %c0_35 = arith.constant 0 : index
    %c2_36 = arith.constant 2 : index
    %c0_37 = arith.constant 0 : index
    %c0_38 = arith.constant 0 : index
    %24 = vector.load %arg2[%c0_34, %c0_35, %c2_36, %c0_37, %c0_38] : memref<1x1x10x18x8xbf16, #tpu.memory_space<vmem>>, vector<1x1x8x16x8xbf16>
    %25 = vector.shape_cast %24 : vector<1x1x8x16x8xbf16> to vector<8x16x8xbf16>
    %26 = vector.shape_cast %25 : vector<8x16x8xbf16> to vector<128x8xbf16>
    %c0_39 = arith.constant 0 : index
    %c48 = arith.constant 48 : index
    %27 = vector.load %arg6[%c0_39, %c48] : memref<128x72xbf16, #tpu.memory_space<vmem>>, vector<128x8xbf16>
    tpu.vector_store %arg6[%c0_39, %c48], %26 {strides = array<i32>} : memref<128x72xbf16, #tpu.memory_space<vmem>>, vector<128x8xbf16>,
    %c0_40 = arith.constant 0 : index
    %c0_41 = arith.constant 0 : index
    %c2_42 = arith.constant 2 : index
    %c1_43 = arith.constant 1 : index
    %c0_44 = arith.constant 0 : index
    %28 = vector.load %arg2[%c0_40, %c0_41, %c2_42, %c1_43, %c0_44] : memref<1x1x10x18x8xbf16, #tpu.memory_space<vmem>>, vector<1x1x8x16x8xbf16>
    %29 = vector.shape_cast %28 : vector<1x1x8x16x8xbf16> to vector<8x16x8xbf16>
    %30 = vector.shape_cast %29 : vector<8x16x8xbf16> to vector<128x8xbf16>
    %c0_45 = arith.constant 0 : index
    %c56 = arith.constant 56 : index
    %31 = vector.load %arg6[%c0_45, %c56] : memref<128x72xbf16, #tpu.memory_space<vmem>>, vector<128x8xbf16>
    tpu.vector_store %arg6[%c0_45, %c56], %30 {strides = array<i32>} : memref<128x72xbf16, #tpu.memory_space<vmem>>, vector<128x8xbf16>,
    %c0_46 = arith.constant 0 : index
    %c0_47 = arith.constant 0 : index
    %c2_48 = arith.constant 2 : index
    %c2_49 = arith.constant 2 : index
    %c0_50 = arith.constant 0 : index
    %32 = vector.load %arg2[%c0_46, %c0_47, %c2_48, %c2_49, %c0_50] : memref<1x1x10x18x8xbf16, #tpu.memory_space<vmem>>, vector<1x1x8x16x8xbf16>
    %33 = vector.shape_cast %32 : vector<1x1x8x16x8xbf16> to vector<8x16x8xbf16>
    %34 = vector.shape_cast %33 : vector<8x16x8xbf16> to vector<128x8xbf16>
    %c0_51 = arith.constant 0 : index
    %c64 = arith.constant 64 : index
    %35 = vector.load %arg6[%c0_51, %c64] : memref<128x72xbf16, #tpu.memory_space<vmem>>, vector<128x8xbf16>
    tpu.vector_store %arg6[%c0_51, %c64], %34 {strides = array<i32>} : memref<128x72xbf16, #tpu.memory_space<vmem>>, vector<128x8xbf16>,
    %c0_52 = arith.constant 0 : index
    %c0_53 = arith.constant 0 : index
    %36 = vector.load %arg6[%c0_52, %c0_53] : memref<128x72xbf16, #tpu.memory_space<vmem>>, vector<128x72xbf16>
    %c0_54 = arith.constant 0 : index
    %c0_55 = arith.constant 0 : index
    %37 = vector.load %arg3[%c0_54, %c0_55] : memref<72x4xbf16, #tpu.memory_space<vmem>>, vector<72x4xbf16>
    %cst = arith.constant dense<0.000000e+00> : vector<128x4xf32>
    %38 = tpu.matmul %36, %37, %cst {dimension_numbers = #tpu.dot_dimension_numbers<[1], [0], [0], [1], [0, 0, 1, 1], [], []>} : vector<128x72xbf16>, vector<72x4xbf16>, vector<128x4xf32> -> vector<128x4xf32>
    %c0_56 = arith.constant 0 : index
    %c0_57 = arith.constant 0 : index
    %39 = vector.load %arg4[%c0_56, %c0_57] : memref<1x4xf32, #tpu.memory_space<vmem>>, vector<1x4xf32>
    %40 = vector.broadcast %39 : vector<1x4xf32> to vector<128x4xf32>
    %41 = arith.addf %38, %40 : vector<128x4xf32>
    %cst_58 = arith.constant 0.000000e+00 : f32
    %42 = vector.broadcast %cst_58 : f32 to vector<128x4xf32>
    %43 = arith.maximumf %41, %42 : vector<128x4xf32>
    %44 = arith.truncf %43 : vector<128x4xf32> to vector<128x4xbf16>
    %c0_59 = arith.constant 0 : index
    %c0_60 = arith.constant 0 : index
    %c0_61 = arith.constant 0 : index
    %45 = vector.load %arg5[%c0_59, %c0_60, %c0_61] : memref<1x128x4xbf16, #tpu.memory_space<vmem>>, vector<1x128x4xbf16>
    %46 = vector.shape_cast %45 : vector<1x128x4xbf16> to vector<128x4xbf16>
    %47 = vector.shape_cast %44 : vector<128x4xbf16> to vector<1x128x4xbf16>
    tpu.vector_store %arg5[%c0_59, %c0_60, %c0_61], %47 {strides = array<i32>} : memref<1x128x4xbf16, #tpu.memory_space<vmem>>, vector<1x128x4xbf16>,
    return
  }
  func.func @transform_0(%arg0: i32, %arg1: i32) -> (i32, i32, i32, i32, i32) {
    %c0_i32 = arith.constant 0 : i32
    %c0_i32_0 = arith.constant 0 : i32
    %c0_i32_1 = arith.constant 0 : i32
    %c0_i32_2 = arith.constant 0 : i32
    return %arg0, %arg1, %c0_i32, %c0_i32_0, %c0_i32_1 : i32, i32, i32, i32, i32
  }
  func.func @transform_1(%arg0: i32, %arg1: i32) -> (i32, i32) {
    %c0_i32 = arith.constant 0 : i32
    %c0_i32_0 = arith.constant 0 : i32
    %c0_i32_1 = arith.constant 0 : i32
    return %c0_i32, %c0_i32_0 : i32, i32
  }
  func.func @transform_2(%arg0: i32, %arg1: i32) -> (i32, i32) {
    %c0_i32 = arith.constant 0 : i32
    %c0_i32_0 = arith.constant 0 : i32
    %c0_i32_1 = arith.constant 0 : i32
    return %c0_i32, %c0_i32_0 : i32, i32
  }
  func.func @transform_3(%arg0: i32, %arg1: i32) -> (i32, i32, i32) {
    %c0_i32 = arith.constant 0 : i32
    %c0_i32_0 = arith.constant 0 : i32
    return %arg0, %arg1, %c0_i32 : i32, i32, i32
  }
}

module attributes {stable_mosaic.version = 11 : i64} {
  func.func @_conv3x3_bn_relu_kernel(%arg0: i32, %arg1: i32, %arg2: memref<1x1x10x18x4xbf16, #tpu.memory_space<vmem>>, %arg3: memref<36x4xbf16, #tpu.memory_space<vmem>>, %arg4: memref<1x4xf32, #tpu.memory_space<vmem>>, %arg5: memref<1x128x4xbf16, #tpu.memory_space<vmem>>, %arg6: memref<128x36xbf16, #tpu.memory_space<vmem>>) attributes {dimension_semantics = [#tpu.dimension_semantics<parallel>, #tpu.dimension_semantics<parallel>], iteration_bounds = array<i64: 2, 2>, scalar_prefetch = 0 : i64, scratch_operands = 1 : i64, tpu.core_type = #tpu.core_type<tc>, window_params = [{transform_indices = @transform_0, window_bounds = array<i64: 1, 1, 10, 18, 4>}, {pipeline_mode = #tpu.pipeline_mode<synchronous>, transform_indices = @transform_1, window_bounds = array<i64: 36, 4>}, {pipeline_mode = #tpu.pipeline_mode<synchronous>, transform_indices = @transform_2, window_bounds = array<i64: 1, 4>}, {transform_indices = @transform_3, window_bounds = array<i64: 1, 128, 4>}]} {
    %c0 = arith.constant 0 : index
    %c0_0 = arith.constant 0 : index
    %c0_1 = arith.constant 0 : index
    %c0_2 = arith.constant 0 : index
    %c0_3 = arith.constant 0 : index
    %0 = vector.load %arg2[%c0, %c0_0, %c0_1, %c0_2, %c0_3] : memref<1x1x10x18x4xbf16, #tpu.memory_space<vmem>>, vector<1x1x8x16x4xbf16>
    %1 = vector.shape_cast %0 : vector<1x1x8x16x4xbf16> to vector<8x16x4xbf16>
    %2 = vector.shape_cast %1 : vector<8x16x4xbf16> to vector<128x4xbf16>
    %c0_4 = arith.constant 0 : index
    %c0_5 = arith.constant 0 : index
    %3 = vector.load %arg6[%c0_4, %c0_5] : memref<128x36xbf16, #tpu.memory_space<vmem>>, vector<128x4xbf16>
    tpu.vector_store %arg6[%c0_4, %c0_5], %2 {strides = array<i32>} : memref<128x36xbf16, #tpu.memory_space<vmem>>, vector<128x4xbf16>,
    %c0_6 = arith.constant 0 : index
    %c0_7 = arith.constant 0 : index
    %c0_8 = arith.constant 0 : index
    %c1 = arith.constant 1 : index
    %c0_9 = arith.constant 0 : index
    %4 = vector.load %arg2[%c0_6, %c0_7, %c0_8, %c1, %c0_9] : memref<1x1x10x18x4xbf16, #tpu.memory_space<vmem>>, vector<1x1x8x16x4xbf16>
    %5 = vector.shape_cast %4 : vector<1x1x8x16x4xbf16> to vector<8x16x4xbf16>
    %6 = vector.shape_cast %5 : vector<8x16x4xbf16> to vector<128x4xbf16>
    %c0_10 = arith.constant 0 : index
    %c4 = arith.constant 4 : index
    %7 = vector.load %arg6[%c0_10, %c4] : memref<128x36xbf16, #tpu.memory_space<vmem>>, vector<128x4xbf16>
    tpu.vector_store %arg6[%c0_10, %c4], %6 {strides = array<i32>} : memref<128x36xbf16, #tpu.memory_space<vmem>>, vector<128x4xbf16>,
    %c0_11 = arith.constant 0 : index
    %c0_12 = arith.constant 0 : index
    %c0_13 = arith.constant 0 : index
    %c2 = arith.constant 2 : index
    %c0_14 = arith.constant 0 : index
    %8 = vector.load %arg2[%c0_11, %c0_12, %c0_13, %c2, %c0_14] : memref<1x1x10x18x4xbf16, #tpu.memory_space<vmem>>, vector<1x1x8x16x4xbf16>
    %9 = vector.shape_cast %8 : vector<1x1x8x16x4xbf16> to vector<8x16x4xbf16>
    %10 = vector.shape_cast %9 : vector<8x16x4xbf16> to vector<128x4xbf16>
    %c0_15 = arith.constant 0 : index
    %c8 = arith.constant 8 : index
    %11 = vector.load %arg6[%c0_15, %c8] : memref<128x36xbf16, #tpu.memory_space<vmem>>, vector<128x4xbf16>
    tpu.vector_store %arg6[%c0_15, %c8], %10 {strides = array<i32>} : memref<128x36xbf16, #tpu.memory_space<vmem>>, vector<128x4xbf16>,
    %c0_16 = arith.constant 0 : index
    %c0_17 = arith.constant 0 : index
    %c1_18 = arith.constant 1 : index
    %c0_19 = arith.constant 0 : index
    %c0_20 = arith.constant 0 : index
    %12 = vector.load %arg2[%c0_16, %c0_17, %c1_18, %c0_19, %c0_20] : memref<1x1x10x18x4xbf16, #tpu.memory_space<vmem>>, vector<1x1x8x16x4xbf16>
    %13 = vector.shape_cast %12 : vector<1x1x8x16x4xbf16> to vector<8x16x4xbf16>
    %14 = vector.shape_cast %13 : vector<8x16x4xbf16> to vector<128x4xbf16>
    %c0_21 = arith.constant 0 : index
    %c12 = arith.constant 12 : index
    %15 = vector.load %arg6[%c0_21, %c12] : memref<128x36xbf16, #tpu.memory_space<vmem>>, vector<128x4xbf16>
    tpu.vector_store %arg6[%c0_21, %c12], %14 {strides = array<i32>} : memref<128x36xbf16, #tpu.memory_space<vmem>>, vector<128x4xbf16>,
    %c0_22 = arith.constant 0 : index
    %c0_23 = arith.constant 0 : index
    %c1_24 = arith.constant 1 : index
    %c1_25 = arith.constant 1 : index
    %c0_26 = arith.constant 0 : index
    %16 = vector.load %arg2[%c0_22, %c0_23, %c1_24, %c1_25, %c0_26] : memref<1x1x10x18x4xbf16, #tpu.memory_space<vmem>>, vector<1x1x8x16x4xbf16>
    %17 = vector.shape_cast %16 : vector<1x1x8x16x4xbf16> to vector<8x16x4xbf16>
    %18 = vector.shape_cast %17 : vector<8x16x4xbf16> to vector<128x4xbf16>
    %c0_27 = arith.constant 0 : index
    %c16 = arith.constant 16 : index
    %19 = vector.load %arg6[%c0_27, %c16] : memref<128x36xbf16, #tpu.memory_space<vmem>>, vector<128x4xbf16>
    tpu.vector_store %arg6[%c0_27, %c16], %18 {strides = array<i32>} : memref<128x36xbf16, #tpu.memory_space<vmem>>, vector<128x4xbf16>,
    %c0_28 = arith.constant 0 : index
    %c0_29 = arith.constant 0 : index
    %c1_30 = arith.constant 1 : index
    %c2_31 = arith.constant 2 : index
    %c0_32 = arith.constant 0 : index
    %20 = vector.load %arg2[%c0_28, %c0_29, %c1_30, %c2_31, %c0_32] : memref<1x1x10x18x4xbf16, #tpu.memory_space<vmem>>, vector<1x1x8x16x4xbf16>
    %21 = vector.shape_cast %20 : vector<1x1x8x16x4xbf16> to vector<8x16x4xbf16>
    %22 = vector.shape_cast %21 : vector<8x16x4xbf16> to vector<128x4xbf16>
    %c0_33 = arith.constant 0 : index
    %c20 = arith.constant 20 : index
    %23 = vector.load %arg6[%c0_33, %c20] : memref<128x36xbf16, #tpu.memory_space<vmem>>, vector<128x4xbf16>
    tpu.vector_store %arg6[%c0_33, %c20], %22 {strides = array<i32>} : memref<128x36xbf16, #tpu.memory_space<vmem>>, vector<128x4xbf16>,
    %c0_34 = arith.constant 0 : index
    %c0_35 = arith.constant 0 : index
    %c2_36 = arith.constant 2 : index
    %c0_37 = arith.constant 0 : index
    %c0_38 = arith.constant 0 : index
    %24 = vector.load %arg2[%c0_34, %c0_35, %c2_36, %c0_37, %c0_38] : memref<1x1x10x18x4xbf16, #tpu.memory_space<vmem>>, vector<1x1x8x16x4xbf16>
    %25 = vector.shape_cast %24 : vector<1x1x8x16x4xbf16> to vector<8x16x4xbf16>
    %26 = vector.shape_cast %25 : vector<8x16x4xbf16> to vector<128x4xbf16>
    %c0_39 = arith.constant 0 : index
    %c24 = arith.constant 24 : index
    %27 = vector.load %arg6[%c0_39, %c24] : memref<128x36xbf16, #tpu.memory_space<vmem>>, vector<128x4xbf16>
    tpu.vector_store %arg6[%c0_39, %c24], %26 {strides = array<i32>} : memref<128x36xbf16, #tpu.memory_space<vmem>>, vector<128x4xbf16>,
    %c0_40 = arith.constant 0 : index
    %c0_41 = arith.constant 0 : index
    %c2_42 = arith.constant 2 : index
    %c1_43 = arith.constant 1 : index
    %c0_44 = arith.constant 0 : index
    %28 = vector.load %arg2[%c0_40, %c0_41, %c2_42, %c1_43, %c0_44] : memref<1x1x10x18x4xbf16, #tpu.memory_space<vmem>>, vector<1x1x8x16x4xbf16>
    %29 = vector.shape_cast %28 : vector<1x1x8x16x4xbf16> to vector<8x16x4xbf16>
    %30 = vector.shape_cast %29 : vector<8x16x4xbf16> to vector<128x4xbf16>
    %c0_45 = arith.constant 0 : index
    %c28 = arith.constant 28 : index
    %31 = vector.load %arg6[%c0_45, %c28] : memref<128x36xbf16, #tpu.memory_space<vmem>>, vector<128x4xbf16>
    tpu.vector_store %arg6[%c0_45, %c28], %30 {strides = array<i32>} : memref<128x36xbf16, #tpu.memory_space<vmem>>, vector<128x4xbf16>,
    %c0_46 = arith.constant 0 : index
    %c0_47 = arith.constant 0 : index
    %c2_48 = arith.constant 2 : index
    %c2_49 = arith.constant 2 : index
    %c0_50 = arith.constant 0 : index
    %32 = vector.load %arg2[%c0_46, %c0_47, %c2_48, %c2_49, %c0_50] : memref<1x1x10x18x4xbf16, #tpu.memory_space<vmem>>, vector<1x1x8x16x4xbf16>
    %33 = vector.shape_cast %32 : vector<1x1x8x16x4xbf16> to vector<8x16x4xbf16>
    %34 = vector.shape_cast %33 : vector<8x16x4xbf16> to vector<128x4xbf16>
    %c0_51 = arith.constant 0 : index
    %c32 = arith.constant 32 : index
    %35 = vector.load %arg6[%c0_51, %c32] : memref<128x36xbf16, #tpu.memory_space<vmem>>, vector<128x4xbf16>
    tpu.vector_store %arg6[%c0_51, %c32], %34 {strides = array<i32>} : memref<128x36xbf16, #tpu.memory_space<vmem>>, vector<128x4xbf16>,
    %c0_52 = arith.constant 0 : index
    %c0_53 = arith.constant 0 : index
    %36 = vector.load %arg6[%c0_52, %c0_53] : memref<128x36xbf16, #tpu.memory_space<vmem>>, vector<128x36xbf16>
    %c0_54 = arith.constant 0 : index
    %c0_55 = arith.constant 0 : index
    %37 = vector.load %arg3[%c0_54, %c0_55] : memref<36x4xbf16, #tpu.memory_space<vmem>>, vector<36x4xbf16>
    %cst = arith.constant dense<0.000000e+00> : vector<128x4xf32>
    %38 = tpu.matmul %36, %37, %cst {dimension_numbers = #tpu.dot_dimension_numbers<[1], [0], [0], [1], [0, 0, 1, 1], [], []>} : vector<128x36xbf16>, vector<36x4xbf16>, vector<128x4xf32> -> vector<128x4xf32>
    %c0_56 = arith.constant 0 : index
    %c0_57 = arith.constant 0 : index
    %39 = vector.load %arg4[%c0_56, %c0_57] : memref<1x4xf32, #tpu.memory_space<vmem>>, vector<1x4xf32>
    %40 = vector.broadcast %39 : vector<1x4xf32> to vector<128x4xf32>
    %41 = arith.addf %38, %40 : vector<128x4xf32>
    %cst_58 = arith.constant 0.000000e+00 : f32
    %42 = vector.broadcast %cst_58 : f32 to vector<128x4xf32>
    %43 = arith.maximumf %41, %42 : vector<128x4xf32>
    %44 = arith.truncf %43 : vector<128x4xf32> to vector<128x4xbf16>
    %c0_59 = arith.constant 0 : index
    %c0_60 = arith.constant 0 : index
    %c0_61 = arith.constant 0 : index
    %45 = vector.load %arg5[%c0_59, %c0_60, %c0_61] : memref<1x128x4xbf16, #tpu.memory_space<vmem>>, vector<1x128x4xbf16>
    %46 = vector.shape_cast %45 : vector<1x128x4xbf16> to vector<128x4xbf16>
    %47 = vector.shape_cast %44 : vector<128x4xbf16> to vector<1x128x4xbf16>
    tpu.vector_store %arg5[%c0_59, %c0_60, %c0_61], %47 {strides = array<i32>} : memref<1x128x4xbf16, #tpu.memory_space<vmem>>, vector<1x128x4xbf16>,
    return
  }
  func.func @transform_0(%arg0: i32, %arg1: i32) -> (i32, i32, i32, i32, i32) {
    %c0_i32 = arith.constant 0 : i32
    %c0_i32_0 = arith.constant 0 : i32
    %c0_i32_1 = arith.constant 0 : i32
    %c0_i32_2 = arith.constant 0 : i32
    return %arg0, %arg1, %c0_i32, %c0_i32_0, %c0_i32_1 : i32, i32, i32, i32, i32
  }
  func.func @transform_1(%arg0: i32, %arg1: i32) -> (i32, i32) {
    %c0_i32 = arith.constant 0 : i32
    %c0_i32_0 = arith.constant 0 : i32
    %c0_i32_1 = arith.constant 0 : i32
    return %c0_i32, %c0_i32_0 : i32, i32
  }
  func.func @transform_2(%arg0: i32, %arg1: i32) -> (i32, i32) {
    %c0_i32 = arith.constant 0 : i32
    %c0_i32_0 = arith.constant 0 : i32
    %c0_i32_1 = arith.constant 0 : i32
    return %c0_i32, %c0_i32_0 : i32, i32
  }
  func.func @transform_3(%arg0: i32, %arg1: i32) -> (i32, i32, i32) {
    %c0_i32 = arith.constant 0 : i32
    %c0_i32_0 = arith.constant 0 : i32
    return %arg0, %arg1, %c0_i32 : i32, i32, i32
  }
}

</mosaic_0001>

<bundles_post_ra>
// kernel: decoder_block_forward.3
= control target key start
LH: loop header
LB: loop body
LE: loop exit
PB: predicated region body
PF: predicated region fallthrough
CT: control target
= control target key end

     0   :  { %s2616_s12 = smov 0   ;;  %s2618_s13 = smov 0   ;;  %s3285_s0 = inlined_call_operand.vmem [shape: bf16[2,2,10,18,8], index: 0, kind: input, shape index: {}]   ;;  %s3286_s1 = inlined_call_operand.vmem [shape: bf16[72,4], index: 1, kind: input, shape index: {}]   ;;  %s3287_s2 = inlined_call_operand.vmem [shape: f32[1,4], index: 2, kind: input, shape index: {}]   ;;  %s3288_s3 = inlined_call_operand.vmem [shape: bf16[2,256,4], index: 3, kind: output, shape index: {}]  }
   0x1   :  { %s2620_s14 = smov 0   ;;  %s2622_s15 = smov 0  }
   0x2   :  { %s2624_s16 = smov 0  }
   0x3 LB: > { %s22_s17 = sadd.s32 1, %s2578_s14  ;;  %s25_s18 = sadd.s32 1, %s2582_s15  ;;  %s2586_s16 = sphi %s2624_s16, %s13_s16   ;;  %s2582_s15 = sphi %s2622_s15, %s3296_s15   ;;  %s2578_s14 = sphi %s2620_s14, %s3295_s14   ;;  %s2574_s13 = sphi %s2618_s13, %s3294_s13   ;;  %s2570_s12 = sphi %s2616_s12, %s3293_s12  }
   0x4   : > { %p23_p0 = scmp.ge.s32.totalorder %s22_s17, 2  ;;  %p2141_p1 = scmp.ge.s32.totalorder %s2586_s16, 1 }
   0x5   : > { %p157_p2 = scmp.lt.s32.totalorder %s2586_s16, 5 }
   0x6   : > { %s3298_s17 = smov (%p23_p0, %s22_s17), 0  ;;  %s3300_s18 = smov (!%p23_p0, %s25_s18), %s2582_s15 }
   0x7   : > { %p158_p3 = pnand %p2141_p1, %p157_p2  ;;  %p27_p4 = scmp.ge.s32.totalorder %s3300_s18, 2 }
   0x8   : > { %p189_p5 = scmp.lt.s32.totalorder (!%p158_p3), %s2574_s13, 1  ;;  %p191_p6 = scmp.lt.s32.totalorder (!%p158_p3), %s2570_s12, 1  ;;  %vm606_vm0 = vcmask (!%p158_p3), 1042432   ;;  %vm607_vm1 = vcmask (!%p158_p3), 1046532   ;;  %vm306_vm3 = vsmask.f32 (!%p158_p3), 3328 }
   0x9   : > { %s3302_s18 = smov (%p27_p4, %s3300_s18), 0  ;;  %161 = sbr.rel (%p158_p3) target bundleno = 525 (0x20d), region = 32 }
   0xa   : > { %vm2658_vm2 = vmor (!%p158_p3), %vm606_vm0, %vm607_vm1  ;;  %s2588_s27 = smov (!%p158_p3), 24   ;;  %vm307_vm4 = vsmask.f32 (!%p158_p3), 7440  ;;  %s2589_s28 = smov (!%p158_p3), 16   ;;  %vm273_vm6 = vcmask (!%p158_p3), 64512   ;;  %vm549_vm7 = vcmask (!%p158_p3), 130112  }
   0xb   : > { %vm2712_vm5 = vmor (!%p158_p3), %vm306_vm3, %vm307_vm4  ;;  %s2590_s29 = smov (!%p158_p3), 8   ;;  %s2591_s30 = smov (!%p158_p3), 32   ;;  %vm713_vm8 = vcmask (!%p158_p3), 195712   ;;  %vm803_vm9 = vcmask (!%p158_p3), 261312   ;;  %vm1846_vm10 = vcmask (!%p158_p3), 1043456   ;;  %vm1076_vm11 = vcmask (!%p158_p3), 326912  }
   0xc   : > { %s2592_s4 = smov (!%p158_p3), 40   ;;  %s2593_s5 = smov (!%p158_p3), 48   ;;  %vm1237_vm12 = vcmask (!%p158_p3), 392512   ;;  %vm1327_vm13 = vcmask (!%p158_p3), 458112   ;;  %vm1600_vm14 = vcmask (!%p158_p3), 523712   ;;  %vm1761_vm15 = vcmask (!%p158_p3), 589312  }
   0xd   : > { %s2594_s8 = smov (!%p158_p3), 56   ;;  %vm1821_vm0 = vcmask (!%p158_p3), 588800   ;;  %s2143_s25 = sshll.u32 (!%p158_p3), %s2570_s12, 4  ;;  %vm2027_vm1 = vcmask (!%p158_p3), 27648  }
   0xe   : > { %p201_p7 = scmp.lt.s32.totalorder (!%p158_p3), %s2143_s25, 31 }
  0x10   : > { %s3304_s13 = smov (!%p189_p5, %s2574_s13), 1  ;;  %s3306_s25 = smov (!%p201_p7, %s2143_s25), 31 }
  0x11   : > { %s192_s19 = scalar_select %p191_p6, %s2570_s12, 1 }
  0x12   : > { %s2470_s20 = smul.u32 60, %s3304_s13 }
  0x13   : > { %s2469_s21 = smul.u32 30, %s192_s19 }
  0x15   : > { %s195_s22 = sadd.s32 %s2470_s20, %s2469_s21  ;;  %s2595_s20 = smov 64  }
  0x16   : > { %s2142_s23 = sshll.u32 %s195_s22, 2 }
  0x17   : > { %s2656_s26 = scalar_lea.vmem %s3285_s0, %s2142_s23 }
  0x18   : > { %v2519_v1 = vld [vmem:[%s2656_s26 + $0x3c] sm:$0xff]   ;;  %v2520_v2 = vld [vmem:[%s2656_s26 + $0xc] sm:$0xff]   ;;  %v571_v6 = vld [vmem:[%s2656_s26 + $0x34] sm:$0xf] }
  0x19   : > { %787 = vrot.lane.b32.xlu1 %v2519_v1, %s2588_s27  ;;  %v2521_v3 = vld [vmem:[%s2656_s26 + $0x48] sm:$0xff]   ;;  %779 = vrot.lane.b32.xlu0 %v2520_v2, %s2588_s27  ;;  %v2522_v4 = vld [vmem:[%s2656_s26 + $0x18] sm:$0xff]   ;;  %v639_v9 = vrot.slane %v571_v6, 5 }
  0x1a   : > { %v570_v5 = vld [vmem:[%s2656_s26 + $0x30] sm:$0xe]  ;;  %v572_v7 = vld [vmem:[%s2656_s26 + $0x38] sm:$0x1]  ;;  %v558_v11 = vld [vmem:[%s2656_s26] sm:$0xe] }
  0x1b   : > { %v2166_v8 = vrot.slane %v570_v5, 9  ;;  %v642_v10 = vrot.slane %v572_v7, 5  ;;  %v559_v12 = vld [vmem:[%s2656_s26 + $0x4] sm:$0xf]  ;;  %v560_v13 = vld [vmem:[%s2656_s26 + $0x8] sm:$0x1] }
  0x1c   : > { %v2162_v14 = vrot.slane %v558_v11, 9  ;;  %v641_v16 = vrot.slane %v639_v9, 4  ;;  %v611_v17 = vrot.slane %v559_v12, 5  ;;  %v614_v18 = vrot.slane %v560_v13, 5  ;;  %v573_v19 = vld [vmem:[%s2656_s26 + $0x3c] sm:$0xe] }
  0x1d   : > { %789 = vrot.lane.b32.xlu1 %v2521_v3, %s2588_s27  ;;  %781 = vrot.lane.b32.xlu0 %v2522_v4, %s2588_s27  ;;  %v640_v15 = vsel %vm2658_vm2, %v2166_v8, %v639_v9  ;;  %v574_v20 = vld [vmem:[%s2656_s26 + $0x40] sm:$0xf]  ;;  %v575_v21 = vld [vmem:[%s2656_s26 + $0x44] sm:$0x1]  ;;  %v2167_v22 = vrot.slane %v573_v19, 9 }
  0x1e   : > { %v643_v23 = vsel %vm2658_vm2, %v641_v16, %v642_v10  ;;  %v612_v24 = vsel %vm2658_vm2, %v2162_v14, %v611_v17  ;;  %v613_v25 = vrot.slane %v611_v17, 4  ;;  %v646_v26 = vrot.slane %v574_v20, 5  ;;  %v561_v27 = vld [vmem:[%s2656_s26 + $0xc] sm:$0xe]  ;;  %v562_v28 = vld [vmem:[%s2656_s26 + $0x10] sm:$0xf] }
  0x1f   : > { %v2174_v29 = vcombine.low %v640_v15, %v643_v23  ;;  %v649_v30 = vrot.slane %v575_v21, 5  ;;  %v563_v31 = vld [vmem:[%s2656_s26 + $0x14] sm:$0x1]  ;;  %v2163_v32 = vrot.slane %v561_v27, 9  ;;  %v618_v33 = vrot.slane %v562_v28, 5 }
  0x20   : > { %v615_v34 = vsel %vm2658_vm2, %v613_v25, %v614_v18  ;;  %v647_v35 = vsel %vm2658_vm2, %v2167_v22, %v646_v26  ;;  %v648_v36 = vrot.slane %v646_v26, 4  ;;  %v621_v37 = vrot.slane %v563_v31, 5  ;;  %v285_v38 = vld [vmem:[%s2656_s26 + $0xc] sm:$0xf]  ;;  %v286_v39 = vld [vmem:[%s2656_s26 + $0x10] sm:$0xf] }
  0x21   : > { %697 = vrot.lane.b32.xlu1 %v2174_v29, %s2589_s28  ;;  %v2170_v40 = vcombine.low %v612_v24, %v615_v34  ;;  %v619_v41 = vsel %vm2658_vm2, %v2163_v32, %v618_v33  ;;  %v620_v42 = vrot.slane %v618_v33, 4  ;;  %v287_v43 = vld [vmem:[%s2656_s26 + $0x14] sm:$0x1]  ;;  %v334_v44 = vshrl.u32 %v285_v38, 16  ;;  %v282_v45 = vld [vmem:[%s2656_s26] sm:$0xf] }
  0x22   : > { %v650_v46 = vsel %vm2658_vm2, %v648_v36, %v649_v30  ;;  %v337_v47 = vshll.u32 %v285_v38, 16  ;;  %v343_v48 = vshll.u32 %v286_v39, 16  ;;  %v347_v49 = vshrl.u32 %v286_v39, 16  ;;  %v283_v50 = vld [vmem:[%s2656_s26 + $0x4] sm:$0xf] }
  0x23   : > { %689 = vrot.lane.b32.xlu0 %v2170_v40, %s2589_s28  ;;  %v2175_v51 = vcombine.low %v647_v35, %v650_v46  ;;  %v622_v52 = vsel %vm2658_vm2, %v620_v42, %v621_v37  ;;  %v336_v53 = vrot.slane %v334_v44, 4  ;;  %v353_v54 = vshll.u32 %v287_v43, 16  ;;  %v284_v55 = vld [vmem:[%s2656_s26 + $0x8] sm:$0x1]  ;;  %v297_v60 = vld [vmem:[%s2656_s26 + $0x3c] sm:$0xf] }
  0x24   : > { %v2171_v56 = vcombine.low %v619_v41, %v622_v52  ;;  %v339_v57 = vrot.slane %v337_v47, 5  ;;  %v345_v58 = vrot.slane %v343_v48, 5  ;;  %v349_v59 = vrot.slane %v347_v49, 4  ;;  %v298_v6 = vld [vmem:[%s2656_s26 + $0x40] sm:$0xf] }
  0x25   : > { %699 = vrot.lane.b32.xlu1 %v2175_v51, %s2589_s28  ;;  %v355_v61 = vrot.slane %v353_v54, 5  ;;  %v310_v62 = vshrl.u32 %v282_v45, 16  ;;  %v313_v63 = vshll.u32 %v282_v45, 16  ;;  %v319_v1 = vshll.u32 %v283_v50, 16  ;;  %v299_v16 = vld [vmem:[%s2656_s26 + $0x44] sm:$0x1] }
  0x26   : > { %v340_v2 = vor.u32 %v339_v57, %v336_v53  ;;  %v350_v3 = vor.u32 %v349_v59, %v345_v58  ;;  %v323_v4 = vshrl.u32 %v283_v50, 16  ;;  %v329_v5 = vshll.u32 %v284_v55, 16  ;;  %v294_v21 = vld [vmem:[%s2656_s26 + $0x30] sm:$0xf]  ;;  %v295_v26 = vld [vmem:[%s2656_s26 + $0x34] sm:$0xf] }
  0x27   : > { %691 = vrot.lane.b32.xlu0 %v2171_v56, %s2589_s28  ;;  %v312_v8 = vrot.slane %v310_v62, 4  ;;  %v315_v9 = vrot.slane %v313_v63, 5  ;;  %v321_v10 = vrot.slane %v319_v1, 5  ;;  %v430_v11 = vshrl.u32 %v297_v60, 16  ;;  %v296_v37 = vld [vmem:[%s2656_s26 + $0x38] sm:$0x1] }
  0x28   : > { %v341_v12 = vrot.slane %v340_v2, 4  ;;  %v351_v13 = vrot.slane %v350_v3, 4  ;;  %v325_v14 = vrot.slane %v323_v4, 4  ;;  %v331_v15 = vrot.slane %v329_v5, 5  ;;  %v2214_v40 = vld [vmem:[%s2656_s26 + $0x3c] sm:$0xf] }
  0x29   : > { %v316_v17 = vor.u32 %v315_v9, %v312_v8  ;;  %v432_v18 = vrot.slane %v430_v11, 4  ;;  %v433_v19 = vshll.u32 %v297_v60, 16  ;;  %v439_v20 = vshll.u32 %v298_v6, 16  ;;  %v2215_v45 = vld [vmem:[%s2656_s26 + $0x40] sm:$0xf] }
  0x2a   : > { %v346_v22 = vsel %vm2712_vm5, %v341_v12, %v345_v58  ;;  %v356_v23 = vsel %vm2712_vm5, %v351_v13, %v355_v61  ;;  %v326_v24 = vor.u32 %v325_v14, %v321_v10  ;;  %v443_v25 = vshrl.u32 %v298_v6, 16  ;;  %v2216_v56 = vld [vmem:[%s2656_s26 + $0x44] sm:$0x1]  ;;  %v2202_v59 = vld [vmem:[%s2656_s26 + $0xc] sm:$0xf] }
  0x2b   : > { %v2155_v27 = vcombine.low %v346_v22, %v356_v23  ;;  %v317_v28 = vrot.slane %v316_v17, 4  ;;  %v435_v29 = vrot.slane %v433_v19, 5  ;;  %v441_v30 = vrot.slane %v439_v20, 5  ;;  %v2203_v1 = vld [vmem:[%s2656_s26 + $0x10] sm:$0xf] }
  0x2c   : > { %v327_v31 = vrot.slane %v326_v24, 4  ;;  %v445_v32 = vrot.slane %v443_v25, 4  ;;  %v449_v33 = vshll.u32 %v299_v16, 16  ;;  %v406_v34 = vshrl.u32 %v294_v21, 16  ;;  %v2204_v13 = vld [vmem:[%s2656_s26 + $0x14] sm:$0x1] }
  0x2d   : > { %527 = vrot.lane.b32.xlu1 %v2155_v27, %s2590_s29  ;;  %v322_v35 = vsel %vm2712_vm5, %v317_v28, %v321_v10  ;;  %v436_v36 = vor.u32 %v435_v29, %v432_v18  ;;  %v409_v38 = vshll.u32 %v294_v21, 16  ;;  %v415_v39 = vshll.u32 %v295_v26, 16  ;;  %v2217_v16 = vld [vmem:[%s2656_s26 + $0x48] sm:$0xf]  ;;  %v2218_v28 = vld [vmem:[%s2656_s26 + $0x4c] sm:$0xf] }
  0x2e   : > { %v332_v41 = vsel %vm2712_vm5, %v327_v31, %v331_v15  ;;  %v446_v42 = vor.u32 %v445_v32, %v441_v30  ;;  %v451_v43 = vrot.slane %v449_v33, 5  ;;  %v408_v44 = vrot.slane %v406_v34, 4  ;;  %v2219_v29 = vld [vmem:[%s2656_s26 + $0x50] sm:$0x1] }
  0x2f   : > { %v2154_v46 = vcombine.low %v322_v35, %v332_v41  ;;  %v437_v47 = vrot.slane %v436_v36, 4  ;;  %v411_v48 = vrot.slane %v409_v38, 5  ;;  %v417_v49 = vrot.slane %v415_v39, 5  ;;  %v2205_v35 = vld [vmem:[%s2656_s26 + $0x18] sm:$0xf] }
  0x30   : > { %v447_v50 = vrot.slane %v446_v42, 4  ;;  %v419_v51 = vshrl.u32 %v295_v26, 16  ;;  %v425_v52 = vshll.u32 %v296_v37, 16  ;;  %v933_v53 = vshrl.u32 %v2214_v40, 16 }
  0x31   : > { %525 = vrot.lane.b32.xlu0 %v2154_v46, %s2590_s29  ;;  %v442_v54 = vsel %vm2712_vm5, %v437_v47, %v441_v30  ;;  %v412_v55 = vor.u32 %v411_v48, %v408_v44  ;;  %v936_v57 = vshll.u32 %v2214_v40, 16  ;;  %v942_v58 = vshll.u32 %v2215_v45, 16  ;;  %v2206_v40 = vld [vmem:[%s2656_s26 + $0x1c] sm:$0xf] }
  0x32   : > { %v452_v60 = vsel %vm2712_vm5, %v447_v50, %v451_v43  ;;  %v421_v61 = vrot.slane %v419_v51, 4  ;;  %v427_v62 = vrot.slane %v425_v52, 5  ;;  %v935_v63 = vrot.slane %v933_v53, 4  ;;  %v2246_v50 = vld [vmem:[%s2656_s26 + $0x3c] sm:$0xe] }
  0x33   : > { %v2159_v2 = vcombine.low %v442_v54, %v452_v60  ;;  %v413_v3 = vrot.slane %v412_v55, 4  ;;  %v938_v4 = vrot.slane %v936_v57, 5  ;;  %v944_v5 = vrot.slane %v942_v58, 5  ;;  %v2247_v55 = vld [vmem:[%s2656_s26 + $0x40] sm:$0xf] }
  0x34   : > { %v422_v6 = vor.u32 %v421_v61, %v417_v49  ;;  %v946_v8 = vshrl.u32 %v2215_v45, 16  ;;  %v952_v9 = vshll.u32 %v2216_v56, 16  ;;  %v837_v10 = vshrl.u32 %v2202_v59, 16  ;;  %v2207_v45 = vld [vmem:[%s2656_s26 + $0x20] sm:$0x1] }
  0x35   : > { %535 = vrot.lane.b32.xlu1 %v2159_v2, %s2590_s29  ;;  %v418_v11 = vsel %vm2712_vm5, %v413_v3, %v417_v49  ;;  %v939_v12 = vor.u32 %v938_v4, %v935_v63  ;;  %v840_v14 = vshll.u32 %v2202_v59, 16  ;;  %v846_v15 = vshll.u32 %v2203_v1, 16 }
  0x36   : > { %v423_v17 = vrot.slane %v422_v6, 4  ;;  %v948_v18 = vrot.slane %v946_v8, 4  ;;  %v954_v19 = vrot.slane %v952_v9, 5  ;;  %v839_v20 = vrot.slane %v837_v10, 4  ;;  %v2234_v6 = vld [vmem:[%s2656_s26 + $0xc] sm:$0xe] }
  0x37   : > { %v940_v21 = vrot.slane %v939_v12, 4  ;;  %v842_v22 = vrot.slane %v840_v14, 5  ;;  %v848_v23 = vrot.slane %v846_v15, 5  ;;  %v850_v24 = vshrl.u32 %v2203_v1, 16  ;;  %v2235_v12 = vld [vmem:[%s2656_s26 + $0x10] sm:$0xf] }
  0x38   : > { %v428_v25 = vsel %vm2712_vm5, %v423_v17, %v427_v62  ;;  %v949_v26 = vor.u32 %v948_v18, %v944_v5  ;;  %v856_v27 = vshll.u32 %v2204_v13, 16  ;;  %v957_v30 = vshrl.u32 %v2217_v16, 16  ;;  %v2236_v17 = vld [vmem:[%s2656_s26 + $0x14] sm:$0x1] }
  0x39   : > { %v2158_v31 = vcombine.low %v418_v11, %v428_v25  ;;  %v945_v32 = vsel %vm2712_vm5, %v940_v21, %v944_v5  ;;  %v843_v33 = vor.u32 %v842_v22, %v839_v20  ;;  %v852_v34 = vrot.slane %v850_v24, 4  ;;  %v2248_v5 = vld [vmem:[%s2656_s26 + $0x44] sm:$0x1]  ;;  %v2249_v22 = vld [vmem:[%s2656_s26 + $0x48] sm:$0xe] }
  0x3a   : > { %v950_v36 = vrot.slane %v949_v26, 4  ;;  %v858_v37 = vrot.slane %v856_v27, 5  ;;  %v959_v38 = vrot.slane %v957_v30, 4  ;;  %v960_v39 = vshll.u32 %v2217_v16, 16  ;;  %v2250_v27 = vld [vmem:[%s2656_s26 + $0x4c] sm:$0xf] }
  0x3b   : > { %533 = vrot.lane.b32.xlu0 %v2158_v31, %s2590_s29  ;;  %v844_v41 = vrot.slane %v843_v33, 4  ;;  %v853_v42 = vor.u32 %v852_v34, %v848_v23  ;;  %v966_v43 = vshll.u32 %v2218_v28, 16  ;;  %v970_v44 = vshrl.u32 %v2218_v28, 16  ;;  %v2251_v28 = vld [vmem:[%s2656_s26 + $0x50] sm:$0x1] }
  0x3c   : > { %v955_v46 = vsel %vm2712_vm5, %v950_v36, %v954_v19  ;;  %v962_v47 = vrot.slane %v960_v39, 5  ;;  %v976_v48 = vshll.u32 %v2219_v29, 16  ;;  %v861_v49 = vshrl.u32 %v2205_v35, 16  ;;  %v2237_v33 = vld [vmem:[%s2656_s26 + $0x18] sm:$0xe] }
  0x3d   : > { %v2230_v51 = vcombine.low %v945_v32, %v955_v46  ;;  %v849_v52 = vsel %vm2712_vm5, %v844_v41, %v848_v23  ;;  %v854_v53 = vrot.slane %v853_v42, 4  ;;  %v968_v54 = vrot.slane %v966_v43, 5  ;;  %v2239_v39 = vld [vmem:[%s2656_s26 + $0x20] sm:$0x1] }
  0x3e   : > { %v963_v56 = vor.u32 %v962_v47, %v959_v38  ;;  %v972_v57 = vrot.slane %v970_v44, 4  ;;  %v978_v58 = vrot.slane %v976_v48, 5  ;;  %v863_v59 = vrot.slane %v861_v49, 4  ;;  %v2238_v38 = vld [vmem:[%s2656_s26 + $0x1c] sm:$0xf] }
  0x3f   : > { %1060 = vrot.lane.b32.xlu1 %v2230_v51, %s2591_s30  ;;  %v859_v60 = vsel %vm2712_vm5, %v854_v53, %v858_v37  ;;  %v864_v61 = vshll.u32 %v2205_v35, 16  ;;  %v870_v62 = vshll.u32 %v2206_v40, 16  ;;  %v874_v63 = vshrl.u32 %v2206_v40, 16  ;;  %v2310_v44 = vld [vmem:[%s2656_s26 + $0x48] sm:$0xf] }
  0x40   : > { %v2226_v1 = vcombine.low %v849_v52, %v859_v60  ;;  %v964_v2 = vrot.slane %v963_v56, 4  ;;  %v973_v3 = vor.u32 %v972_v57, %v968_v54  ;;  %v880_v4 = vshll.u32 %v2207_v45, 16  ;;  %v2311_v45 = vld [vmem:[%s2656_s26 + $0x4c] sm:$0xf] }
  0x41   : > { %v866_v8 = vrot.slane %v864_v61, 5  ;;  %v872_v9 = vrot.slane %v870_v62, 5  ;;  %v876_v10 = vrot.slane %v874_v63, 4  ;;  %v2262_v11 = vrot.slane %v2246_v50, 9 }
  0x42   : > { %1052 = vrot.lane.b32.xlu0 %v2226_v1, %s2591_s30  ;;  %v969_v13 = vsel %vm2712_vm5, %v964_v2, %v968_v54  ;;  %v974_v14 = vrot.slane %v973_v3, 4  ;;  %v882_v15 = vrot.slane %v880_v4, 5  ;;  %v1163_v16 = vrot.slane %v2247_v55, 5  ;;  %v2312_v54 = vld [vmem:[%s2656_s26 + $0x50] sm:$0x1] }
  0x43   : > { %v867_v18 = vor.u32 %v866_v8, %v863_v59  ;;  %v877_v19 = vor.u32 %v876_v10, %v872_v9  ;;  %v1166_v20 = vrot.slane %v2248_v5, 5  ;;  %v2258_v21 = vrot.slane %v2234_v6, 9  ;;  %v2298_v59 = vld [vmem:[%s2656_s26 + $0x18] sm:$0xf]  ;;  %v2299_v1 = vld [vmem:[%s2656_s26 + $0x1c] sm:$0xf] }
  0x44   : > { %v979_v23 = vsel %vm2712_vm5, %v974_v14, %v978_v58  ;;  %v1164_v24 = vsel %vm2658_vm2, %v2262_v11, %v1163_v16  ;;  %v1165_v25 = vrot.slane %v1163_v16, 4  ;;  %v1135_v26 = vrot.slane %v2235_v12, 5  ;;  %v2300_v10 = vld [vmem:[%s2656_s26 + $0x20] sm:$0x1]  ;;  %v2313_v16 = vld [vmem:[%s2656_s26 + $0x54] sm:$0xf] }
  0x45   : > { %v2231_v29 = vcombine.low %v969_v13, %v979_v23  ;;  %v868_v30 = vrot.slane %v867_v18, 4  ;;  %v878_v31 = vrot.slane %v877_v19, 4  ;;  %v1138_v32 = vrot.slane %v2236_v17, 5  ;;  %v2523_v17 = vld [vmem:[%s2656_s26 + $0x48] sm:$0xff]  }
  0x46   : > { %v1167_v34 = vsel %vm2658_vm2, %v1165_v25, %v1166_v20  ;;  %v1136_v35 = vsel %vm2658_vm2, %v2258_v21, %v1135_v26  ;;  %v1137_v36 = vrot.slane %v1135_v26, 4  ;;  %v2263_v37 = vrot.slane %v2249_v22, 9  ;;  %v2314_v22 = vld [vmem:[%s2656_s26 + $0x58] sm:$0xf] }
  0x47   : > { %1062 = vrot.lane.b32.xlu1 %v2231_v29, %s2591_s30  ;;  %v873_v40 = vsel %vm2712_vm5, %v868_v30, %v872_v9  ;;  %v883_v41 = vsel %vm2712_vm5, %v878_v31, %v882_v15  ;;  %v2270_v42 = vcombine.low %v1164_v24, %v1167_v34  ;;  %v1170_v43 = vrot.slane %v2250_v27, 5  ;;  %v2524_v27 = vld [vmem:[%s2656_s26 + $0x18] sm:$0xff]  }
  0x48   : > { %v2227_v46 = vcombine.low %v873_v40, %v883_v41  ;;  %v1139_v47 = vsel %vm2658_vm2, %v1137_v36, %v1138_v32  ;;  %v1173_v48 = vrot.slane %v2251_v28, 5  ;;  %v2259_v49 = vrot.slane %v2237_v33, 9 }
  0x49   : > { %v2266_v50 = vcombine.low %v1136_v35, %v1139_v47  ;;  %v1171_v51 = vsel %vm2658_vm2, %v2263_v37, %v1170_v43  ;;  %v1172_v52 = vrot.slane %v1170_v43, 4  ;;  %v1142_v53 = vrot.slane %v2238_v38, 5  ;;  %v2315_v35 = vld [vmem:[%s2656_s26 + $0x5c] sm:$0x1]  ;;  %v2301_v37 = vld [vmem:[%s2656_s26 + $0x24] sm:$0xf] }
  0x4a   : > { %1054 = vrot.lane.b32.xlu0 %v2227_v46, %s2591_s30  ;;  %v1145_v55 = vrot.slane %v2239_v39, 5  ;;  %v1457_v56 = vshrl.u32 %v2310_v44, 16  ;;  %v1460_v57 = vshll.u32 %v2310_v44, 16  ;;  %v1466_v58 = vshll.u32 %v2311_v45, 16  ;;  %v2525_v38 = vld [vmem:[%s2656_s26 + $0x54] sm:$0xff]  }
  0x4b   : > { %1221 = vrot.lane.b32.xlu1 %v2270_v42, %s2592_s4  ;;  %v1174_v60 = vsel %vm2658_vm2, %v1172_v52, %v1173_v48  ;;  %v1143_v61 = vsel %vm2658_vm2, %v2259_v49, %v1142_v53  ;;  %v1144_v62 = vrot.slane %v1142_v53, 4  ;;  %v1470_v63 = vshrl.u32 %v2311_v45, 16  ;;  %v2302_v43 = vld [vmem:[%s2656_s26 + $0x28] sm:$0xf]  ;;  %v2303_v48 = vld [vmem:[%s2656_s26 + $0x2c] sm:$0x1] }
  0x4c   : > { %v2271_v2 = vcombine.low %v1171_v51, %v1174_v60  ;;  %v1459_v3 = vrot.slane %v1457_v56, 4  ;;  %v1462_v4 = vrot.slane %v1460_v57, 5  ;;  %v1468_v5 = vrot.slane %v1466_v58, 5  ;;  %v2342_v53 = vld [vmem:[%s2656_s26 + $0x48] sm:$0xe] }
  0x4d   : > { %v1146_v6 = vsel %vm2658_vm2, %v1144_v62, %v1145_v55  ;;  %v1472_v8 = vrot.slane %v1470_v63, 4  ;;  %v1476_v9 = vshll.u32 %v2312_v54, 16  ;;  %v1361_v11 = vshrl.u32 %v2298_v59, 16  ;;  %v2526_v54 = vld [vmem:[%s2656_s26 + $0x24] sm:$0xff]  }
  0x4e   : > { %1213 = vrot.lane.b32.xlu0 %v2266_v50, %s2592_s4  ;;  %v2267_v12 = vcombine.low %v1143_v61, %v1146_v6  ;;  %v1463_v13 = vor.u32 %v1462_v4, %v1459_v3  ;;  %v1364_v14 = vshll.u32 %v2298_v59, 16  ;;  %v1370_v15 = vshll.u32 %v2299_v1, 16  ;;  %v2343_v59 = vld [vmem:[%s2656_s26 + $0x4c] sm:$0xf] }
  0x4f   : > { %1223 = vrot.lane.b32.xlu1 %v2271_v2, %s2592_s4  ;;  %v1473_v18 = vor.u32 %v1472_v8, %v1468_v5  ;;  %v1478_v19 = vrot.slane %v1476_v9, 5  ;;  %v1363_v20 = vrot.slane %v1361_v11, 4  ;;  %v1374_v21 = vshrl.u32 %v2299_v1, 16  ;;  %v2344_v1 = vld [vmem:[%s2656_s26 + $0x50] sm:$0x1]  ;;  %v2539_v2 = vld [vmem:[%s3286_s1] sm:$0xff]  }
  0x50   : > { %v1464_v23 = vrot.slane %v1463_v13, 4  ;;  %v1366_v24 = vrot.slane %v1364_v14, 5  ;;  %v1372_v25 = vrot.slane %v1370_v15, 5  ;;  %v1380_v26 = vshll.u32 %v2300_v10, 16  ;;  %v2330_v8 = vld [vmem:[%s2656_s26 + $0x18] sm:$0xe]  ;;  %2431 = vmatprep.subr.bf16.mxu0 %v2539_v2  ;;  %2457 = vmatprep.subr.bf16.mxu1 %v2539_v2 }
  0x51   : > { %v1474_v28 = vrot.slane %v1473_v18, 4  ;;  %v1376_v29 = vrot.slane %v1374_v21, 4  ;;  %v1481_v30 = vshrl.u32 %v2313_v16, 16  ;;  %v1484_v31 = vshll.u32 %v2313_v16, 16  ;;  %v2331_v9 = vld [vmem:[%s2656_s26 + $0x1c] sm:$0xf]  ;;  %2432 = vmatpush3.bf16.msra.mxu0 %v2539_v2  ;;  %2462 = vmatpush3.bf16.msra.mxu1 %v2539_v2 }
  0x52   : > { %1215 = vrot.lane.b32.xlu0 %v2267_v12, %s2592_s4  ;;  %v1469_v32 = vsel %vm2712_vm5, %v1464_v23, %v1468_v5  ;;  %v1367_v33 = vor.u32 %v1366_v24, %v1363_v20  ;;  %v1382_v34 = vrot.slane %v1380_v26, 5  ;;  %v1490_v36 = vshll.u32 %v2314_v22, 16  ;;  %v2332_v18 = vld [vmem:[%s2656_s26 + $0x20] sm:$0x1]  ;;  %v300_v23 = vld [vmem:[%s2656_s26 + $0x48] sm:$0xf] }
  0x53   : > { %1311 = vrot.lane.b32.xlu1 %v2523_v17, %s2593_s5  ;;  %v1479_v39 = vsel %vm2712_vm5, %v1474_v28, %v1478_v19  ;;  %v1377_v40 = vor.u32 %v1376_v29, %v1372_v25  ;;  %v1483_v41 = vrot.slane %v1481_v30, 4  ;;  %v1486_v42 = vrot.slane %v1484_v31, 5  ;;  %v301_v28 = vld [vmem:[%s2656_s26 + $0x4c] sm:$0xf] }
  0x54   : > { %v2326_v44 = vcombine.low %v1469_v32, %v1479_v39  ;;  %v1368_v45 = vrot.slane %v1367_v33, 4  ;;  %v1492_v46 = vrot.slane %v1490_v36, 5  ;;  %v1494_v47 = vshrl.u32 %v2314_v22, 16  ;;  %v302_v33 = vld [vmem:[%s2656_s26 + $0x50] sm:$0x1] }
  0x55   : > { %v1378_v49 = vrot.slane %v1377_v40, 4  ;;  %v1487_v50 = vor.u32 %v1486_v42, %v1483_v41  ;;  %v1500_v51 = vshll.u32 %v2315_v35, 16  ;;  %v1385_v52 = vshrl.u32 %v2301_v37, 16  ;;  %v288_v39 = vld [vmem:[%s2656_s26 + $0x18] sm:$0xf] }
  0x56   : > { %1303 = vrot.lane.b32.xlu0 %v2524_v27, %s2593_s5  ;;  %v1373_v55 = vsel %vm2712_vm5, %v1368_v45, %v1372_v25  ;;  %v1496_v56 = vrot.slane %v1494_v47, 4  ;;  %v1388_v57 = vshll.u32 %v2301_v37, 16  ;;  %v1394_v58 = vshll.u32 %v2302_v43, 16  ;;  %v289_v40 = vld [vmem:[%s2656_s26 + $0x1c] sm:$0xf] }
  0x57   : > { %1313 = vrot.lane.b32.xlu1 %v2525_v38, %s2593_s5  ;;  %v1383_v60 = vsel %vm2712_vm5, %v1378_v49, %v1382_v34  ;;  %v1488_v61 = vrot.slane %v1487_v50, 4  ;;  %v1502_v62 = vrot.slane %v1500_v51, 5  ;;  %v1387_v63 = vrot.slane %v1385_v52, 4  ;;  %v2540_v34 = vld [vmem:[%s3286_s1 + $0x8] sm:$0xff]   ;;  %v290_v45 = vld [vmem:[%s2656_s26 + $0x20] sm:$0x1] }
  0x58   : > { %v2322_v3 = vcombine.low %v1373_v55, %v1383_v60  ;;  %v1497_v4 = vor.u32 %v1496_v56, %v1492_v46  ;;  %v1390_v5 = vrot.slane %v1388_v57, 5  ;;  %v2837_v6 = vrot.slane %v1394_v58, 5  ;;  %2433 = vmatprep.subr.bf16.mxu0 %v2540_v34  ;;  %v2345_v50 = vld [vmem:[%s2656_s26 + $0x54] sm:$0xe]  ;;  %2458 = vmatprep.subr.bf16.mxu1 %v2540_v34  ;;  %v2346_v55 = vld [vmem:[%s2656_s26 + $0x58] sm:$0xf] }
  0x59   : > { %v1493_v10 = vsel %vm2712_vm5, %v1488_v61, %v1492_v46  ;;  %v1398_v11 = vshrl.u32 %v2302_v43, 16  ;;  %v1404_v12 = vshll.u32 %v2303_v48, 16  ;;  %v2358_v13 = vrot.slane %v2342_v53, 9  ;;  %2434 = vmatpush3.bf16.msra.mxu0 %v2540_v34  ;;  %v2347_v56 = vld [vmem:[%s2656_s26 + $0x5c] sm:$0x1]  ;;  %2463 = vmatpush3.bf16.msra.mxu1 %v2540_v34 }
  0x5a   : > { %1305 = vrot.lane.b32.xlu0 %v2526_v54, %s2593_s5  ;;  %v1498_v14 = vrot.slane %v1497_v4, 4  ;;  %v1391_v15 = vor.u32 %v1390_v5, %v1387_v63  ;;  %v1687_v16 = vrot.slane %v2343_v59, 5  ;;  %v1690_v17 = vrot.slane %v2344_v1, 5  ;;  %v2333_v61 = vld [vmem:[%s2656_s26 + $0x24] sm:$0xe] }
  0x5b   : > { %1584 = vrot.lane.b32.xlu1 %v2326_v44, %s2594_s8  ;;  %v1400_v19 = vrot.slane %v1398_v11, 4  ;;  %v1406_v20 = vrot.slane %v1404_v12, 5  ;;  %v2354_v21 = vrot.slane %v2330_v8, 9  ;;  %v1659_v22 = vrot.slane %v2331_v9, 5  ;;  %v2334_v4 = vld [vmem:[%s2656_s26 + $0x28] sm:$0xf] }
  0x5c   : > { %v1503_v24 = vsel %vm2712_vm5, %v1498_v14, %v1502_v62  ;;  %v1392_v25 = vrot.slane %v1391_v15, 4  ;;  %v1688_v26 = vsel %vm2658_vm2, %v2358_v13, %v1687_v16  ;;  %v1689_v27 = vrot.slane %v1687_v16, 4  ;;  %v2543_v62 = vld [vmem:[%s3286_s1 + $0x10] sm:$0xff]  }
  0x5d   : > { %v2327_v29 = vcombine.low %v1493_v10, %v1503_v24  ;;  %v1401_v30 = vor.u32 %v1400_v19, %v2837_v6  ;;  %v2855_v31 = vsel %vm2658_vm2, %v2354_v21, %v1659_v22  ;;  %v1661_v32 = vrot.slane %v1659_v22, 4  ;;  %v2335_v10 = vld [vmem:[%s2656_s26 + $0x2c] sm:$0x1]  ;;  %2435 = vmatprep.subr.bf16.mxu0 %v2543_v62  ;;  %2459 = vmatprep.subr.bf16.mxu1 %v2543_v62  ;;  %v2544_v24 = vld [vmem:[%s3286_s1 + $0x18] sm:$0xff]  }
  0x5e   : > { %1576 = vrot.lane.b32.xlu0 %v2322_v3, %s2594_s8  ;;  %v1397_v35 = vsel %vm2712_vm5, %v1392_v25, %v2837_v6  ;;  %v1691_v36 = vsel %vm2658_vm2, %v1689_v27, %v1690_v17  ;;  %v1662_v37 = vrot.slane %v2332_v18, 5  ;;  %v454_v38 = vshrl.u32 %v300_v23, 16  ;;  %2436 = vmatpush3.bf16.msra.mxu0 %v2543_v62 }
  0x5f   : > { %1586 = vrot.lane.b32.xlu1 %v2327_v29, %s2594_s8  ;;  %v1402_v41 = vrot.slane %v1401_v30, 4  ;;  %v2366_v42 = vcombine.low %v1688_v26, %v1691_v36  ;;  %v457_v43 = vshll.u32 %v300_v23, 16  ;;  %v463_v44 = vshll.u32 %v301_v28, 16  ;;  %2464 = vmatpush3.bf16.msra.mxu1 %v2543_v62  ;;  %v303_v23 = vld [vmem:[%s2656_s26 + $0x54] sm:$0xf] }
  0x60   : > { %v1663_v46 = vsel %vm2658_vm2, %v1661_v32, %v1662_v37  ;;  %v456_v47 = vrot.slane %v454_v38, 4  ;;  %v467_v48 = vshrl.u32 %v301_v28, 16  ;;  %v473_v49 = vshll.u32 %v302_v33, 16  ;;  %v304_v33 = vld [vmem:[%s2656_s26 + $0x58] sm:$0xf]  ;;  %2437 = vmatprep.subr.bf16.mxu0 %v2544_v24  ;;  %2460 = vmatprep.subr.bf16.mxu1 %v2544_v24 }
  0x61   : > { %v1407_v51 = vsel %vm2712_vm5, %v1402_v41, %v1406_v20  ;;  %v2362_v52 = vcombine.low %v2855_v31, %v1663_v46  ;;  %v459_v53 = vrot.slane %v457_v43, 5  ;;  %v465_v54 = vrot.slane %v463_v44, 5  ;;  %v305_v37 = vld [vmem:[%s2656_s26 + $0x5c] sm:$0x1]  ;;  %v291_v43 = vld [vmem:[%s2656_s26 + $0x24] sm:$0xf] }
  0x62   : > { %v2323_v57 = vcombine.low %v1397_v35, %v1407_v51  ;;  %v469_v58 = vrot.slane %v467_v48, 4  ;;  %v475_v59 = vrot.slane %v473_v49, 5  ;;  %v358_v60 = vshrl.u32 %v288_v39, 16  ;;  %2438 = vmatpush3.bf16.msra.mxu0 %v2544_v24  ;;  %v292_v44 = vld [vmem:[%s2656_s26 + $0x28] sm:$0xf] }
  0x63   : > { %1745 = vrot.lane.b32.xlu1 %v2366_v42, %s2595_s20  ;;  %v460_v63 = vor.u32 %v459_v53, %v456_v47  ;;  %v361_v1 = vshll.u32 %v288_v39, 16  ;;  %v367_v2 = vshll.u32 %v289_v40, 16  ;;  %v371_v3 = vshrl.u32 %v289_v40, 16  ;;  %2465 = vmatpush3.bf16.msra.mxu1 %v2544_v24  ;;  %v293_v49 = vld [vmem:[%s2656_s26 + $0x2c] sm:$0x1] }
  0x64   : > { %1578 = vrot.lane.b32.xlu0 %v2323_v57, %s2594_s8  ;;  %v470_v5 = vor.u32 %v469_v58, %v465_v54  ;;  %v360_v6 = vrot.slane %v358_v60, 4  ;;  %v377_v8 = vshll.u32 %v290_v45, 16  ;;  %v2359_v9 = vrot.slane %v2345_v50, 9  ;;  %v576_v50 = vld [vmem:[%s2656_s26 + $0x48] sm:$0xe] }
  0x65   : > { %v461_v11 = vrot.slane %v460_v63, 4  ;;  %v363_v12 = vrot.slane %v361_v1, 5  ;;  %v369_v13 = vrot.slane %v367_v2, 5  ;;  %v373_v14 = vrot.slane %v371_v3, 4  ;;  %v578_v60 = vld [vmem:[%s2656_s26 + $0x50] sm:$0x1] }
  0x66   : > { %v471_v15 = vrot.slane %v470_v5, 4  ;;  %v379_v16 = vrot.slane %v377_v8, 5  ;;  %v1694_v17 = vrot.slane %v2346_v55, 5  ;;  %v1697_v18 = vrot.slane %v2347_v56, 5  ;;  %v577_v55 = vld [vmem:[%s2656_s26 + $0x4c] sm:$0xf] }
  0x67   : > { %v466_v19 = vsel %vm2712_vm5, %v461_v11, %v465_v54  ;;  %v364_v20 = vor.u32 %v363_v12, %v360_v6  ;;  %v374_v21 = vor.u32 %v373_v14, %v369_v13  ;;  %v2355_v22 = vrot.slane %v2333_v61, 9  ;;  %v564_v2 = vld [vmem:[%s2656_s26 + $0x18] sm:$0xe]  ;;  %v565_v8 = vld [vmem:[%s2656_s26 + $0x1c] sm:$0xf] }
  0x68   : > { %1737 = vrot.lane.b32.xlu0 %v2362_v52, %s2595_s20  ;;  %v476_v25 = vsel %vm2712_vm5, %v471_v15, %v475_v59  ;;  %v1695_v26 = vsel %vm2658_vm2, %v2359_v9, %v1694_v17  ;;  %v1696_v27 = vrot.slane %v1694_v17, 4  ;;  %v1666_v28 = vrot.slane %v2334_v4, 5  ;;  %v581_v24 = vld [vmem:[%s2656_s26 + $0x5c] sm:$0x1] }
  0x69   : > { %v2160_v29 = vcombine.low %v466_v19, %v476_v25  ;;  %v365_v30 = vrot.slane %v364_v20, 4  ;;  %v375_v31 = vrot.slane %v374_v21, 4  ;;  %v1669_v32 = vrot.slane %v2335_v10, 5 }
  0x6a   : > { %v1698_v34 = vsel %vm2658_vm2, %v1696_v27, %v1697_v18  ;;  %v1667_v35 = vsel %vm2658_vm2, %v2355_v22, %v1666_v28  ;;  %v1668_v36 = vrot.slane %v1666_v28, 4  ;;  %v478_v38 = vshrl.u32 %v303_v23, 16  ;;  %v579_v18 = vld [vmem:[%s2656_s26 + $0x54] sm:$0xe] }
  0x6b   : > { %537 = vrot.lane.b32.xlu1 %v2160_v29, %s2590_s29  ;;  %v370_v39 = vsel %vm2712_vm5, %v365_v30, %v369_v13  ;;  %v380_v40 = vsel %vm2712_vm5, %v375_v31, %v379_v16  ;;  %v2367_v41 = vcombine.low %v1695_v26, %v1698_v34  ;;  %v481_v42 = vshll.u32 %v303_v23, 16  ;;  %v566_v13 = vld [vmem:[%s2656_s26 + $0x20] sm:$0x1]  ;;  %v580_v23 = vld [vmem:[%s2656_s26 + $0x58] sm:$0xf] }
  0x6c   : > { %v2156_v45 = vcombine.low %v370_v39, %v380_v40  ;;  %v1670_v46 = vsel %vm2658_vm2, %v1668_v36, %v1669_v32  ;;  %v480_v47 = vrot.slane %v478_v38, 4  ;;  %v487_v48 = vshll.u32 %v304_v33, 16  ;;  %v567_v29 = vld [vmem:[%s2656_s26 + $0x24] sm:$0xe]  ;;  %v568_v34 = vld [vmem:[%s2656_s26 + $0x28] sm:$0xf] }
  0x6d   : > { %v2363_v51 = vcombine.low %v1667_v35, %v1670_v46  ;;  %v483_v52 = vrot.slane %v481_v42, 5  ;;  %v491_v53 = vshrl.u32 %v304_v33, 16  ;;  %v497_v54 = vshll.u32 %v305_v37, 16  ;;  %v569_v39 = vld [vmem:[%s2656_s26 + $0x2c] sm:$0x1] }
  0x6e   : > { %529 = vrot.lane.b32.xlu0 %v2156_v45, %s2590_s29  ;;  %v489_v56 = vrot.slane %v487_v48, 5  ;;  %v382_v57 = vshrl.u32 %v291_v43, 16  ;;  %v385_v58 = vshll.u32 %v291_v43, 16  ;;  %v391_v59 = vshll.u32 %v292_v44, 16  ;;  %v2220_v40 = vld [vmem:[%s2656_s26 + $0x54] sm:$0xf] }
  0x6f   : > { %1747 = vrot.lane.b32.xlu1 %v2367_v41, %s2595_s20  ;;  %v484_v61 = vor.u32 %v483_v52, %v480_v47  ;;  %v493_v62 = vrot.slane %v491_v53, 4  ;;  %v499_v63 = vrot.slane %v497_v54, 5  ;;  %v395_v1 = vshrl.u32 %v292_v44, 16  ;;  %v2221_v41 = vld [vmem:[%s2656_s26 + $0x58] sm:$0xf] }
  0x70   : > { %v384_v3 = vrot.slane %v382_v57, 4  ;;  %v387_v4 = vrot.slane %v385_v58, 5  ;;  %v393_v5 = vrot.slane %v391_v59, 5  ;;  %v401_v6 = vshll.u32 %v293_v49, 16  ;;  %v2222_v46 = vld [vmem:[%s2656_s26 + $0x5c] sm:$0x1] }
  0x71   : > { %v485_v9 = vrot.slane %v484_v61, 4  ;;  %v494_v10 = vor.u32 %v493_v62, %v489_v56  ;;  %v397_v11 = vrot.slane %v395_v1, 4  ;;  %v2168_v12 = vrot.slane %v576_v50, 9 }
  0x72   : > { %1739 = vrot.lane.b32.xlu0 %v2363_v51, %s2595_s20  ;;  %v388_v14 = vor.u32 %v387_v4, %v384_v3  ;;  %v403_v15 = vrot.slane %v401_v6, 5  ;;  %v653_v16 = vrot.slane %v577_v55, 5  ;;  %v656_v17 = vrot.slane %v578_v60, 5  ;;  %v2208_v55 = vld [vmem:[%s2656_s26 + $0x24] sm:$0xf] }
  0x73   : > { %v490_v19 = vsel %vm2712_vm5, %v485_v9, %v489_v56  ;;  %v495_v20 = vrot.slane %v494_v10, 4  ;;  %v398_v21 = vor.u32 %v397_v11, %v393_v5  ;;  %v2164_v22 = vrot.slane %v564_v2, 9  ;;  %v2209_v56 = vld [vmem:[%s2656_s26 + $0x28] sm:$0xf]  ;;  %v2210_v6 = vld [vmem:[%s2656_s26 + $0x2c] sm:$0x1] }
  0x74   : > { %v389_v25 = vrot.slane %v388_v14, 4  ;;  %v654_v26 = vsel %vm2658_vm2, %v2168_v12, %v653_v16  ;;  %v655_v27 = vrot.slane %v653_v16, 4  ;;  %v625_v28 = vrot.slane %v565_v8, 5  ;;  %v2223_v12 = vld [vmem:[%s2656_s26 + $0x60] sm:$0xf] }
  0x75   : > { %v500_v30 = vsel %vm2712_vm5, %v495_v20, %v499_v63  ;;  %v399_v31 = vrot.slane %v398_v21, 4  ;;  %v628_v32 = vrot.slane %v566_v13, 5  ;;  %v2169_v33 = vrot.slane %v579_v18, 9  ;;  %v2224_v21 = vld [vmem:[%s2656_s26 + $0x64] sm:$0xf] }
  0x76   : > { %v2161_v35 = vcombine.low %v490_v19, %v500_v30  ;;  %v394_v36 = vsel %vm2712_vm5, %v389_v25, %v393_v5  ;;  %v657_v37 = vsel %vm2658_vm2, %v655_v27, %v656_v17  ;;  %v626_v38 = vsel %vm2658_vm2, %v2164_v22, %v625_v28  ;;  %v2527_v22 = vld [vmem:[%s2656_s26 + $0x54] sm:$0xff]  }
  0x77   : > { %v404_v42 = vsel %vm2712_vm5, %v399_v31, %v403_v15  ;;  %v2176_v43 = vcombine.low %v654_v26, %v657_v37  ;;  %v627_v44 = vrot.slane %v625_v28, 4  ;;  %v660_v45 = vrot.slane %v580_v23, 5  ;;  %v2225_v31 = vld [vmem:[%s2656_s26 + $0x68] sm:$0x1]  ;;  %v2211_v37 = vld [vmem:[%s2656_s26 + $0x30] sm:$0xf] }
  0x78   : > { %539 = vrot.lane.b32.xlu1 %v2161_v35, %s2590_s29  ;;  %v2157_v47 = vcombine.low %v394_v36, %v404_v42  ;;  %v663_v48 = vrot.slane %v581_v24, 5  ;;  %v2165_v49 = vrot.slane %v567_v29, 9  ;;  %v632_v50 = vrot.slane %v568_v34, 5  ;;  %v2212_v42 = vld [vmem:[%s2656_s26 + $0x34] sm:$0xf] }
  0x79   : > { %v629_v51 = vsel %vm2658_vm2, %v627_v44, %v628_v32  ;;  %v661_v52 = vsel %vm2658_vm2, %v2169_v33, %v660_v45  ;;  %v662_v53 = vrot.slane %v660_v45, 4  ;;  %v635_v54 = vrot.slane %v569_v39, 5  ;;  %v2528_v32 = vld [vmem:[%s2656_s26 + $0x24] sm:$0xff]   ;;  %v2530_v44 = vld [vmem:[%s2656_s26 + $0x30] sm:$0xff]  }
  0x7a   : > { %531 = vrot.lane.b32.xlu0 %v2157_v47, %s2590_s29  ;;  %v2172_v57 = vcombine.low %v626_v38, %v629_v51  ;;  %v633_v58 = vsel %vm2658_vm2, %v2165_v49, %v632_v50  ;;  %v634_v59 = vrot.slane %v632_v50, 4  ;;  %v981_v60 = vshrl.u32 %v2220_v40, 16 }
  0x7b   : > { %v664_v61 = vsel %vm2658_vm2, %v662_v53, %v663_v48  ;;  %v984_v62 = vshll.u32 %v2220_v40, 16  ;;  %v990_v63 = vshll.u32 %v2221_v41, 16  ;;  %v994_v1 = vshrl.u32 %v2221_v41, 16 }
  0x7c   : > { %701 = vrot.lane.b32.xlu1 %v2176_v43, %s2589_s28  ;;  %v2177_v2 = vcombine.low %v661_v52, %v664_v61  ;;  %v636_v3 = vsel %vm2658_vm2, %v634_v59, %v635_v54  ;;  %v983_v4 = vrot.slane %v981_v60, 4  ;;  %v1000_v5 = vshll.u32 %v2222_v46, 16  ;;  %v2529_v43 = vld [vmem:[%s2656_s26 + $0x60] sm:$0xff]   ;;  %v2213_v52 = vld [vmem:[%s2656_s26 + $0x38] sm:$0x1] }
  0x7d   : > { %v2173_v8 = vcombine.low %v633_v58, %v636_v3  ;;  %v986_v9 = vrot.slane %v984_v62, 5  ;;  %v992_v10 = vrot.slane %v990_v63, 5  ;;  %v996_v11 = vrot.slane %v994_v1, 4  ;;  %v2252_v58 = vld [vmem:[%s2656_s26 + $0x54] sm:$0xe] }
  0x7e   : > { %693 = vrot.lane.b32.xlu0 %v2172_v57, %s2589_s28  ;;  %v1002_v13 = vrot.slane %v1000_v5, 5  ;;  %v885_v14 = vshrl.u32 %v2208_v55, 16  ;;  %v888_v15 = vshll.u32 %v2208_v55, 16  ;;  %v894_v16 = vshll.u32 %v2209_v56, 16  ;;  %v2253_v59 = vld [vmem:[%s2656_s26 + $0x58] sm:$0xf] }
  0x7f   : > { %v987_v17 = vor.u32 %v986_v9, %v983_v4  ;;  %v997_v18 = vor.u32 %v996_v11, %v992_v10  ;;  %v898_v19 = vshrl.u32 %v2209_v56, 16  ;;  %v904_v20 = vshll.u32 %v2210_v6, 16  ;;  %v2254_v1 = vld [vmem:[%s2656_s26 + $0x5c] sm:$0x1]  ;;  %v2242_v9 = vld [vmem:[%s2656_s26 + $0x2c] sm:$0x1] }
  0x80   : > { %703 = vrot.lane.b32.xlu1 %v2177_v2, %s2589_s28  ;;  %v887_v23 = vrot.slane %v885_v14, 4  ;;  %v890_v24 = vrot.slane %v888_v15, 5  ;;  %v896_v25 = vrot.slane %v894_v16, 5  ;;  %v1005_v26 = vshrl.u32 %v2223_v12, 16  ;;  %v2240_v2 = vld [vmem:[%s2656_s26 + $0x24] sm:$0xe] }
  0x81   : > { %v988_v27 = vrot.slane %v987_v17, 4  ;;  %v998_v28 = vrot.slane %v997_v18, 4  ;;  %v900_v29 = vrot.slane %v898_v19, 4  ;;  %v906_v30 = vrot.slane %v904_v20, 5  ;;  %v2255_v14 = vld [vmem:[%s2656_s26 + $0x60] sm:$0xe] }
  0x82   : > { %695 = vrot.lane.b32.xlu0 %v2173_v8, %s2589_s28  ;;  %v891_v33 = vor.u32 %v890_v24, %v887_v23  ;;  %v1007_v34 = vrot.slane %v1005_v26, 4  ;;  %v1008_v35 = vshll.u32 %v2223_v12, 16  ;;  %v1014_v36 = vshll.u32 %v2224_v21, 16  ;;  %v2241_v8 = vld [vmem:[%s2656_s26 + $0x28] sm:$0xf] }
  0x83   : > { %v993_v38 = vsel %vm2712_vm5, %v988_v27, %v992_v10  ;;  %v1003_v39 = vsel %vm2712_vm5, %v998_v28, %v1002_v13  ;;  %v901_v40 = vor.u32 %v900_v29, %v896_v25  ;;  %v1018_v41 = vshrl.u32 %v2224_v21, 16  ;;  %v2256_v19 = vld [vmem:[%s2656_s26 + $0x64] sm:$0xf]  ;;  %v2257_v20 = vld [vmem:[%s2656_s26 + $0x68] sm:$0x1] }
  0x84   : > { %791 = vrot.lane.b32.xlu1 %v2527_v22, %s2588_s27  ;;  %v2232_v45 = vcombine.low %v993_v38, %v1003_v39  ;;  %v892_v46 = vrot.slane %v891_v33, 4  ;;  %v1010_v47 = vrot.slane %v1008_v35, 5  ;;  %v1016_v48 = vrot.slane %v1014_v36, 5 }
  0x85   : > { %v902_v49 = vrot.slane %v901_v40, 4  ;;  %v1020_v50 = vrot.slane %v1018_v41, 4  ;;  %v1024_v51 = vshll.u32 %v2225_v31, 16  ;;  %v909_v53 = vshrl.u32 %v2211_v37, 16  ;;  %v2244_v31 = vld [vmem:[%s2656_s26 + $0x34] sm:$0xf] }
  0x86   : > { %783 = vrot.lane.b32.xlu0 %v2528_v32, %s2588_s27  ;;  %v897_v54 = vsel %vm2712_vm5, %v892_v46, %v896_v25  ;;  %v1011_v55 = vor.u32 %v1010_v47, %v1007_v34  ;;  %v912_v56 = vshll.u32 %v2211_v37, 16  ;;  %v918_v57 = vshll.u32 %v2212_v42, 16  ;;  %v2243_v25 = vld [vmem:[%s2656_s26 + $0x30] sm:$0xe]  ;;  %v2245_v32 = vld [vmem:[%s2656_s26 + $0x38] sm:$0x1] }
  0x87   : > { %v907_v60 = vsel %vm2712_vm5, %v902_v49, %v906_v30  ;;  %v1021_v61 = vor.u32 %v1020_v50, %v1016_v48  ;;  %v1026_v62 = vrot.slane %v1024_v51, 5  ;;  %v911_v63 = vrot.slane %v909_v53, 4  ;;  %v2316_v37 = vld [vmem:[%s2656_s26 + $0x60] sm:$0xf]  ;;  %v2317_v46 = vld [vmem:[%s2656_s26 + $0x64] sm:$0xf] }
  0x88   : > { %793 = vrot.lane.b32.xlu1 %v2529_v43, %s2588_s27  ;;  %v2228_v3 = vcombine.low %v897_v54, %v907_v60  ;;  %v1012_v4 = vrot.slane %v1011_v55, 4  ;;  %v914_v5 = vrot.slane %v912_v56, 5  ;;  %v920_v6 = vrot.slane %v918_v57, 5  ;;  %v2318_v47 = vld [vmem:[%s2656_s26 + $0x68] sm:$0x1] }
  0x89   : > { %v1022_v10 = vrot.slane %v1021_v61, 4  ;;  %v922_v11 = vshrl.u32 %v2212_v42, 16  ;;  %v928_v12 = vshll.u32 %v2213_v52, 16  ;;  %v2264_v13 = vrot.slane %v2252_v58, 9  ;;  %v2305_v54 = vld [vmem:[%s2656_s26 + $0x34] sm:$0xf] }
  0x8a   : > { %785 = vrot.lane.b32.xlu0 %v2530_v44, %s2588_s27  ;;  %v1017_v15 = vsel %vm2712_vm5, %v1012_v4, %v1016_v48  ;;  %v915_v16 = vor.u32 %v914_v5, %v911_v63  ;;  %v1177_v17 = vrot.slane %v2253_v59, 5  ;;  %v1180_v18 = vrot.slane %v2254_v1, 5  ;;  %v2304_v48 = vld [vmem:[%s2656_s26 + $0x30] sm:$0xf]  ;;  %v2306_v5 = vld [vmem:[%s2656_s26 + $0x38] sm:$0x1] }
  0x8b   : > { %v1027_v21 = vsel %vm2712_vm5, %v1022_v10, %v1026_v62  ;;  %v924_v22 = vrot.slane %v922_v11, 4  ;;  %v930_v23 = vrot.slane %v928_v12, 5  ;;  %v2260_v24 = vrot.slane %v2240_v2, 9  ;;  %v3001_v26 = vpop.permute.xlu1 %787  ;;  %v3019_v49 = vpop.permute.xlu0 %779  ;;  %v2320_v12 = vld [vmem:[%s2656_s26 + $0x70] sm:$0xf] }
  0x8c   : > { %1064 = vrot.lane.b32.xlu1 %v2232_v45, %s2591_s30  ;;  %v2233_v27 = vcombine.low %v1017_v15, %v1027_v21  ;;  %v916_v28 = vrot.slane %v915_v16, 4  ;;  %v1178_v29 = vsel %vm2658_vm2, %v2264_v13, %v1177_v17  ;;  %v1179_v30 = vrot.slane %v1177_v17, 4 }
  0x8d   : > { %v925_v33 = vor.u32 %v924_v22, %v920_v6  ;;  %v1149_v34 = vrot.slane %v2241_v8, 5  ;;  %v1152_v35 = vrot.slane %v2242_v9, 5  ;;  %v2265_v36 = vrot.slane %v2255_v14, 9 }
  0x8e   : > { %1056 = vrot.lane.b32.xlu0 %v2228_v3, %s2591_s30  ;;  %v921_v38 = vsel %vm2712_vm5, %v916_v28, %v920_v6  ;;  %v1181_v39 = vsel %vm2658_vm2, %v1179_v30, %v1180_v18  ;;  %v1184_v40 = vrot.slane %v2256_v19, 5  ;;  %v1187_v41 = vrot.slane %v2257_v20, 5  ;;  %v2319_v6 = vld [vmem:[%s2656_s26 + $0x6c] sm:$0xf]  ;;  %v2531_v28 = vld [vmem:[%s2656_s26 + $0x60] sm:$0xff]  }
  0x8f   : > { %v926_v42 = vrot.slane %v925_v33, 4  ;;  %v2272_v43 = vcombine.low %v1178_v29, %v1181_v39  ;;  %v1150_v44 = vsel %vm2658_vm2, %v2260_v24, %v1149_v34  ;;  %v1151_v45 = vrot.slane %v1149_v34, 4  ;;  %v3029_v59 = vpop.permute.xlu1 %789  ;;  %v3042_v17 = vpop.permute.xlu0 %781 }
  0x90   : > { %1066 = vrot.lane.b32.xlu1 %v2233_v27, %s2591_s30  ;;  %v1185_v50 = vsel %vm2658_vm2, %v2265_v36, %v1184_v40  ;;  %v1186_v51 = vrot.slane %v1184_v40, 4  ;;  %v2261_v52 = vrot.slane %v2243_v25, 9  ;;  %v1156_v53 = vrot.slane %v2244_v31, 5 }
  0x91   : > { %v931_v55 = vsel %vm2712_vm5, %v926_v42, %v930_v23  ;;  %v1153_v56 = vsel %vm2658_vm2, %v1151_v45, %v1152_v35  ;;  %v1159_v57 = vrot.slane %v2245_v32, 5  ;;  %v1505_v58 = vshrl.u32 %v2316_v37, 16  ;;  %v2321_v35 = vld [vmem:[%s2656_s26 + $0x74] sm:$0x1]  ;;  %v2307_v42 = vld [vmem:[%s2656_s26 + $0x3c] sm:$0xf] }
  0x92   : > { %v2229_v60 = vcombine.low %v921_v38, %v931_v55  ;;  %v2268_v61 = vcombine.low %v1150_v44, %v1153_v56  ;;  %v1188_v62 = vsel %vm2658_vm2, %v1186_v51, %v1187_v41  ;;  %v1157_v63 = vsel %vm2658_vm2, %v2261_v52, %v1156_v53  ;;  %v2308_v55 = vld [vmem:[%s2656_s26 + $0x40] sm:$0xf] }
  0x93   : > { %v2273_v1 = vcombine.low %v1185_v50, %v1188_v62  ;;  %v1158_v2 = vrot.slane %v1156_v53, 4  ;;  %v1507_v3 = vrot.slane %v1505_v58, 4  ;;  %v1508_v4 = vshll.u32 %v2316_v37, 16  ;;  %v3044_v27 = vpop.permute.xlu1 %697  ;;  %v2533_v50 = vld [vmem:[%s2656_s26 + $0x6c] sm:$0xff]  }
  0x94   : > { %1058 = vrot.lane.b32.xlu0 %v2229_v60, %s2591_s30  ;;  %1225 = vrot.lane.b32.xlu1 %v2272_v43, %s2592_s4  ;;  %v1514_v8 = vshll.u32 %v2317_v46, 16  ;;  %v1518_v9 = vshrl.u32 %v2317_v46, 16  ;;  %v1524_v10 = vshll.u32 %v2318_v47, 16  ;;  %v1409_v11 = vshrl.u32 %v2304_v48, 16  ;;  %v2532_v43 = vld [vmem:[%s2656_s26 + $0x30] sm:$0xff]  }
  0x95   : > { %v1160_v13 = vsel %vm2658_vm2, %v1158_v2, %v1159_v57  ;;  %v1510_v14 = vrot.slane %v1508_v4, 5  ;;  %v1412_v15 = vshll.u32 %v2304_v48, 16  ;;  %v1418_v16 = vshll.u32 %v2305_v54, 16  ;;  %v3054_v48 = vpop.permute.xlu0 %689  ;;  %v2309_v60 = vld [vmem:[%s2656_s26 + $0x44] sm:$0x1] }
  0x96   : > { %v2269_v18 = vcombine.low %v1157_v63, %v1160_v13  ;;  %v1516_v19 = vrot.slane %v1514_v8, 5  ;;  %v1520_v20 = vrot.slane %v1518_v9, 4  ;;  %v1526_v21 = vrot.slane %v1524_v10, 5  ;;  %v2534_v63 = vld [vmem:[%s2656_s26 + $0x3c] sm:$0xff]  }
  0x97   : > { %v1511_v22 = vor.u32 %v1510_v14, %v1507_v3  ;;  %v1411_v23 = vrot.slane %v1409_v11, 4  ;;  %v1414_v24 = vrot.slane %v1412_v15, 5  ;;  %v1420_v25 = vrot.slane %v1418_v16, 5  ;;  %v3065_v62 = vpop.permute.xlu1 %699  ;;  %v2349_v11 = vld [vmem:[%s2656_s26 + $0x64] sm:$0xf] }
  0x98   : > { %1217 = vrot.lane.b32.xlu0 %v2268_v61, %s2592_s4  ;;  %1227 = vrot.lane.b32.xlu1 %v2273_v1, %s2592_s4  ;;  %v1521_v29 = vor.u32 %v1520_v20, %v1516_v19  ;;  %v1422_v30 = vshrl.u32 %v2305_v54, 16  ;;  %v1428_v31 = vshll.u32 %v2306_v5, 16  ;;  %v1529_v32 = vshrl.u32 %v2319_v6, 16  ;;  %v2348_v5 = vld [vmem:[%s2656_s26 + $0x60] sm:$0xe] }
  0x99   : > { %v1512_v33 = vrot.slane %v1511_v22, 4  ;;  %v1415_v34 = vor.u32 %v1414_v24, %v1411_v23  ;;  %v1532_v36 = vshll.u32 %v2319_v6, 16  ;;  %v1538_v37 = vshll.u32 %v2320_v12, 16  ;;  %v2350_v16 = vld [vmem:[%s2656_s26 + $0x68] sm:$0x1] }
  0x9a   : > { %v1522_v38 = vrot.slane %v1521_v29, 4  ;;  %v1424_v39 = vrot.slane %v1422_v30, 4  ;;  %v1430_v40 = vrot.slane %v1428_v31, 5  ;;  %v1531_v41 = vrot.slane %v1529_v32, 4  ;;  %v2337_v23 = vld [vmem:[%s2656_s26 + $0x34] sm:$0xf] }
  0x9b   : > { %v1517_v44 = vsel %vm2712_vm5, %v1512_v33, %v1516_v19  ;;  %v1416_v45 = vrot.slane %v1415_v34, 4  ;;  %v1534_v46 = vrot.slane %v1532_v36, 5  ;;  %v1540_v47 = vrot.slane %v1538_v37, 5  ;;  %v2338_v24 = vld [vmem:[%s2656_s26 + $0x38] sm:$0x1] }
  0x9c   : > { %1219 = vrot.lane.b32.xlu0 %v2269_v18, %s2592_s4  ;;  %1315 = vrot.lane.b32.xlu1 %v2531_v28, %s2593_s5  ;;  %v1527_v51 = vsel %vm2712_vm5, %v1522_v38, %v1526_v21  ;;  %v1425_v52 = vor.u32 %v1424_v39, %v1420_v25  ;;  %v1542_v53 = vshrl.u32 %v2320_v12, 16  ;;  %v1548_v54 = vshll.u32 %v2321_v35, 16  ;;  %v2336_v18 = vld [vmem:[%s2656_s26 + $0x30] sm:$0xe]  ;;  %v2351_v32 = vld [vmem:[%s2656_s26 + $0x6c] sm:$0xe] }
  0x9d   : > { %v2328_v56 = vcombine.low %v1517_v44, %v1527_v51  ;;  %v1421_v57 = vsel %vm2712_vm5, %v1416_v45, %v1420_v25  ;;  %v1535_v58 = vor.u32 %v1534_v46, %v1531_v41  ;;  %v1433_v61 = vshrl.u32 %v2307_v42, 16  ;;  %v3080_v25 = vpop.permute.xlu0 %691  ;;  %v2352_v37 = vld [vmem:[%s2656_s26 + $0x70] sm:$0xf]  ;;  %v2536_v51 = vld [vmem:[%s2656_s26] sm:$0xff]  }
  0x9e   : > { %v1426_v1 = vrot.slane %v1425_v52, 4  ;;  %v1544_v2 = vrot.slane %v1542_v53, 4  ;;  %v1550_v3 = vrot.slane %v1548_v54, 5  ;;  %v1436_v4 = vshll.u32 %v2307_v42, 16  ;;  %v2537_v52 = vld [vmem:[%s2656_s26 + $0x3c] sm:$0xff]   ;;  %v2538_v53 = vld [vmem:[%s2656_s26 + $0x30] sm:$0xff]  }
  0x9f   : > { %v1536_v6 = vrot.slane %v1535_v58, 4  ;;  %v1435_v8 = vrot.slane %v1433_v61, 4  ;;  %v1442_v9 = vshll.u32 %v2308_v55, 16  ;;  %v1446_v10 = vshrl.u32 %v2308_v55, 16  ;;  %v528_v38 = vpop.permute.xlu1 %527  ;;  %v2541_v54 = vld [vmem:[%s2656_s26 + $0x48] sm:$0xff]   ;;  %v2542_v55 = vld [vmem:[%s2656_s26 + $0x18] sm:$0xff]  }
  0xa0   : > { %1307 = vrot.lane.b32.xlu0 %v2532_v43, %s2593_s5  ;;  %1317 = vrot.lane.b32.xlu1 %v2533_v50, %s2593_s5  ;;  %v1431_v12 = vsel %vm2712_vm5, %v1426_v1, %v1430_v40  ;;  %v1545_v13 = vor.u32 %v1544_v2, %v1540_v47  ;;  %v1438_v14 = vrot.slane %v1436_v4, 5  ;;  %v1452_v15 = vshll.u32 %v2309_v60, 16  ;;  %v2353_v43 = vld [vmem:[%s2656_s26 + $0x74] sm:$0x1]  ;;  %v2535_v50 = vld [vmem:[%s2656_s26 + $0xc] sm:$0xff]   ;;  %274 = vst.msk [vmem:[#allocation2] sm:$0xff] %vm273_vm6, %v2536_v51 }
  0xa1   : > { %v2324_v19 = vcombine.low %v1421_v57, %v1431_v12  ;;  %v1541_v20 = vsel %vm2712_vm5, %v1536_v6, %v1540_v47  ;;  %v1444_v21 = vrot.slane %v1442_v9, 5  ;;  %v1448_v22 = vrot.slane %v1446_v10, 4  ;;  %v2339_v61 = vld [vmem:[%s2656_s26 + $0x3c] sm:$0xe]  ;;  %v2546_v9 = vld [vmem:[%s2656_s26 + $0x24] sm:$0xff]   ;;  %275 = vst.msk [vmem:[#allocation2 + $0x8] sm:$0xff] %vm273_vm6, %v2535_v50 }
  0xa2   : > { %v1546_v28 = vrot.slane %v1545_v13, 4  ;;  %v1439_v29 = vor.u32 %v1438_v14, %v1435_v8  ;;  %v1454_v30 = vrot.slane %v1452_v15, 5  ;;  %v2360_v31 = vrot.slane %v2348_v5, 9  ;;  %v2341_v5 = vld [vmem:[%s2656_s26 + $0x44] sm:$0x1]  ;;  %v2545_v8 = vld [vmem:[%s2656_s26 + $0x54] sm:$0xff]  }
  0xa3   : > { %v1449_v33 = vor.u32 %v1448_v22, %v1444_v21  ;;  %v1701_v34 = vrot.slane %v2349_v11, 5  ;;  %v1704_v35 = vrot.slane %v2350_v16, 5  ;;  %v2356_v36 = vrot.slane %v2336_v18, 9  ;;  %v526_v6 = vpop.permute.xlu0 %525  ;;  %279 = vst.msk [vmem:[#allocation2 + $0x28] sm:$0xff] %vm273_vm6, %v2537_v52  ;;  %278 = vst.msk [vmem:[#allocation2 + $0x20] sm:$0xff] %vm273_vm6, %v2538_v53 }
  0xa4   : > { %1309 = vrot.lane.b32.xlu0 %v2534_v63, %s2593_s5  ;;  %1588 = vrot.lane.b32.xlu1 %v2328_v56, %s2594_s8  ;;  %v1551_v39 = vsel %vm2712_vm5, %v1546_v28, %v1550_v3  ;;  %v1440_v40 = vrot.slane %v1439_v29, 4  ;;  %v1673_v41 = vrot.slane %v2337_v23, 5  ;;  %v1676_v42 = vrot.slane %v2338_v24, 5  ;;  %v2340_v63 = vld [vmem:[%s2656_s26 + $0x40] sm:$0xf]  ;;  %280 = vst.msk [vmem:[#allocation2 + $0x30] sm:$0xff] %vm273_vm6, %v2541_v54 }
  0xa5   : > { %v2329_v44 = vcombine.low %v1541_v20, %v1551_v39  ;;  %v1450_v45 = vrot.slane %v1449_v33, 4  ;;  %v1702_v46 = vsel %vm2658_vm2, %v2360_v31, %v1701_v34  ;;  %v1703_v47 = vrot.slane %v1701_v34, 4  ;;  %276 = vst.msk [vmem:[#allocation2 + $0x10] sm:$0xff] %vm273_vm6, %v2542_v55  ;;  %281 = vst.msk [vmem:[#allocation2 + $0x38] sm:$0xff] %vm273_vm6, %v2545_v8  ;;  %s2144_s26 = sshll.u32 %s3304_s13, 5 }
  0xa6   : > { %v1445_v56 = vsel %vm2712_vm5, %v1440_v40, %v1444_v21  ;;  %v1674_v57 = vsel %vm2658_vm2, %v2356_v36, %v1673_v41  ;;  %v1675_v58 = vrot.slane %v1673_v41, 4  ;;  %v2361_v60 = vrot.slane %v2351_v32, 9  ;;  %277 = vst.msk [vmem:[#allocation2 + $0x18] sm:$0xff] %vm273_vm6, %v2546_v9  ;;  %v2547_v21 = vld [vmem:[%s3286_s1 + $0x20] ss:$0 sps:$4 sm:$0xff]   ;;  %s204_s27 = sadd.s32 %s2144_s26, %s3306_s25 }
  0xa7   : > { %v1455_v1 = vsel %vm2712_vm5, %v1450_v45, %v1454_v30  ;;  %v1705_v2 = vsel %vm2658_vm2, %v1703_v47, %v1704_v35  ;;  %v1708_v3 = vrot.slane %v2352_v37, 5  ;;  %v1711_v4 = vrot.slane %v2353_v43, 5  ;;  %v536_v16 = vpop.permute.xlu1 %535  ;;  %551 = vst.msk [vmem:[#allocation2 + $0x8] sm:$0xff] %vm549_vm7, %v528_v38  ;;  %550 = vst.msk [vmem:[#allocation2] sm:$0xff] %vm549_vm7, %v526_v6  ;;  %2467 = vmatprep.subr.msk.bf16.mxu0 %vm1846_vm10, %v2547_v21  ;;  %s2145_s30 = sshll.u32 %s204_s27, 2 }
  0xa8   : > { %1580 = vrot.lane.b32.xlu0 %v2324_v19, %s2594_s8  ;;  %1590 = vrot.lane.b32.xlu1 %v2329_v44, %s2594_s8  ;;  %v2325_v10 = vcombine.low %v1445_v56, %v1455_v1  ;;  %v2368_v11 = vcombine.low %v1702_v46, %v1705_v2  ;;  %v1677_v12 = vsel %vm2658_vm2, %v1675_v58, %v1676_v42  ;;  %v2357_v14 = vrot.slane %v2339_v61, 9  ;;  %s3223_s4 = scalar_lea.vmem %s3288_s3, %s2145_s30 }
  0xa9   : > { %v1709_v7 = vsel %vm2658_vm2, %v2361_v60, %v1708_v3  ;;  %v1710_v13 = vrot.slane %v1708_v3, 4  ;;  %v1680_v15 = vrot.slane %v2340_v63, 5  ;;  %v1683_v18 = vrot.slane %v2341_v5, 5  ;;  %555 = vst.msk [vmem:[#allocation2 + $0x28] sm:$0xff] %vm549_vm7, %v536_v16  ;;  %2468 = vmatprep.subr.msk.bf16.mxu1 %vm1846_vm10, %v2547_v21 }
  0xaa   : > { %v2364_v22 = vcombine.low %v1674_v57, %v1677_v12  ;;  %715 = vst.msk [vmem:[#allocation2 + $0x8] sm:$0xff] %vm713_vm8, %v3080_v25  ;;  %714 = vst.msk [vmem:[#allocation2] sm:$0xff] %vm713_vm8, %v3054_v48  ;;  %v1848_v0 = vsel %vm1846_vm10, %v2547_v21, 0 }
  0xab   : > { %v1712_v19 = vsel %vm2658_vm2, %v1710_v13, %v1711_v4  ;;  %v1682_v20 = vrot.slane %v1680_v15, 4  ;;  %v1681_v24 = vsel %vm2658_vm2, %v2357_v14, %v1680_v15  ;;  %719 = vst.msk [vmem:[#allocation2 + $0x28] sm:$0xff] %vm713_vm8, %v3065_v62  ;;  %2440 = vmatpush3.bf16.msra.mxu0 %v1848_v0  ;;  %2466 = vmatpush3.bf16.msra.mxu1 %v1848_v0 }
  0xac   : > { %1582 = vrot.lane.b32.xlu0 %v2325_v10, %s2594_s8  ;;  %1749 = vrot.lane.b32.xlu1 %v2368_v11, %s2595_s20  ;;  %v2369_v23 = vcombine.low %v1709_v7, %v1712_v19  ;;  %804 = vst.msk [vmem:[#allocation2] sm:$0xff] %vm803_vm9, %v3019_v49  ;;  %805 = vst.msk [vmem:[#allocation2 + $0x8] sm:$0xff] %vm803_vm9, %v3042_v17 }
  0xad   : > { %v1684_v28 = vsel %vm2658_vm2, %v1682_v20, %v1683_v18  ;;  %v534_v29 = vpop.permute.xlu0 %533  ;;  %809 = vst.msk [vmem:[#allocation2 + $0x28] sm:$0xff] %vm803_vm9, %v3029_v59 }
  0xae   : > { %554 = vst.msk [vmem:[#allocation2 + $0x20] sm:$0xff] %vm549_vm7, %v534_v29  ;;  %v2365_v48 = vcombine.low %v1681_v24, %v1684_v28  ;;  %v3215_v28 = vld [vmem:[%s3287_s2] ss:$0 sm:$0xff] }
  0xaf   : > { %718 = vst.msk [vmem:[#allocation2 + $0x20] sm:$0xff] %vm713_vm8, %v3044_v27 }
  0xb0   : > { %1741 = vrot.lane.b32.xlu0 %v2364_v22, %s2595_s20  ;;  %1751 = vrot.lane.b32.xlu1 %v2369_v23, %s2595_s20  ;;  %808 = vst.msk [vmem:[#allocation2 + $0x20] sm:$0xff] %vm803_vm9, %v3001_v26 }
  0xb1   : > { %v1061_v49 = vpop.permute.xlu1 %1060 }
  0xb2   : > { %1081 = vst.msk [vmem:[#allocation2 + $0x20] sm:$0xff] %vm1076_vm11, %v1061_v49 }
  0xb4   : > { %1743 = vrot.lane.b32.xlu0 %v2365_v48, %s2595_s20  ;;  %v1053_v59 = vpop.permute.xlu0 %1052 }
  0xb5   : > { %1077 = vst.msk [vmem:[#allocation2] sm:$0xff] %vm1076_vm11, %v1053_v59 }
  0xb9   : > { %v1063_v17 = vpop.permute.xlu1 %1062 }
  0xba   : > { %1082 = vst.msk [vmem:[#allocation2 + $0x28] sm:$0xff] %vm1076_vm11, %v1063_v17 }
  0xbc   : > { %v1055_v27 = vpop.permute.xlu0 %1054 }
  0xbd   : > { %1078 = vst.msk [vmem:[#allocation2 + $0x8] sm:$0xff] %vm1076_vm11, %v1055_v27  ;;  %v1222_v62 = vpop.permute.xlu1 %1221 }
  0xbe   : > { %1242 = vst.msk [vmem:[#allocation2 + $0x20] sm:$0xff] %vm1237_vm12, %v1222_v62 }
  0xc0   : > { %v1214_v26 = vpop.permute.xlu0 %1213 }
  0xc1   : > { %1238 = vst.msk [vmem:[#allocation2] sm:$0xff] %vm1237_vm12, %v1214_v26  ;;  %v1224_v25 = vpop.permute.xlu1 %1223 }
  0xc2   : > { %1243 = vst.msk [vmem:[#allocation2 + $0x28] sm:$0xff] %vm1237_vm12, %v1224_v25 }
  0xc4   : > { %v1216_v30 = vpop.permute.xlu0 %1215 }
  0xc5   : > { %1239 = vst.msk [vmem:[#allocation2 + $0x8] sm:$0xff] %vm1237_vm12, %v1216_v30  ;;  %v1312_v31 = vpop.permute.xlu1 %1311 }
  0xc6   : > { %1332 = vst.msk [vmem:[#allocation2 + $0x20] sm:$0xff] %vm1327_vm13, %v1312_v31 }
  0xc8   : > { %v1304_v32 = vpop.permute.xlu0 %1303 }
  0xc9   : > { %1328 = vst.msk [vmem:[#allocation2] sm:$0xff] %vm1327_vm13, %v1304_v32  ;;  %v1314_v33 = vpop.permute.xlu1 %1313 }
  0xca   : > { %1333 = vst.msk [vmem:[#allocation2 + $0x28] sm:$0xff] %vm1327_vm13, %v1314_v33 }
  0xcc   : > { %v1306_v34 = vpop.permute.xlu0 %1305 }
  0xcd   : > { %1329 = vst.msk [vmem:[#allocation2 + $0x8] sm:$0xff] %vm1327_vm13, %v1306_v34  ;;  %v1585_v35 = vpop.permute.xlu1 %1584 }
  0xce   : > { %1605 = vst.msk [vmem:[#allocation2 + $0x20] sm:$0xff] %vm1600_vm14, %v1585_v35 }
  0xd0   : > { %v1577_v36 = vpop.permute.xlu0 %1576 }
  0xd1   : > { %1601 = vst.msk [vmem:[#allocation2] sm:$0xff] %vm1600_vm14, %v1577_v36  ;;  %v1587_v37 = vpop.permute.xlu1 %1586 }
  0xd2   : > { %1606 = vst.msk [vmem:[#allocation2 + $0x28] sm:$0xff] %vm1600_vm14, %v1587_v37 }
  0xd5   : > { %v1746_v38 = vpop.permute.xlu1 %1745 }
  0xd6   : > { %v1579_v39 = vpop.permute.xlu0 %1578  ;;  %1766 = vst.msk [vmem:[#allocation2 + $0x20] sm:$0xff] %vm1761_vm15, %v1746_v38 }
  0xd7   : > { %1602 = vst.msk [vmem:[#allocation2 + $0x8] sm:$0xff] %vm1600_vm14, %v1579_v39 }
  0xda   : > { %v1738_v40 = vpop.permute.xlu0 %1737 }
  0xdb   : > { %1762 = vst.msk [vmem:[#allocation2] sm:$0xff] %vm1761_vm15, %v1738_v40 }
  0xdd   : > { %v538_v41 = vpop.permute.xlu1 %537  ;;  %v1774_v42 = vld [vmem:[#allocation2 + $0x20] sm:$0xff] }
  0xde   : > { %556 = vst.msk [vmem:[#allocation2 + $0x30] sm:$0xff] %vm549_vm7, %v538_v41  ;;  %2449 = vmatprep.mubr.msk.bf16.mxu1 %vm1821_vm0, %v1774_v42 }
  0xe0   : > { %v530_v43 = vpop.permute.xlu0 %529 }
  0xe1   : > { %552 = vst.msk [vmem:[#allocation2 + $0x10] sm:$0xff] %vm549_vm7, %v530_v43  ;;  %v1748_v44 = vpop.permute.xlu1 %1747 }
  0xe2   : > { %1767 = vst.msk [vmem:[#allocation2 + $0x28] sm:$0xff] %vm1761_vm15, %v1748_v44  ;;  %v1770_v45 = vld [vmem:[#allocation2] sm:$0xff] }
  0xe3   : > { %2441 = vmatprep.mubr.msk.bf16.mxu0 %vm1821_vm0, %v1770_v45 }
  0xe4   : > { %v1740_v46 = vpop.permute.xlu0 %1739 }
  0xe5   : > { %1763 = vst.msk [vmem:[#allocation2 + $0x8] sm:$0xff] %vm1761_vm15, %v1740_v46 }
  0xe9   : > { %v1775_v47 = vld [vmem:[#allocation2 + $0x28] sm:$0xff] }
  0xea   : > { %v540_v50 = vpop.permute.xlu1 %539  ;;  %2450 = vmatmul.mubr.msk.bf16.vlgmr.msra.gmra.mrb[0].mxu1 %vm1821_vm0, %v1775_v47 }
  0xeb   : > { %557 = vst.msk [vmem:[#allocation2 + $0x38] sm:$0xff] %vm549_vm7, %v540_v50 }
  0xec   : > { %v532_v51 = vpop.permute.xlu0 %531  ;;  %v1771_v52 = vld [vmem:[#allocation2 + $0x8] sm:$0xff] }
  0xed   : > { %553 = vst.msk [vmem:[#allocation2 + $0x18] sm:$0xff] %vm549_vm7, %v532_v51  ;;  %2442 = vmatmul.mubr.msk.bf16.vlgmr.msra.gmra.mrb[0].mxu0 %vm1821_vm0, %v1771_v52 }
  0xee   : > { %v702_v53 = vpop.permute.xlu1 %701 }
  0xef   : > { %720 = vst.msk [vmem:[#allocation2 + $0x30] sm:$0xff] %vm713_vm8, %v702_v53 }
  0xf0   : > { %v694_v54 = vpop.permute.xlu0 %693 }
  0xf1   : > { %716 = vst.msk [vmem:[#allocation2 + $0x10] sm:$0xff] %vm713_vm8, %v694_v54 }
  0xf2   : > { %v704_v55 = vpop.permute.xlu1 %703 }
  0xf3   : > { %721 = vst.msk [vmem:[#allocation2 + $0x38] sm:$0xff] %vm713_vm8, %v704_v55 }
  0xf4   : > { %v696_v56 = vpop.permute.xlu0 %695 }
  0xf5   : > { %717 = vst.msk [vmem:[#allocation2 + $0x18] sm:$0xff] %vm713_vm8, %v696_v56 }
  0xf6   : > { %v792_v57 = vpop.permute.xlu1 %791 }
  0xf7   : > { %810 = vst.msk [vmem:[#allocation2 + $0x30] sm:$0xff] %vm803_vm9, %v792_v57 }
  0xf8   : > { %v784_v58 = vpop.permute.xlu0 %783 }
  0xf9   : > { %806 = vst.msk [vmem:[#allocation2 + $0x10] sm:$0xff] %vm803_vm9, %v784_v58 }
  0xfa   : > { %v794_v60 = vpop.permute.xlu1 %793 }
  0xfb   : > { %811 = vst.msk [vmem:[#allocation2 + $0x38] sm:$0xff] %vm803_vm9, %v794_v60 }
  0xfc   : > { %v786_v61 = vpop.permute.xlu0 %785 }
  0xfd   : > { %807 = vst.msk [vmem:[#allocation2 + $0x18] sm:$0xff] %vm803_vm9, %v786_v61 }
  0xfe   : > { %v1065_v63 = vpop.permute.xlu1 %1064 }
  0xff   : > { %1083 = vst.msk [vmem:[#allocation2 + $0x30] sm:$0xff] %vm1076_vm11, %v1065_v63 }
 0x100   : > { %v1057_v1 = vpop.permute.xlu0 %1056 }
 0x101   : > { %1079 = vst.msk [vmem:[#allocation2 + $0x10] sm:$0xff] %vm1076_vm11, %v1057_v1 }
 0x102   : > { %v1067_v2 = vpop.permute.xlu1 %1066 }
 0x103   : > { %1084 = vst.msk [vmem:[#allocation2 + $0x38] sm:$0xff] %vm1076_vm11, %v1067_v2 }
 0x106   : > { %v1059_v3 = vpop.permute.xlu0 %1058  ;;  %v1226_v4 = vpop.permute.xlu1 %1225 }
 0x107   : > { %1080 = vst.msk [vmem:[#allocation2 + $0x18] sm:$0xff] %vm1076_vm11, %v1059_v3 }
 0x108   : > { %1244 = vst.msk [vmem:[#allocation2 + $0x30] sm:$0xff] %vm1237_vm12, %v1226_v4 }
 0x10a   : > { %v1218_v5 = vpop.permute.xlu0 %1217  ;;  %v1228_v6 = vpop.permute.xlu1 %1227 }
 0x10b   : > { %1240 = vst.msk [vmem:[#allocation2 + $0x10] sm:$0xff] %vm1237_vm12, %v1218_v5  ;;  %1245 = vst.msk [vmem:[#allocation2 + $0x38] sm:$0xff] %vm1237_vm12, %v1228_v6 }
 0x10e   : > { %v1220_v8 = vpop.permute.xlu0 %1219  ;;  %v1316_v9 = vpop.permute.xlu1 %1315 }
 0x10f   : > { %1241 = vst.msk [vmem:[#allocation2 + $0x18] sm:$0xff] %vm1237_vm12, %v1220_v8 }
 0x110   : > { %1334 = vst.msk [vmem:[#allocation2 + $0x30] sm:$0xff] %vm1327_vm13, %v1316_v9 }
 0x112   : > { %v1308_v10 = vpop.permute.xlu0 %1307  ;;  %v1318_v11 = vpop.permute.xlu1 %1317 }
 0x113   : > { %1330 = vst.msk [vmem:[#allocation2 + $0x10] sm:$0xff] %vm1327_vm13, %v1308_v10  ;;  %1335 = vst.msk [vmem:[#allocation2 + $0x38] sm:$0xff] %vm1327_vm13, %v1318_v11 }
 0x116   : > { %v1310_v12 = vpop.permute.xlu0 %1309  ;;  %v1589_v7 = vpop.permute.xlu1 %1588 }
 0x117   : > { %1331 = vst.msk [vmem:[#allocation2 + $0x18] sm:$0xff] %vm1327_vm13, %v1310_v12 }
 0x118   : > { %1607 = vst.msk [vmem:[#allocation2 + $0x30] sm:$0xff] %vm1600_vm14, %v1589_v7 }
 0x11a   : > { %v1581_v13 = vpop.permute.xlu0 %1580  ;;  %v1591_v14 = vpop.permute.xlu1 %1590 }
 0x11b   : > { %1603 = vst.msk [vmem:[#allocation2 + $0x10] sm:$0xff] %vm1600_vm14, %v1581_v13  ;;  %1608 = vst.msk [vmem:[#allocation2 + $0x38] sm:$0xff] %vm1600_vm14, %v1591_v14 }
 0x11e   : > { %v1583_v15 = vpop.permute.xlu0 %1582  ;;  %v1750_v16 = vpop.permute.xlu1 %1749 }
 0x11f   : > { %1604 = vst.msk [vmem:[#allocation2 + $0x18] sm:$0xff] %vm1600_vm14, %v1583_v15 }
 0x120   : > { %1768 = vst.msk [vmem:[#allocation2 + $0x30] sm:$0xff] %vm1761_vm15, %v1750_v16 }
 0x122   : > { %v1742_v18 = vpop.permute.xlu0 %1741  ;;  %v1752_v19 = vpop.permute.xlu1 %1751 }
 0x123   : > { %1764 = vst.msk [vmem:[#allocation2 + $0x10] sm:$0xff] %vm1761_vm15, %v1742_v18  ;;  %1769 = vst.msk [vmem:[#allocation2 + $0x38] sm:$0xff] %vm1761_vm15, %v1752_v19 }
 0x126   : > { %v1744_v20 = vpop.permute.xlu0 %1743 }
 0x127   : > { %v1776_v21 = vld [vmem:[#allocation2 + $0x30] sm:$0xff]  ;;  %1765 = vst.msk [vmem:[#allocation2 + $0x18] sm:$0xff] %vm1761_vm15, %v1744_v20 }
 0x128   : > { %2453 = vmatprep.mubr.msk.bf16.mxu1 %vm1821_vm0, %v1776_v21 }
 0x12a   : > { %v1772_v22 = vld [vmem:[#allocation2 + $0x10] sm:$0xff]  ;;  %v1777_v23 = vld [vmem:[#allocation2 + $0x38] sm:$0xff] }
 0x12b   : > { %2445 = vmatprep.mubr.msk.bf16.mxu0 %vm1821_vm0, %v1772_v22  ;;  %2454 = vmatmul.mubr.msk.bf16.gmra.mrb[4].mxu1 %vm1821_vm0, %v1777_v23 }
 0x12e   : > { %v1773_v24 = vld [vmem:[#allocation2 + $0x18] sm:$0xff] }
 0x12f   : > { %2446 = vmatmul.mubr.msk.bf16.gmra.mrb[4].mxu0 %vm1821_vm0, %v1773_v24 }
 0x1bd   : > { %v2451_v29 = vpop.f32.mrb[0].mxu1 }
 0x1be   : > { %v1925_v0 = vadd.f32 %v2451_v29, %v3215_v28  ;;  %v1916_v48 = vpop.f32.mrb[1].mxu1 }
 0x1bf   : > { %v1917_v49 = vadd.f32 %v3215_v28, %v1916_v48  ;;  %v2452_v59 = vpop.f32.mrb[2].mxu1 }
 0x1c0   : > { %v2443_v17 = vpop.f32.mrb[0].mxu0  ;;  %v1957_v27 = vmax.f32 %v1925_v0, 0.0  ;;  %v1928_v62 = vadd.f32 %v2452_v59, %v3215_v28  ;;  %v1919_v26 = vpop.f32.mrb[3].mxu1 }
 0x1c1   : > { %v1893_v25 = vadd.f32 %v2443_v17, %v3215_v28  ;;  %v1884_v30 = vpop.f32.mrb[1].mxu0  ;;  %v1955_v31 = vmax.f32 %v1917_v49, 0.0  ;;  %v1920_v32 = vadd.f32 %v3215_v28, %v1919_v26 }
 0x1c2   : > { %v2412_v33 = vpack.c.bf16 %v1957_v27, %v1957_v27  ;;  %v1885_v34 = vadd.f32 %v3215_v28, %v1884_v30  ;;  %v2444_v35 = vpop.f32.mrb[2].mxu0  ;;  %v1958_v36 = vmax.f32 %v1928_v62, 0.0 }
 0x1c3   : > { %v1949_v37 = vmax.f32 %v1893_v25, 0.0  ;;  %v2410_v38 = vpack.c.bf16 %v1955_v31, %v1955_v31  ;;  %v1896_v39 = vadd.f32 %v2444_v35, %v3215_v28  ;;  %v1887_v40 = vpop.f32.mrb[3].mxu0  ;;  %v1956_v41 = vmax.f32 %v1920_v32, 0.0 }
 0x1c4   : > { %2038 = vst.msk [vmem:[%s3223_s4 + $0x28] sm:$0xf] %vm2027_vm1, %v2412_v33  ;;  %v1947_v42 = vmax.f32 %v1885_v34, 0.0  ;;  %v2413_v43 = vpack.c.bf16 %v1958_v36, %v1958_v36  ;;  %v1888_v44 = vadd.f32 %v3215_v28, %v1887_v40 }
 0x1c5   : > { %v2404_v45 = vpack.c.bf16 %v1949_v37, %v1949_v37  ;;  %2036 = vst.msk [vmem:[%s3223_s4 + $0x20] sm:$0xf] %vm2027_vm1, %v2410_v38  ;;  %v1950_v46 = vmax.f32 %v1896_v39, 0.0  ;;  %v2411_v47 = vpack.c.bf16 %v1956_v41, %v1956_v41 }
 0x1c6   : > { %v2402_v50 = vpack.c.bf16 %v1947_v42, %v1947_v42  ;;  %2039 = vst.msk [vmem:[%s3223_s4 + $0x2c] sm:$0xf] %vm2027_vm1, %v2413_v43  ;;  %v1948_v51 = vmax.f32 %v1888_v44, 0.0 }
 0x1c7   : > { %2030 = vst.msk [vmem:[%s3223_s4 + $0x8] sm:$0xf] %vm2027_vm1, %v2404_v45  ;;  %v2405_v52 = vpack.c.bf16 %v1950_v46, %v1950_v46  ;;  %2037 = vst.msk [vmem:[%s3223_s4 + $0x24] sm:$0xf] %vm2027_vm1, %v2411_v47 }
 0x1c8   : > { %2028 = vst.msk [vmem:[%s3223_s4] sm:$0xf] %vm2027_vm1, %v2402_v50  ;;  %v2403_v53 = vpack.c.bf16 %v1948_v51, %v1948_v51 }
 0x1c9   : > { %2031 = vst.msk [vmem:[%s3223_s4 + $0xc] sm:$0xf] %vm2027_vm1, %v2405_v52 }
 0x1ca   : > { %2029 = vst.msk [vmem:[%s3223_s4 + $0x4] sm:$0xf] %vm2027_vm1, %v2403_v53 }
 0x1fe   : > { %v2455_v54 = vpop.f32.mrb[4].mxu1 }
 0x1ff   : > { %v1941_v55 = vadd.f32 %v2455_v54, %v3215_v28  ;;  %v1932_v56 = vpop.f32.mrb[5].mxu1 }
 0x200   : > { %v1933_v57 = vadd.f32 %v3215_v28, %v1932_v56  ;;  %v2456_v58 = vpop.f32.mrb[6].mxu1 }
 0x201   : > { %v1961_v60 = vmax.f32 %v1941_v55, 0.0  ;;  %v1944_v61 = vadd.f32 %v2456_v58, %v3215_v28  ;;  %v1935_v63 = vpop.f32.mrb[7].mxu1 }
 0x202   : > { %v2447_v1 = vpop.f32.mrb[4].mxu0  ;;  %v1959_v2 = vmax.f32 %v1933_v57, 0.0  ;;  %v1936_v3 = vadd.f32 %v3215_v28, %v1935_v63 }
 0x203   : > { %v1909_v4 = vadd.f32 %v2447_v1, %v3215_v28  ;;  %v2416_v5 = vpack.c.bf16 %v1961_v60, %v1961_v60  ;;  %v1900_v6 = vpop.f32.mrb[5].mxu0  ;;  %v1962_v8 = vmax.f32 %v1944_v61, 0.0 }
 0x204   : > { %v1901_v9 = vadd.f32 %v3215_v28, %v1900_v6  ;;  %v2414_v10 = vpack.c.bf16 %v1959_v2, %v1959_v2  ;;  %v2448_v11 = vpop.f32.mrb[6].mxu0  ;;  %v1960_v12 = vmax.f32 %v1936_v3, 0.0 }
 0x205   : > { %v1953_v7 = vmax.f32 %v1909_v4, 0.0  ;;  %2042 = vst.msk [vmem:[%s3223_s4 + $0x38] sm:$0xf] %vm2027_vm1, %v2416_v5  ;;  %v1912_v13 = vadd.f32 %v2448_v11, %v3215_v28  ;;  %v2417_v14 = vpack.c.bf16 %v1962_v8, %v1962_v8  ;;  %v1903_v15 = vpop.f32.mrb[7].mxu0 }
 0x206   : > { %v1951_v16 = vmax.f32 %v1901_v9, 0.0  ;;  %2040 = vst.msk [vmem:[%s3223_s4 + $0x30] sm:$0xf] %vm2027_vm1, %v2414_v10  ;;  %v1904_v18 = vadd.f32 %v3215_v28, %v1903_v15  ;;  %v2415_v19 = vpack.c.bf16 %v1960_v12, %v1960_v12 }
 0x207   : > { %v2408_v20 = vpack.c.bf16 %v1953_v7, %v1953_v7  ;;  %v1954_v21 = vmax.f32 %v1912_v13, 0.0  ;;  %2043 = vst.msk [vmem:[%s3223_s4 + $0x3c] sm:$0xf] %vm2027_vm1, %v2417_v14 }
 0x208   : > { %v2406_v22 = vpack.c.bf16 %v1951_v16, %v1951_v16  ;;  %v1952_v23 = vmax.f32 %v1904_v18, 0.0  ;;  %2041 = vst.msk [vmem:[%s3223_s4 + $0x34] sm:$0xf] %vm2027_vm1, %v2415_v19 }
 0x209   : > { %2034 = vst.msk [vmem:[%s3223_s4 + $0x18] sm:$0xf] %vm2027_vm1, %v2408_v20  ;;  %v2409_v24 = vpack.c.bf16 %v1954_v21, %v1954_v21 }
 0x20a   : > { %2032 = vst.msk [vmem:[%s3223_s4 + $0x10] sm:$0xf] %vm2027_vm1, %v2406_v22  ;;  %v2407_v29 = vpack.c.bf16 %v1952_v23, %v1952_v23 }
 0x20b   : > { %2035 = vst.msk [vmem:[%s3223_s4 + $0x1c] sm:$0xf] %vm2027_vm1, %v2409_v24 }
 0x20c   : > { %2033 = vst.msk [vmem:[%s3223_s4 + $0x14] sm:$0xf] %vm2027_vm1, %v2407_v29 }
 0x20d PF: > { %s13_s16 = sadd.s32 1, %s2586_s16   ;;  %s3293_s12 = smov %s2578_s14 }
 0x20e   : > { %p10_p8 = scmp.ge.s32.totalorder %s13_s16, 6   ;;  %s3294_s13 = smov %s2582_s15 }
 0x20f   : > { %s3295_s14 = smov %s3298_s17  ;;  %s3296_s15 = smov %s3302_s18 }
 0x210   :  { %12 = sbr.rel (!%p10_p8) target bundleno = 3 (0x3), region = 64 }

// kernel: decoder_block_forward.5
= control target key start
LH: loop header
LB: loop body
LE: loop exit
PB: predicated region body
PF: predicated region fallthrough
CT: control target
= control target key end

     0   :  { %s2586_s12 = smov 0   ;;  %s2588_s13 = smov 0   ;;  %s3245_s0 = inlined_call_operand.vmem [shape: bf16[2,2,10,18,4], index: 0, kind: input, shape index: {}]   ;;  %s3246_s1 = inlined_call_operand.vmem [shape: bf16[36,4], index: 1, kind: input, shape index: {}]   ;;  %s3247_s2 = inlined_call_operand.vmem [shape: f32[1,4], index: 2, kind: input, shape index: {}]   ;;  %s3248_s3 = inlined_call_operand.vmem [shape: bf16[2,256,4], index: 3, kind: output, shape index: {}]  }
   0x1   :  { %s2590_s14 = smov 0   ;;  %s2592_s15 = smov 0  }
   0x2   :  { %s2594_s16 = smov 0  }
   0x3 LB: > { %s22_s17 = sadd.s32 1, %s2548_s14  ;;  %s25_s18 = sadd.s32 1, %s2552_s15  ;;  %s2556_s16 = sphi %s2594_s16, %s13_s16   ;;  %s2552_s15 = sphi %s2592_s15, %s3256_s15   ;;  %s2548_s14 = sphi %s2590_s14, %s3255_s14   ;;  %s2544_s13 = sphi %s2588_s13, %s3254_s13   ;;  %s2540_s12 = sphi %s2586_s12, %s3253_s12  }
   0x4   : > { %p23_p0 = scmp.ge.s32.totalorder %s22_s17, 2  ;;  %p2125_p1 = scmp.ge.s32.totalorder %s2556_s16, 1 }
   0x5   : > { %p157_p2 = scmp.lt.s32.totalorder %s2556_s16, 5 }
   0x6   : > { %s3258_s17 = smov (%p23_p0, %s22_s17), 0  ;;  %s3260_s18 = smov (!%p23_p0, %s25_s18), %s2552_s15 }
   0x7   : > { %p158_p3 = pnand %p2125_p1, %p157_p2  ;;  %p27_p4 = scmp.ge.s32.totalorder %s3260_s18, 2 }
   0x8   : > { %p189_p5 = scmp.lt.s32.totalorder (!%p158_p3), %s2544_s13, 1  ;;  %p191_p6 = scmp.lt.s32.totalorder (!%p158_p3), %s2540_s12, 1  ;;  %vm606_vm0 = vcmask (!%p158_p3), 1042432   ;;  %vm607_vm1 = vcmask (!%p158_p3), 1046532   ;;  %vm306_vm3 = vsmask.f32 (!%p158_p3), 3328 }
   0x9   : > { %s3262_s18 = smov (%p27_p4, %s3260_s18), 0  ;;  %161 = sbr.rel (%p158_p3) target bundleno = 525 (0x20d), region = 32 }
   0xa   : > { %vm2628_vm2 = vmor (!%p158_p3), %vm606_vm0, %vm607_vm1  ;;  %s2558_s27 = smov (!%p158_p3), 12   ;;  %vm307_vm4 = vsmask.f32 (!%p158_p3), 7440  ;;  %s2559_s28 = smov (!%p158_p3), 8   ;;  %vm273_vm6 = vcmask (!%p158_p3), 31744   ;;  %vm549_vm7 = vcmask (!%p158_p3), 64544  }
   0xb   : > { %vm2682_vm5 = vmor (!%p158_p3), %vm306_vm3, %vm307_vm4  ;;  %s2560_s29 = smov (!%p158_p3), 4   ;;  %s2561_s30 = smov (!%p158_p3), 16   ;;  %vm713_vm8 = vcmask (!%p158_p3), 97344   ;;  %vm803_vm9 = vcmask (!%p158_p3), 130144   ;;  %vm1830_vm10 = vcmask (!%p158_p3), 1041408   ;;  %vm1076_vm11 = vcmask (!%p158_p3), 162944  }
   0xc   : > { %s2562_s4 = smov (!%p158_p3), 20   ;;  %s2563_s5 = smov (!%p158_p3), 24   ;;  %vm1237_vm12 = vcmask (!%p158_p3), 195744   ;;  %vm1327_vm13 = vcmask (!%p158_p3), 228544   ;;  %vm1600_vm14 = vcmask (!%p158_p3), 261344   ;;  %vm1761_vm15 = vcmask (!%p158_p3), 294144  }
   0xd   : > { %s2564_s6 = smov (!%p158_p3), 28   ;;  %s2565_s9 = smov (!%p158_p3), 32   ;;  %vm1805_vm0 = vcmask (!%p158_p3), 293888   ;;  %vm2011_vm1 = vcmask (!%p158_p3), 27648  }
  0x10   : > { %s3264_s13 = smov (!%p189_p5, %s2544_s13), 1 }
  0x11   : > { %s192_s19 = scalar_select %p191_p6, %s2540_s12, 1 }
  0x12   : > { %s2442_s20 = smul.u32 60, %s3264_s13 }
  0x13   : > { %s2441_s21 = smul.u32 30, %s192_s19 }
  0x15   : > { %s195_s22 = sadd.s32 %s2442_s20, %s2441_s21  ;;  %s2127_s21 = sshll.u32 %s2540_s12, 4 }
  0x16   : > { %s2126_s23 = sshll.u32 %s195_s22, 2  ;;  %p201_p7 = scmp.lt.s32.totalorder %s2127_s21, 31 }
  0x17   : > { %s2626_s26 = scalar_lea.vmem %s3245_s0, %s2126_s23  ;;  %s2128_s22 = sshll.u32 %s3264_s13, 5 }
  0x18   : > { %v2491_v1 = vld [vmem:[%s2626_s26 + $0x3c] sm:$0xff]   ;;  %v2492_v2 = vld [vmem:[%s2626_s26 + $0xc] sm:$0xff]   ;;  %v571_v6 = vld [vmem:[%s2626_s26 + $0x34] sm:$0xf]  ;;  %s3266_s21 = smov (!%p201_p7, %s2127_s21), 31 }
  0x19   : > { %787 = vrot.lane.b32.xlu1 %v2491_v1, %s2558_s27  ;;  %v2493_v3 = vld [vmem:[%s2626_s26 + $0x48] sm:$0xff]   ;;  %779 = vrot.lane.b32.xlu0 %v2492_v2, %s2558_s27  ;;  %v2494_v4 = vld [vmem:[%s2626_s26 + $0x18] sm:$0xff]   ;;  %v639_v9 = vrot.slane %v571_v6, 5  ;;  %s204_s23 = sadd.s32 %s2128_s22, %s3266_s21 }
  0x1a   : > { %v570_v5 = vld [vmem:[%s2626_s26 + $0x30] sm:$0xe]  ;;  %v572_v7 = vld [vmem:[%s2626_s26 + $0x38] sm:$0x1]  ;;  %v558_v11 = vld [vmem:[%s2626_s26] sm:$0xe] }
  0x1b   : > { %v2150_v8 = vrot.slane %v570_v5, 9  ;;  %v642_v10 = vrot.slane %v572_v7, 5  ;;  %v559_v12 = vld [vmem:[%s2626_s26 + $0x4] sm:$0xf]  ;;  %v560_v13 = vld [vmem:[%s2626_s26 + $0x8] sm:$0x1] }
  0x1c   : > { %v2146_v14 = vrot.slane %v558_v11, 9  ;;  %v641_v16 = vrot.slane %v639_v9, 4  ;;  %v611_v17 = vrot.slane %v559_v12, 5  ;;  %v614_v18 = vrot.slane %v560_v13, 5  ;;  %v573_v19 = vld [vmem:[%s2626_s26 + $0x3c] sm:$0xe] }
  0x1d   : > { %789 = vrot.lane.b32.xlu1 %v2493_v3, %s2558_s27  ;;  %781 = vrot.lane.b32.xlu0 %v2494_v4, %s2558_s27  ;;  %v640_v15 = vsel %vm2628_vm2, %v2150_v8, %v639_v9  ;;  %v574_v20 = vld [vmem:[%s2626_s26 + $0x40] sm:$0xf]  ;;  %v575_v21 = vld [vmem:[%s2626_s26 + $0x44] sm:$0x1]  ;;  %v2151_v22 = vrot.slane %v573_v19, 9 }
  0x1e   : > { %v643_v23 = vsel %vm2628_vm2, %v641_v16, %v642_v10  ;;  %v612_v24 = vsel %vm2628_vm2, %v2146_v14, %v611_v17  ;;  %v613_v25 = vrot.slane %v611_v17, 4  ;;  %v646_v26 = vrot.slane %v574_v20, 5  ;;  %v561_v27 = vld [vmem:[%s2626_s26 + $0xc] sm:$0xe]  ;;  %v562_v28 = vld [vmem:[%s2626_s26 + $0x10] sm:$0xf] }
  0x1f   : > { %v2158_v29 = vcombine.low %v640_v15, %v643_v23  ;;  %v649_v30 = vrot.slane %v575_v21, 5  ;;  %v563_v31 = vld [vmem:[%s2626_s26 + $0x14] sm:$0x1]  ;;  %v2147_v32 = vrot.slane %v561_v27, 9  ;;  %v618_v33 = vrot.slane %v562_v28, 5 }
  0x20   : > { %v615_v34 = vsel %vm2628_vm2, %v613_v25, %v614_v18  ;;  %v647_v35 = vsel %vm2628_vm2, %v2151_v22, %v646_v26  ;;  %v648_v36 = vrot.slane %v646_v26, 4  ;;  %v621_v37 = vrot.slane %v563_v31, 5  ;;  %v285_v38 = vld [vmem:[%s2626_s26 + $0xc] sm:$0xf]  ;;  %v286_v39 = vld [vmem:[%s2626_s26 + $0x10] sm:$0xf] }
  0x21   : > { %697 = vrot.lane.b32.xlu1 %v2158_v29, %s2559_s28  ;;  %v2154_v40 = vcombine.low %v612_v24, %v615_v34  ;;  %v619_v41 = vsel %vm2628_vm2, %v2147_v32, %v618_v33  ;;  %v620_v42 = vrot.slane %v618_v33, 4  ;;  %v287_v43 = vld [vmem:[%s2626_s26 + $0x14] sm:$0x1]  ;;  %v334_v44 = vshrl.u32 %v285_v38, 16  ;;  %v282_v45 = vld [vmem:[%s2626_s26] sm:$0xf] }
  0x22   : > { %v650_v46 = vsel %vm2628_vm2, %v648_v36, %v649_v30  ;;  %v337_v47 = vshll.u32 %v285_v38, 16  ;;  %v343_v48 = vshll.u32 %v286_v39, 16  ;;  %v347_v49 = vshrl.u32 %v286_v39, 16  ;;  %v283_v50 = vld [vmem:[%s2626_s26 + $0x4] sm:$0xf] }
  0x23   : > { %689 = vrot.lane.b32.xlu0 %v2154_v40, %s2559_s28  ;;  %v2159_v51 = vcombine.low %v647_v35, %v650_v46  ;;  %v622_v52 = vsel %vm2628_vm2, %v620_v42, %v621_v37  ;;  %v336_v53 = vrot.slane %v334_v44, 4  ;;  %v353_v54 = vshll.u32 %v287_v43, 16  ;;  %v284_v55 = vld [vmem:[%s2626_s26 + $0x8] sm:$0x1]  ;;  %v297_v60 = vld [vmem:[%s2626_s26 + $0x3c] sm:$0xf] }
  0x24   : > { %v2155_v56 = vcombine.low %v619_v41, %v622_v52  ;;  %v339_v57 = vrot.slane %v337_v47, 5  ;;  %v345_v58 = vrot.slane %v343_v48, 5  ;;  %v349_v59 = vrot.slane %v347_v49, 4  ;;  %v298_v6 = vld [vmem:[%s2626_s26 + $0x40] sm:$0xf] }
  0x25   : > { %699 = vrot.lane.b32.xlu1 %v2159_v51, %s2559_s28  ;;  %v355_v61 = vrot.slane %v353_v54, 5  ;;  %v310_v62 = vshrl.u32 %v282_v45, 16  ;;  %v313_v63 = vshll.u32 %v282_v45, 16  ;;  %v319_v1 = vshll.u32 %v283_v50, 16  ;;  %v299_v16 = vld [vmem:[%s2626_s26 + $0x44] sm:$0x1] }
  0x26   : > { %v340_v2 = vor.u32 %v339_v57, %v336_v53  ;;  %v350_v3 = vor.u32 %v349_v59, %v345_v58  ;;  %v323_v4 = vshrl.u32 %v283_v50, 16  ;;  %v329_v5 = vshll.u32 %v284_v55, 16  ;;  %v294_v21 = vld [vmem:[%s2626_s26 + $0x30] sm:$0xf]  ;;  %v295_v26 = vld [vmem:[%s2626_s26 + $0x34] sm:$0xf] }
  0x27   : > { %691 = vrot.lane.b32.xlu0 %v2155_v56, %s2559_s28  ;;  %v312_v8 = vrot.slane %v310_v62, 4  ;;  %v315_v9 = vrot.slane %v313_v63, 5  ;;  %v321_v10 = vrot.slane %v319_v1, 5  ;;  %v430_v11 = vshrl.u32 %v297_v60, 16  ;;  %v296_v37 = vld [vmem:[%s2626_s26 + $0x38] sm:$0x1] }
  0x28   : > { %v341_v12 = vrot.slane %v340_v2, 4  ;;  %v351_v13 = vrot.slane %v350_v3, 4  ;;  %v325_v14 = vrot.slane %v323_v4, 4  ;;  %v331_v15 = vrot.slane %v329_v5, 5  ;;  %v2198_v40 = vld [vmem:[%s2626_s26 + $0x3c] sm:$0xf] }
  0x29   : > { %v316_v17 = vor.u32 %v315_v9, %v312_v8  ;;  %v432_v18 = vrot.slane %v430_v11, 4  ;;  %v433_v19 = vshll.u32 %v297_v60, 16  ;;  %v439_v20 = vshll.u32 %v298_v6, 16  ;;  %v2199_v45 = vld [vmem:[%s2626_s26 + $0x40] sm:$0xf] }
  0x2a   : > { %v346_v22 = vsel %vm2682_vm5, %v341_v12, %v345_v58  ;;  %v356_v23 = vsel %vm2682_vm5, %v351_v13, %v355_v61  ;;  %v326_v24 = vor.u32 %v325_v14, %v321_v10  ;;  %v443_v25 = vshrl.u32 %v298_v6, 16  ;;  %v2200_v56 = vld [vmem:[%s2626_s26 + $0x44] sm:$0x1]  ;;  %v2186_v59 = vld [vmem:[%s2626_s26 + $0xc] sm:$0xf] }
  0x2b   : > { %v2139_v27 = vcombine.low %v346_v22, %v356_v23  ;;  %v317_v28 = vrot.slane %v316_v17, 4  ;;  %v435_v29 = vrot.slane %v433_v19, 5  ;;  %v441_v30 = vrot.slane %v439_v20, 5  ;;  %v2187_v1 = vld [vmem:[%s2626_s26 + $0x10] sm:$0xf] }
  0x2c   : > { %v327_v31 = vrot.slane %v326_v24, 4  ;;  %v445_v32 = vrot.slane %v443_v25, 4  ;;  %v449_v33 = vshll.u32 %v299_v16, 16  ;;  %v406_v34 = vshrl.u32 %v294_v21, 16  ;;  %v2188_v13 = vld [vmem:[%s2626_s26 + $0x14] sm:$0x1] }
  0x2d   : > { %527 = vrot.lane.b32.xlu1 %v2139_v27, %s2560_s29  ;;  %v322_v35 = vsel %vm2682_vm5, %v317_v28, %v321_v10  ;;  %v436_v36 = vor.u32 %v435_v29, %v432_v18  ;;  %v409_v38 = vshll.u32 %v294_v21, 16  ;;  %v415_v39 = vshll.u32 %v295_v26, 16  ;;  %v2201_v16 = vld [vmem:[%s2626_s26 + $0x48] sm:$0xf]  ;;  %v2202_v28 = vld [vmem:[%s2626_s26 + $0x4c] sm:$0xf] }
  0x2e   : > { %v332_v41 = vsel %vm2682_vm5, %v327_v31, %v331_v15  ;;  %v446_v42 = vor.u32 %v445_v32, %v441_v30  ;;  %v451_v43 = vrot.slane %v449_v33, 5  ;;  %v408_v44 = vrot.slane %v406_v34, 4  ;;  %v2203_v29 = vld [vmem:[%s2626_s26 + $0x50] sm:$0x1] }
  0x2f   : > { %v2138_v46 = vcombine.low %v322_v35, %v332_v41  ;;  %v437_v47 = vrot.slane %v436_v36, 4  ;;  %v411_v48 = vrot.slane %v409_v38, 5  ;;  %v417_v49 = vrot.slane %v415_v39, 5  ;;  %v2189_v35 = vld [vmem:[%s2626_s26 + $0x18] sm:$0xf] }
  0x30   : > { %v447_v50 = vrot.slane %v446_v42, 4  ;;  %v419_v51 = vshrl.u32 %v295_v26, 16  ;;  %v425_v52 = vshll.u32 %v296_v37, 16  ;;  %v933_v53 = vshrl.u32 %v2198_v40, 16 }
  0x31   : > { %525 = vrot.lane.b32.xlu0 %v2138_v46, %s2560_s29  ;;  %v442_v54 = vsel %vm2682_vm5, %v437_v47, %v441_v30  ;;  %v412_v55 = vor.u32 %v411_v48, %v408_v44  ;;  %v936_v57 = vshll.u32 %v2198_v40, 16  ;;  %v942_v58 = vshll.u32 %v2199_v45, 16  ;;  %v2190_v40 = vld [vmem:[%s2626_s26 + $0x1c] sm:$0xf] }
  0x32   : > { %v452_v60 = vsel %vm2682_vm5, %v447_v50, %v451_v43  ;;  %v421_v61 = vrot.slane %v419_v51, 4  ;;  %v427_v62 = vrot.slane %v425_v52, 5  ;;  %v935_v63 = vrot.slane %v933_v53, 4  ;;  %v2230_v50 = vld [vmem:[%s2626_s26 + $0x3c] sm:$0xe] }
  0x33   : > { %v2143_v2 = vcombine.low %v442_v54, %v452_v60  ;;  %v413_v3 = vrot.slane %v412_v55, 4  ;;  %v938_v4 = vrot.slane %v936_v57, 5  ;;  %v944_v5 = vrot.slane %v942_v58, 5  ;;  %v2231_v55 = vld [vmem:[%s2626_s26 + $0x40] sm:$0xf] }
  0x34   : > { %v422_v6 = vor.u32 %v421_v61, %v417_v49  ;;  %v946_v8 = vshrl.u32 %v2199_v45, 16  ;;  %v952_v9 = vshll.u32 %v2200_v56, 16  ;;  %v837_v10 = vshrl.u32 %v2186_v59, 16  ;;  %v2191_v45 = vld [vmem:[%s2626_s26 + $0x20] sm:$0x1] }
  0x35   : > { %535 = vrot.lane.b32.xlu1 %v2143_v2, %s2560_s29  ;;  %v418_v11 = vsel %vm2682_vm5, %v413_v3, %v417_v49  ;;  %v939_v12 = vor.u32 %v938_v4, %v935_v63  ;;  %v840_v14 = vshll.u32 %v2186_v59, 16  ;;  %v846_v15 = vshll.u32 %v2187_v1, 16 }
  0x36   : > { %v423_v17 = vrot.slane %v422_v6, 4  ;;  %v948_v18 = vrot.slane %v946_v8, 4  ;;  %v954_v19 = vrot.slane %v952_v9, 5  ;;  %v839_v20 = vrot.slane %v837_v10, 4  ;;  %v2218_v6 = vld [vmem:[%s2626_s26 + $0xc] sm:$0xe] }
  0x37   : > { %v940_v21 = vrot.slane %v939_v12, 4  ;;  %v842_v22 = vrot.slane %v840_v14, 5  ;;  %v848_v23 = vrot.slane %v846_v15, 5  ;;  %v850_v24 = vshrl.u32 %v2187_v1, 16  ;;  %v2219_v12 = vld [vmem:[%s2626_s26 + $0x10] sm:$0xf] }
  0x38   : > { %v428_v25 = vsel %vm2682_vm5, %v423_v17, %v427_v62  ;;  %v949_v26 = vor.u32 %v948_v18, %v944_v5  ;;  %v856_v27 = vshll.u32 %v2188_v13, 16  ;;  %v957_v30 = vshrl.u32 %v2201_v16, 16  ;;  %v2220_v17 = vld [vmem:[%s2626_s26 + $0x14] sm:$0x1] }
  0x39   : > { %v2142_v31 = vcombine.low %v418_v11, %v428_v25  ;;  %v945_v32 = vsel %vm2682_vm5, %v940_v21, %v944_v5  ;;  %v843_v33 = vor.u32 %v842_v22, %v839_v20  ;;  %v852_v34 = vrot.slane %v850_v24, 4  ;;  %v2232_v5 = vld [vmem:[%s2626_s26 + $0x44] sm:$0x1]  ;;  %v2233_v22 = vld [vmem:[%s2626_s26 + $0x48] sm:$0xe] }
  0x3a   : > { %v950_v36 = vrot.slane %v949_v26, 4  ;;  %v858_v37 = vrot.slane %v856_v27, 5  ;;  %v959_v38 = vrot.slane %v957_v30, 4  ;;  %v960_v39 = vshll.u32 %v2201_v16, 16  ;;  %v2234_v27 = vld [vmem:[%s2626_s26 + $0x4c] sm:$0xf] }
  0x3b   : > { %533 = vrot.lane.b32.xlu0 %v2142_v31, %s2560_s29  ;;  %v844_v41 = vrot.slane %v843_v33, 4  ;;  %v853_v42 = vor.u32 %v852_v34, %v848_v23  ;;  %v966_v43 = vshll.u32 %v2202_v28, 16  ;;  %v970_v44 = vshrl.u32 %v2202_v28, 16  ;;  %v2235_v28 = vld [vmem:[%s2626_s26 + $0x50] sm:$0x1] }
  0x3c   : > { %v955_v46 = vsel %vm2682_vm5, %v950_v36, %v954_v19  ;;  %v962_v47 = vrot.slane %v960_v39, 5  ;;  %v976_v48 = vshll.u32 %v2203_v29, 16  ;;  %v861_v49 = vshrl.u32 %v2189_v35, 16  ;;  %v2221_v33 = vld [vmem:[%s2626_s26 + $0x18] sm:$0xe] }
  0x3d   : > { %v2214_v51 = vcombine.low %v945_v32, %v955_v46  ;;  %v849_v52 = vsel %vm2682_vm5, %v844_v41, %v848_v23  ;;  %v854_v53 = vrot.slane %v853_v42, 4  ;;  %v968_v54 = vrot.slane %v966_v43, 5  ;;  %v2223_v39 = vld [vmem:[%s2626_s26 + $0x20] sm:$0x1] }
  0x3e   : > { %v963_v56 = vor.u32 %v962_v47, %v959_v38  ;;  %v972_v57 = vrot.slane %v970_v44, 4  ;;  %v978_v58 = vrot.slane %v976_v48, 5  ;;  %v863_v59 = vrot.slane %v861_v49, 4  ;;  %v2222_v38 = vld [vmem:[%s2626_s26 + $0x1c] sm:$0xf] }
  0x3f   : > { %1060 = vrot.lane.b32.xlu1 %v2214_v51, %s2561_s30  ;;  %v859_v60 = vsel %vm2682_vm5, %v854_v53, %v858_v37  ;;  %v864_v61 = vshll.u32 %v2189_v35, 16  ;;  %v870_v62 = vshll.u32 %v2190_v40, 16  ;;  %v874_v63 = vshrl.u32 %v2190_v40, 16  ;;  %v2294_v44 = vld [vmem:[%s2626_s26 + $0x48] sm:$0xf] }
  0x40   : > { %v2210_v1 = vcombine.low %v849_v52, %v859_v60  ;;  %v964_v2 = vrot.slane %v963_v56, 4  ;;  %v973_v3 = vor.u32 %v972_v57, %v968_v54  ;;  %v880_v4 = vshll.u32 %v2191_v45, 16  ;;  %v2295_v45 = vld [vmem:[%s2626_s26 + $0x4c] sm:$0xf] }
  0x41   : > { %v866_v8 = vrot.slane %v864_v61, 5  ;;  %v872_v9 = vrot.slane %v870_v62, 5  ;;  %v876_v10 = vrot.slane %v874_v63, 4  ;;  %v2246_v11 = vrot.slane %v2230_v50, 9 }
  0x42   : > { %1052 = vrot.lane.b32.xlu0 %v2210_v1, %s2561_s30  ;;  %v969_v13 = vsel %vm2682_vm5, %v964_v2, %v968_v54  ;;  %v974_v14 = vrot.slane %v973_v3, 4  ;;  %v882_v15 = vrot.slane %v880_v4, 5  ;;  %v1163_v16 = vrot.slane %v2231_v55, 5  ;;  %v2296_v54 = vld [vmem:[%s2626_s26 + $0x50] sm:$0x1] }
  0x43   : > { %v867_v18 = vor.u32 %v866_v8, %v863_v59  ;;  %v877_v19 = vor.u32 %v876_v10, %v872_v9  ;;  %v1166_v20 = vrot.slane %v2232_v5, 5  ;;  %v2242_v21 = vrot.slane %v2218_v6, 9  ;;  %v2282_v59 = vld [vmem:[%s2626_s26 + $0x18] sm:$0xf]  ;;  %v2283_v1 = vld [vmem:[%s2626_s26 + $0x1c] sm:$0xf] }
  0x44   : > { %v979_v23 = vsel %vm2682_vm5, %v974_v14, %v978_v58  ;;  %v1164_v24 = vsel %vm2628_vm2, %v2246_v11, %v1163_v16  ;;  %v1165_v25 = vrot.slane %v1163_v16, 4  ;;  %v1135_v26 = vrot.slane %v2219_v12, 5  ;;  %v2284_v10 = vld [vmem:[%s2626_s26 + $0x20] sm:$0x1]  ;;  %v2297_v16 = vld [vmem:[%s2626_s26 + $0x54] sm:$0xf] }
  0x45   : > { %v2215_v29 = vcombine.low %v969_v13, %v979_v23  ;;  %v868_v30 = vrot.slane %v867_v18, 4  ;;  %v878_v31 = vrot.slane %v877_v19, 4  ;;  %v1138_v32 = vrot.slane %v2220_v17, 5  ;;  %v2495_v17 = vld [vmem:[%s2626_s26 + $0x48] sm:$0xff]  }
  0x46   : > { %v1167_v34 = vsel %vm2628_vm2, %v1165_v25, %v1166_v20  ;;  %v1136_v35 = vsel %vm2628_vm2, %v2242_v21, %v1135_v26  ;;  %v1137_v36 = vrot.slane %v1135_v26, 4  ;;  %v2247_v37 = vrot.slane %v2233_v22, 9  ;;  %v2298_v22 = vld [vmem:[%s2626_s26 + $0x58] sm:$0xf] }
  0x47   : > { %1062 = vrot.lane.b32.xlu1 %v2215_v29, %s2561_s30  ;;  %v873_v40 = vsel %vm2682_vm5, %v868_v30, %v872_v9  ;;  %v883_v41 = vsel %vm2682_vm5, %v878_v31, %v882_v15  ;;  %v2254_v42 = vcombine.low %v1164_v24, %v1167_v34  ;;  %v1170_v43 = vrot.slane %v2234_v27, 5  ;;  %v2496_v27 = vld [vmem:[%s2626_s26 + $0x18] sm:$0xff]  }
  0x48   : > { %v2211_v46 = vcombine.low %v873_v40, %v883_v41  ;;  %v1139_v47 = vsel %vm2628_vm2, %v1137_v36, %v1138_v32  ;;  %v1173_v48 = vrot.slane %v2235_v28, 5  ;;  %v2243_v49 = vrot.slane %v2221_v33, 9 }
  0x49   : > { %v2250_v50 = vcombine.low %v1136_v35, %v1139_v47  ;;  %v1171_v51 = vsel %vm2628_vm2, %v2247_v37, %v1170_v43  ;;  %v1172_v52 = vrot.slane %v1170_v43, 4  ;;  %v1142_v53 = vrot.slane %v2222_v38, 5  ;;  %v2299_v35 = vld [vmem:[%s2626_s26 + $0x5c] sm:$0x1]  ;;  %v2285_v37 = vld [vmem:[%s2626_s26 + $0x24] sm:$0xf] }
  0x4a   : > { %1054 = vrot.lane.b32.xlu0 %v2211_v46, %s2561_s30  ;;  %v1145_v55 = vrot.slane %v2223_v39, 5  ;;  %v1457_v56 = vshrl.u32 %v2294_v44, 16  ;;  %v1460_v57 = vshll.u32 %v2294_v44, 16  ;;  %v1466_v58 = vshll.u32 %v2295_v45, 16  ;;  %v2497_v38 = vld [vmem:[%s2626_s26 + $0x54] sm:$0xff]  }
  0x4b   : > { %1221 = vrot.lane.b32.xlu1 %v2254_v42, %s2562_s4  ;;  %v1174_v60 = vsel %vm2628_vm2, %v1172_v52, %v1173_v48  ;;  %v1143_v61 = vsel %vm2628_vm2, %v2243_v49, %v1142_v53  ;;  %v1144_v62 = vrot.slane %v1142_v53, 4  ;;  %v1470_v63 = vshrl.u32 %v2295_v45, 16  ;;  %v2286_v43 = vld [vmem:[%s2626_s26 + $0x28] sm:$0xf]  ;;  %v2287_v48 = vld [vmem:[%s2626_s26 + $0x2c] sm:$0x1] }
  0x4c   : > { %v2255_v2 = vcombine.low %v1171_v51, %v1174_v60  ;;  %v1459_v3 = vrot.slane %v1457_v56, 4  ;;  %v1462_v4 = vrot.slane %v1460_v57, 5  ;;  %v1468_v5 = vrot.slane %v1466_v58, 5  ;;  %v2326_v53 = vld [vmem:[%s2626_s26 + $0x48] sm:$0xe] }
  0x4d   : > { %v1146_v6 = vsel %vm2628_vm2, %v1144_v62, %v1145_v55  ;;  %v1472_v8 = vrot.slane %v1470_v63, 4  ;;  %v1476_v9 = vshll.u32 %v2296_v54, 16  ;;  %v1361_v11 = vshrl.u32 %v2282_v59, 16  ;;  %v2498_v54 = vld [vmem:[%s2626_s26 + $0x24] sm:$0xff]  }
  0x4e   : > { %1213 = vrot.lane.b32.xlu0 %v2250_v50, %s2562_s4  ;;  %v2251_v12 = vcombine.low %v1143_v61, %v1146_v6  ;;  %v1463_v13 = vor.u32 %v1462_v4, %v1459_v3  ;;  %v1364_v14 = vshll.u32 %v2282_v59, 16  ;;  %v1370_v15 = vshll.u32 %v2283_v1, 16  ;;  %v2327_v59 = vld [vmem:[%s2626_s26 + $0x4c] sm:$0xf]  ;;  %v2314_v6 = vld [vmem:[%s2626_s26 + $0x18] sm:$0xe] }
  0x4f   : > { %1223 = vrot.lane.b32.xlu1 %v2255_v2, %s2562_s4  ;;  %v1473_v18 = vor.u32 %v1472_v8, %v1468_v5  ;;  %v1478_v19 = vrot.slane %v1476_v9, 5  ;;  %v1363_v20 = vrot.slane %v1361_v11, 4  ;;  %v1374_v21 = vshrl.u32 %v2283_v1, 16  ;;  %v2328_v1 = vld [vmem:[%s2626_s26 + $0x50] sm:$0x1] }
  0x50   : > { %v1464_v23 = vrot.slane %v1463_v13, 4  ;;  %v1366_v24 = vrot.slane %v1364_v14, 5  ;;  %v1372_v25 = vrot.slane %v1370_v15, 5  ;;  %v1380_v26 = vshll.u32 %v2284_v10, 16  ;;  %v2315_v8 = vld [vmem:[%s2626_s26 + $0x1c] sm:$0xf] }
  0x51   : > { %v1474_v28 = vrot.slane %v1473_v18, 4  ;;  %v1376_v29 = vrot.slane %v1374_v21, 4  ;;  %v1481_v30 = vshrl.u32 %v2297_v16, 16  ;;  %v1484_v31 = vshll.u32 %v2297_v16, 16 }
  0x52   : > { %1215 = vrot.lane.b32.xlu0 %v2251_v12, %s2562_s4  ;;  %v1469_v32 = vsel %vm2682_vm5, %v1464_v23, %v1468_v5  ;;  %v1367_v33 = vor.u32 %v1366_v24, %v1363_v20  ;;  %v1382_v34 = vrot.slane %v1380_v26, 5  ;;  %v1490_v36 = vshll.u32 %v2298_v22, 16 }
  0x53   : > { %1311 = vrot.lane.b32.xlu1 %v2495_v17, %s2563_s5  ;;  %v1479_v39 = vsel %vm2682_vm5, %v1474_v28, %v1478_v19  ;;  %v1377_v40 = vor.u32 %v1376_v29, %v1372_v25  ;;  %v1483_v41 = vrot.slane %v1481_v30, 4  ;;  %v1486_v42 = vrot.slane %v1484_v31, 5  ;;  %v2316_v17 = vld [vmem:[%s2626_s26 + $0x20] sm:$0x1] }
  0x54   : > { %v2310_v44 = vcombine.low %v1469_v32, %v1479_v39  ;;  %v1368_v45 = vrot.slane %v1367_v33, 4  ;;  %v1492_v46 = vrot.slane %v1490_v36, 5  ;;  %v1494_v47 = vshrl.u32 %v2298_v22, 16  ;;  %v300_v22 = vld [vmem:[%s2626_s26 + $0x48] sm:$0xf] }
  0x55   : > { %v1378_v49 = vrot.slane %v1377_v40, 4  ;;  %v1487_v50 = vor.u32 %v1486_v42, %v1483_v41  ;;  %v1500_v51 = vshll.u32 %v2299_v35, 16  ;;  %v1385_v52 = vshrl.u32 %v2285_v37, 16  ;;  %v302_v32 = vld [vmem:[%s2626_s26 + $0x50] sm:$0x1] }
  0x56   : > { %1303 = vrot.lane.b32.xlu0 %v2496_v27, %s2563_s5  ;;  %v1373_v55 = vsel %vm2682_vm5, %v1368_v45, %v1372_v25  ;;  %v1496_v56 = vrot.slane %v1494_v47, 4  ;;  %v1388_v57 = vshll.u32 %v2285_v37, 16  ;;  %v1394_v58 = vshll.u32 %v2286_v43, 16  ;;  %v301_v27 = vld [vmem:[%s2626_s26 + $0x4c] sm:$0xf] }
  0x57   : > { %1313 = vrot.lane.b32.xlu1 %v2497_v38, %s2563_s5  ;;  %v1383_v60 = vsel %vm2682_vm5, %v1378_v49, %v1382_v34  ;;  %v1488_v61 = vrot.slane %v1487_v50, 4  ;;  %v1502_v62 = vrot.slane %v1500_v51, 5  ;;  %v1387_v63 = vrot.slane %v1385_v52, 4  ;;  %v288_v37 = vld [vmem:[%s2626_s26 + $0x18] sm:$0xf] }
  0x58   : > { %v2306_v2 = vcombine.low %v1373_v55, %v1383_v60  ;;  %v1497_v3 = vor.u32 %v1496_v56, %v1492_v46  ;;  %v1390_v4 = vrot.slane %v1388_v57, 5  ;;  %v1396_v5 = vrot.slane %v1394_v58, 5  ;;  %v289_v38 = vld [vmem:[%s2626_s26 + $0x1c] sm:$0xf]  ;;  %v2513_v60 = vld [vmem:[%s3246_s1] sm:$0xff]  }
  0x59   : > { %v1493_v9 = vsel %vm2682_vm5, %v1488_v61, %v1492_v46  ;;  %v1398_v10 = vshrl.u32 %v2286_v43, 16  ;;  %v1404_v11 = vshll.u32 %v2287_v48, 16  ;;  %v2342_v12 = vrot.slane %v2326_v53, 9  ;;  %v290_v43 = vld [vmem:[%s2626_s26 + $0x20] sm:$0x1]  ;;  %2411 = vmatprep.subr.bf16.mxu0 %v2513_v60  ;;  %2433 = vmatprep.subr.bf16.mxu1 %v2513_v60 }
  0x5a   : > { %1305 = vrot.lane.b32.xlu0 %v2498_v54, %s2563_s5  ;;  %v1498_v13 = vrot.slane %v1497_v3, 4  ;;  %v1391_v14 = vor.u32 %v1390_v4, %v1387_v63  ;;  %v1687_v15 = vrot.slane %v2327_v59, 5  ;;  %v1690_v16 = vrot.slane %v2328_v1, 5  ;;  %v2329_v48 = vld [vmem:[%s2626_s26 + $0x54] sm:$0xe]  ;;  %2412 = vmatpush3.bf16.msra.mxu0 %v2513_v60 }
  0x5b   : > { %1584 = vrot.lane.b32.xlu1 %v2310_v44, %s2564_s6  ;;  %v1400_v18 = vrot.slane %v1398_v10, 4  ;;  %v1406_v19 = vrot.slane %v1404_v11, 5  ;;  %v2338_v20 = vrot.slane %v2314_v6, 9  ;;  %v1659_v21 = vrot.slane %v2315_v8, 5  ;;  %v2330_v53 = vld [vmem:[%s2626_s26 + $0x58] sm:$0xf]  ;;  %2436 = vmatpush3.bf16.msra.mxu1 %v2513_v60 }
  0x5c   : > { %v1503_v23 = vsel %vm2682_vm5, %v1498_v13, %v1502_v62  ;;  %v1392_v24 = vrot.slane %v1391_v14, 4  ;;  %v1688_v25 = vsel %vm2628_vm2, %v2342_v12, %v1687_v15  ;;  %v1689_v26 = vrot.slane %v1687_v15, 4  ;;  %v2331_v54 = vld [vmem:[%s2626_s26 + $0x5c] sm:$0x1]  ;;  %v2317_v59 = vld [vmem:[%s2626_s26 + $0x24] sm:$0xe] }
  0x5d   : > { %v2311_v28 = vcombine.low %v1493_v9, %v1503_v23  ;;  %v1401_v29 = vor.u32 %v1400_v18, %v1396_v5  ;;  %v2819_v30 = vsel %vm2628_vm2, %v2338_v20, %v1659_v21  ;;  %v1661_v31 = vrot.slane %v1659_v21, 4  ;;  %v2319_v8 = vld [vmem:[%s2626_s26 + $0x2c] sm:$0x1]  ;;  %v303_v21 = vld [vmem:[%s2626_s26 + $0x54] sm:$0xf] }
  0x5e   : > { %1576 = vrot.lane.b32.xlu0 %v2306_v2, %s2564_s6  ;;  %v1397_v33 = vsel %vm2682_vm5, %v1392_v24, %v1396_v5  ;;  %v1691_v34 = vsel %vm2628_vm2, %v1689_v26, %v1690_v16  ;;  %v1662_v35 = vrot.slane %v2316_v17, 5  ;;  %v454_v36 = vshrl.u32 %v300_v22, 16  ;;  %v2318_v2 = vld [vmem:[%s2626_s26 + $0x28] sm:$0xf] }
  0x5f   : > { %1586 = vrot.lane.b32.xlu1 %v2311_v28, %s2564_s6  ;;  %v1402_v39 = vrot.slane %v1401_v29, 4  ;;  %v2350_v40 = vcombine.low %v1688_v25, %v1691_v34  ;;  %v457_v41 = vshll.u32 %v300_v22, 16  ;;  %v463_v42 = vshll.u32 %v301_v27, 16  ;;  %v2514_v22 = vld [vmem:[%s3246_s1 + $0x8] sm:$0xff]  }
  0x60   : > { %v1663_v44 = vsel %vm2628_vm2, %v1661_v31, %v1662_v35  ;;  %v456_v45 = vrot.slane %v454_v36, 4  ;;  %v467_v46 = vshrl.u32 %v301_v27, 16  ;;  %v473_v47 = vshll.u32 %v302_v32, 16  ;;  %v304_v31 = vld [vmem:[%s2626_s26 + $0x58] sm:$0xf]  ;;  %2413 = vmatprep.subr.bf16.mxu0 %v2514_v22  ;;  %2434 = vmatprep.subr.bf16.mxu1 %v2514_v22 }
  0x61   : > { %v1407_v49 = vsel %vm2682_vm5, %v1402_v39, %v1406_v19  ;;  %v2346_v50 = vcombine.low %v2819_v30, %v1663_v44  ;;  %v459_v51 = vrot.slane %v457_v41, 5  ;;  %v465_v52 = vrot.slane %v463_v42, 5  ;;  %v305_v35 = vld [vmem:[%s2626_s26 + $0x5c] sm:$0x1]  ;;  %2414 = vmatpush3.bf16.msra.mxu0 %v2514_v22  ;;  %2437 = vmatpush3.bf16.msra.mxu1 %v2514_v22  ;;  %v291_v41 = vld [vmem:[%s2626_s26 + $0x24] sm:$0xf] }
  0x62   : > { %v2307_v55 = vcombine.low %v1397_v33, %v1407_v49  ;;  %v469_v56 = vrot.slane %v467_v46, 4  ;;  %v475_v57 = vrot.slane %v473_v47, 5  ;;  %v358_v58 = vshrl.u32 %v288_v37, 16  ;;  %v292_v42 = vld [vmem:[%s2626_s26 + $0x28] sm:$0xf] }
  0x63   : > { %1745 = vrot.lane.b32.xlu1 %v2350_v40, %s2565_s9  ;;  %v460_v61 = vor.u32 %v459_v51, %v456_v45  ;;  %v361_v62 = vshll.u32 %v288_v37, 16  ;;  %v367_v63 = vshll.u32 %v289_v38, 16  ;;  %v371_v1 = vshrl.u32 %v289_v38, 16  ;;  %v293_v47 = vld [vmem:[%s2626_s26 + $0x2c] sm:$0x1] }
  0x64   : > { %1578 = vrot.lane.b32.xlu0 %v2307_v55, %s2564_s6  ;;  %v470_v3 = vor.u32 %v469_v56, %v465_v52  ;;  %v360_v4 = vrot.slane %v358_v58, 4  ;;  %v377_v5 = vshll.u32 %v290_v43, 16  ;;  %v2343_v6 = vrot.slane %v2329_v48, 9  ;;  %v576_v48 = vld [vmem:[%s2626_s26 + $0x48] sm:$0xe] }
  0x65   : > { %v461_v9 = vrot.slane %v460_v61, 4  ;;  %v363_v10 = vrot.slane %v361_v62, 5  ;;  %v369_v11 = vrot.slane %v367_v63, 5  ;;  %v373_v12 = vrot.slane %v371_v1, 4  ;;  %v578_v58 = vld [vmem:[%s2626_s26 + $0x50] sm:$0x1] }
  0x66   : > { %v471_v13 = vrot.slane %v470_v3, 4  ;;  %v379_v14 = vrot.slane %v377_v5, 5  ;;  %v1694_v15 = vrot.slane %v2330_v53, 5  ;;  %v1697_v16 = vrot.slane %v2331_v54, 5  ;;  %v577_v53 = vld [vmem:[%s2626_s26 + $0x4c] sm:$0xf] }
  0x67   : > { %v466_v17 = vsel %vm2682_vm5, %v461_v9, %v465_v52  ;;  %v364_v18 = vor.u32 %v363_v10, %v360_v4  ;;  %v374_v19 = vor.u32 %v373_v12, %v369_v11  ;;  %v2339_v20 = vrot.slane %v2317_v59, 9  ;;  %v564_v63 = vld [vmem:[%s2626_s26 + $0x18] sm:$0xe]  ;;  %v565_v5 = vld [vmem:[%s2626_s26 + $0x1c] sm:$0xf] }
  0x68   : > { %1737 = vrot.lane.b32.xlu0 %v2346_v50, %s2565_s9  ;;  %v476_v23 = vsel %vm2682_vm5, %v471_v13, %v475_v57  ;;  %v1695_v24 = vsel %vm2628_vm2, %v2343_v6, %v1694_v15  ;;  %v1696_v25 = vrot.slane %v1694_v15, 4  ;;  %v1666_v26 = vrot.slane %v2318_v2, 5  ;;  %v581_v22 = vld [vmem:[%s2626_s26 + $0x5c] sm:$0x1] }
  0x69   : > { %v2144_v27 = vcombine.low %v466_v17, %v476_v23  ;;  %v365_v28 = vrot.slane %v364_v18, 4  ;;  %v375_v29 = vrot.slane %v374_v19, 4  ;;  %v1669_v30 = vrot.slane %v2319_v8, 5 }
  0x6a   : > { %v1698_v32 = vsel %vm2628_vm2, %v1696_v25, %v1697_v16  ;;  %v1667_v33 = vsel %vm2628_vm2, %v2339_v20, %v1666_v26  ;;  %v1668_v34 = vrot.slane %v1666_v26, 4  ;;  %v478_v36 = vshrl.u32 %v303_v21, 16  ;;  %v579_v16 = vld [vmem:[%s2626_s26 + $0x54] sm:$0xe] }
  0x6b   : > { %537 = vrot.lane.b32.xlu1 %v2144_v27, %s2560_s29  ;;  %v370_v37 = vsel %vm2682_vm5, %v365_v28, %v369_v11  ;;  %v380_v38 = vsel %vm2682_vm5, %v375_v29, %v379_v14  ;;  %v2351_v39 = vcombine.low %v1695_v24, %v1698_v32  ;;  %v481_v40 = vshll.u32 %v303_v21, 16  ;;  %v566_v11 = vld [vmem:[%s2626_s26 + $0x20] sm:$0x1]  ;;  %v580_v21 = vld [vmem:[%s2626_s26 + $0x58] sm:$0xf] }
  0x6c   : > { %v2140_v43 = vcombine.low %v370_v37, %v380_v38  ;;  %v1670_v44 = vsel %vm2628_vm2, %v1668_v34, %v1669_v30  ;;  %v480_v45 = vrot.slane %v478_v36, 4  ;;  %v487_v46 = vshll.u32 %v304_v31, 16  ;;  %v567_v27 = vld [vmem:[%s2626_s26 + $0x24] sm:$0xe]  ;;  %v568_v32 = vld [vmem:[%s2626_s26 + $0x28] sm:$0xf] }
  0x6d   : > { %v2347_v49 = vcombine.low %v1667_v33, %v1670_v44  ;;  %v483_v50 = vrot.slane %v481_v40, 5  ;;  %v491_v51 = vshrl.u32 %v304_v31, 16  ;;  %v497_v52 = vshll.u32 %v305_v35, 16  ;;  %v569_v37 = vld [vmem:[%s2626_s26 + $0x2c] sm:$0x1] }
  0x6e   : > { %529 = vrot.lane.b32.xlu0 %v2140_v43, %s2560_s29  ;;  %v489_v54 = vrot.slane %v487_v46, 5  ;;  %v382_v55 = vshrl.u32 %v291_v41, 16  ;;  %v385_v56 = vshll.u32 %v291_v41, 16  ;;  %v391_v57 = vshll.u32 %v292_v42, 16  ;;  %v2204_v38 = vld [vmem:[%s2626_s26 + $0x54] sm:$0xf] }
  0x6f   : > { %1747 = vrot.lane.b32.xlu1 %v2351_v39, %s2565_s9  ;;  %v484_v59 = vor.u32 %v483_v50, %v480_v45  ;;  %v493_v60 = vrot.slane %v491_v51, 4  ;;  %v499_v61 = vrot.slane %v497_v52, 5  ;;  %v395_v62 = vshrl.u32 %v292_v42, 16  ;;  %v2205_v39 = vld [vmem:[%s2626_s26 + $0x58] sm:$0xf] }
  0x70   : > { %v384_v1 = vrot.slane %v382_v55, 4  ;;  %v387_v2 = vrot.slane %v385_v56, 5  ;;  %v393_v3 = vrot.slane %v391_v57, 5  ;;  %v401_v4 = vshll.u32 %v293_v47, 16  ;;  %v2206_v44 = vld [vmem:[%s2626_s26 + $0x5c] sm:$0x1] }
  0x71   : > { %v485_v6 = vrot.slane %v484_v59, 4  ;;  %v494_v8 = vor.u32 %v493_v60, %v489_v54  ;;  %v397_v9 = vrot.slane %v395_v62, 4  ;;  %v2152_v10 = vrot.slane %v576_v48, 9 }
  0x72   : > { %1739 = vrot.lane.b32.xlu0 %v2347_v49, %s2565_s9  ;;  %v388_v12 = vor.u32 %v387_v2, %v384_v1  ;;  %v403_v13 = vrot.slane %v401_v4, 5  ;;  %v653_v14 = vrot.slane %v577_v53, 5  ;;  %v656_v15 = vrot.slane %v578_v58, 5  ;;  %v2192_v53 = vld [vmem:[%s2626_s26 + $0x24] sm:$0xf] }
  0x73   : > { %v490_v17 = vsel %vm2682_vm5, %v485_v6, %v489_v54  ;;  %v495_v18 = vrot.slane %v494_v8, 4  ;;  %v398_v19 = vor.u32 %v397_v9, %v393_v3  ;;  %v2148_v20 = vrot.slane %v564_v63, 9  ;;  %v2193_v54 = vld [vmem:[%s2626_s26 + $0x28] sm:$0xf]  ;;  %v2194_v4 = vld [vmem:[%s2626_s26 + $0x2c] sm:$0x1] }
  0x74   : > { %v389_v23 = vrot.slane %v388_v12, 4  ;;  %v654_v24 = vsel %vm2628_vm2, %v2152_v10, %v653_v14  ;;  %v655_v25 = vrot.slane %v653_v14, 4  ;;  %v625_v26 = vrot.slane %v565_v5, 5  ;;  %v2207_v10 = vld [vmem:[%s2626_s26 + $0x60] sm:$0xf] }
  0x75   : > { %v500_v28 = vsel %vm2682_vm5, %v495_v18, %v499_v61  ;;  %v399_v29 = vrot.slane %v398_v19, 4  ;;  %v628_v30 = vrot.slane %v566_v11, 5  ;;  %v2153_v31 = vrot.slane %v579_v16, 9  ;;  %v2208_v19 = vld [vmem:[%s2626_s26 + $0x64] sm:$0xf] }
  0x76   : > { %v2145_v33 = vcombine.low %v490_v17, %v500_v28  ;;  %v394_v34 = vsel %vm2682_vm5, %v389_v23, %v393_v3  ;;  %v657_v35 = vsel %vm2628_vm2, %v655_v25, %v656_v15  ;;  %v626_v36 = vsel %vm2628_vm2, %v2148_v20, %v625_v26  ;;  %v2499_v20 = vld [vmem:[%s2626_s26 + $0x54] sm:$0xff]  }
  0x77   : > { %v404_v40 = vsel %vm2682_vm5, %v399_v29, %v403_v13  ;;  %v2160_v41 = vcombine.low %v654_v24, %v657_v35  ;;  %v627_v42 = vrot.slane %v625_v26, 4  ;;  %v660_v43 = vrot.slane %v580_v21, 5  ;;  %v2209_v29 = vld [vmem:[%s2626_s26 + $0x68] sm:$0x1]  ;;  %v2195_v35 = vld [vmem:[%s2626_s26 + $0x30] sm:$0xf] }
  0x78   : > { %539 = vrot.lane.b32.xlu1 %v2145_v33, %s2560_s29  ;;  %v2141_v45 = vcombine.low %v394_v34, %v404_v40  ;;  %v663_v46 = vrot.slane %v581_v22, 5  ;;  %v2149_v47 = vrot.slane %v567_v27, 9  ;;  %v632_v48 = vrot.slane %v568_v32, 5  ;;  %v2196_v40 = vld [vmem:[%s2626_s26 + $0x34] sm:$0xf] }
  0x79   : > { %v629_v49 = vsel %vm2628_vm2, %v627_v42, %v628_v30  ;;  %v661_v50 = vsel %vm2628_vm2, %v2153_v31, %v660_v43  ;;  %v662_v51 = vrot.slane %v660_v43, 4  ;;  %v635_v52 = vrot.slane %v569_v37, 5  ;;  %v2500_v30 = vld [vmem:[%s2626_s26 + $0x24] sm:$0xff]   ;;  %v2502_v42 = vld [vmem:[%s2626_s26 + $0x30] sm:$0xff]  }
  0x7a   : > { %531 = vrot.lane.b32.xlu0 %v2141_v45, %s2560_s29  ;;  %v2156_v55 = vcombine.low %v626_v36, %v629_v49  ;;  %v633_v56 = vsel %vm2628_vm2, %v2149_v47, %v632_v48  ;;  %v634_v57 = vrot.slane %v632_v48, 4  ;;  %v981_v58 = vshrl.u32 %v2204_v38, 16 }
  0x7b   : > { %v664_v59 = vsel %vm2628_vm2, %v662_v51, %v663_v46  ;;  %v984_v60 = vshll.u32 %v2204_v38, 16  ;;  %v990_v61 = vshll.u32 %v2205_v39, 16  ;;  %v994_v62 = vshrl.u32 %v2205_v39, 16 }
  0x7c   : > { %701 = vrot.lane.b32.xlu1 %v2160_v41, %s2559_s28  ;;  %v2161_v63 = vcombine.low %v661_v50, %v664_v59  ;;  %v636_v1 = vsel %vm2628_vm2, %v634_v57, %v635_v52  ;;  %v983_v2 = vrot.slane %v981_v58, 4  ;;  %v1000_v3 = vshll.u32 %v2206_v44, 16  ;;  %v2501_v41 = vld [vmem:[%s2626_s26 + $0x60] sm:$0xff]   ;;  %v2197_v50 = vld [vmem:[%s2626_s26 + $0x38] sm:$0x1] }
  0x7d   : > { %v2157_v5 = vcombine.low %v633_v56, %v636_v1  ;;  %v986_v6 = vrot.slane %v984_v60, 5  ;;  %v992_v8 = vrot.slane %v990_v61, 5  ;;  %v996_v9 = vrot.slane %v994_v62, 4  ;;  %v2236_v56 = vld [vmem:[%s2626_s26 + $0x54] sm:$0xe] }
  0x7e   : > { %693 = vrot.lane.b32.xlu0 %v2156_v55, %s2559_s28  ;;  %v1002_v11 = vrot.slane %v1000_v3, 5  ;;  %v885_v12 = vshrl.u32 %v2192_v53, 16  ;;  %v888_v13 = vshll.u32 %v2192_v53, 16  ;;  %v894_v14 = vshll.u32 %v2193_v54, 16  ;;  %v2237_v57 = vld [vmem:[%s2626_s26 + $0x58] sm:$0xf] }
  0x7f   : > { %v987_v15 = vor.u32 %v986_v6, %v983_v2  ;;  %v997_v16 = vor.u32 %v996_v9, %v992_v8  ;;  %v898_v17 = vshrl.u32 %v2193_v54, 16  ;;  %v904_v18 = vshll.u32 %v2194_v4, 16  ;;  %v2238_v62 = vld [vmem:[%s2626_s26 + $0x5c] sm:$0x1]  ;;  %v2226_v6 = vld [vmem:[%s2626_s26 + $0x2c] sm:$0x1] }
  0x80   : > { %703 = vrot.lane.b32.xlu1 %v2161_v63, %s2559_s28  ;;  %v887_v21 = vrot.slane %v885_v12, 4  ;;  %v890_v22 = vrot.slane %v888_v13, 5  ;;  %v896_v23 = vrot.slane %v894_v14, 5  ;;  %v1005_v24 = vshrl.u32 %v2207_v10, 16  ;;  %v2224_v63 = vld [vmem:[%s2626_s26 + $0x24] sm:$0xe] }
  0x81   : > { %v988_v25 = vrot.slane %v987_v15, 4  ;;  %v998_v26 = vrot.slane %v997_v16, 4  ;;  %v900_v27 = vrot.slane %v898_v17, 4  ;;  %v906_v28 = vrot.slane %v904_v18, 5  ;;  %v2239_v12 = vld [vmem:[%s2626_s26 + $0x60] sm:$0xe] }
  0x82   : > { %695 = vrot.lane.b32.xlu0 %v2157_v5, %s2559_s28  ;;  %v891_v31 = vor.u32 %v890_v22, %v887_v21  ;;  %v1007_v32 = vrot.slane %v1005_v24, 4  ;;  %v1008_v33 = vshll.u32 %v2207_v10, 16  ;;  %v1014_v34 = vshll.u32 %v2208_v19, 16  ;;  %v2225_v5 = vld [vmem:[%s2626_s26 + $0x28] sm:$0xf] }
  0x83   : > { %v993_v36 = vsel %vm2682_vm5, %v988_v25, %v992_v8  ;;  %v1003_v37 = vsel %vm2682_vm5, %v998_v26, %v1002_v11  ;;  %v901_v38 = vor.u32 %v900_v27, %v896_v23  ;;  %v1018_v39 = vshrl.u32 %v2208_v19, 16  ;;  %v2240_v17 = vld [vmem:[%s2626_s26 + $0x64] sm:$0xf]  ;;  %v2241_v18 = vld [vmem:[%s2626_s26 + $0x68] sm:$0x1] }
  0x84   : > { %791 = vrot.lane.b32.xlu1 %v2499_v20, %s2558_s27  ;;  %v2216_v43 = vcombine.low %v993_v36, %v1003_v37  ;;  %v892_v44 = vrot.slane %v891_v31, 4  ;;  %v1010_v45 = vrot.slane %v1008_v33, 5  ;;  %v1016_v46 = vrot.slane %v1014_v34, 5 }
  0x85   : > { %v902_v47 = vrot.slane %v901_v38, 4  ;;  %v1020_v48 = vrot.slane %v1018_v39, 4  ;;  %v1024_v49 = vshll.u32 %v2209_v29, 16  ;;  %v909_v51 = vshrl.u32 %v2195_v35, 16  ;;  %v2228_v29 = vld [vmem:[%s2626_s26 + $0x34] sm:$0xf] }
  0x86   : > { %783 = vrot.lane.b32.xlu0 %v2500_v30, %s2558_s27  ;;  %v897_v52 = vsel %vm2682_vm5, %v892_v44, %v896_v23  ;;  %v1011_v53 = vor.u32 %v1010_v45, %v1007_v32  ;;  %v912_v54 = vshll.u32 %v2195_v35, 16  ;;  %v918_v55 = vshll.u32 %v2196_v40, 16  ;;  %v2227_v23 = vld [vmem:[%s2626_s26 + $0x30] sm:$0xe]  ;;  %v2229_v30 = vld [vmem:[%s2626_s26 + $0x38] sm:$0x1] }
  0x87   : > { %v907_v58 = vsel %vm2682_vm5, %v902_v47, %v906_v28  ;;  %v1021_v59 = vor.u32 %v1020_v48, %v1016_v46  ;;  %v1026_v60 = vrot.slane %v1024_v49, 5  ;;  %v911_v61 = vrot.slane %v909_v51, 4  ;;  %v2300_v35 = vld [vmem:[%s2626_s26 + $0x60] sm:$0xf]  ;;  %v2301_v44 = vld [vmem:[%s2626_s26 + $0x64] sm:$0xf] }
  0x88   : > { %793 = vrot.lane.b32.xlu1 %v2501_v41, %s2558_s27  ;;  %v2212_v1 = vcombine.low %v897_v52, %v907_v58  ;;  %v1012_v2 = vrot.slane %v1011_v53, 4  ;;  %v914_v3 = vrot.slane %v912_v54, 5  ;;  %v920_v4 = vrot.slane %v918_v55, 5  ;;  %v2302_v45 = vld [vmem:[%s2626_s26 + $0x68] sm:$0x1] }
  0x89   : > { %v1022_v8 = vrot.slane %v1021_v59, 4  ;;  %v922_v9 = vshrl.u32 %v2196_v40, 16  ;;  %v928_v10 = vshll.u32 %v2197_v50, 16  ;;  %v2248_v11 = vrot.slane %v2236_v56, 9  ;;  %v2289_v52 = vld [vmem:[%s2626_s26 + $0x34] sm:$0xf] }
  0x8a   : > { %785 = vrot.lane.b32.xlu0 %v2502_v42, %s2558_s27  ;;  %v1017_v13 = vsel %vm2682_vm5, %v1012_v2, %v1016_v46  ;;  %v915_v14 = vor.u32 %v914_v3, %v911_v61  ;;  %v1177_v15 = vrot.slane %v2237_v57, 5  ;;  %v1180_v16 = vrot.slane %v2238_v62, 5  ;;  %v2288_v46 = vld [vmem:[%s2626_s26 + $0x30] sm:$0xf]  ;;  %v2290_v3 = vld [vmem:[%s2626_s26 + $0x38] sm:$0x1] }
  0x8b   : > { %v1027_v19 = vsel %vm2682_vm5, %v1022_v8, %v1026_v60  ;;  %v924_v20 = vrot.slane %v922_v9, 4  ;;  %v930_v21 = vrot.slane %v928_v10, 5  ;;  %v2244_v22 = vrot.slane %v2224_v63, 9  ;;  %v2961_v24 = vpop.permute.xlu1 %787  ;;  %v2979_v47 = vpop.permute.xlu0 %779  ;;  %v2304_v10 = vld [vmem:[%s2626_s26 + $0x70] sm:$0xf] }
  0x8c   : > { %1064 = vrot.lane.b32.xlu1 %v2216_v43, %s2561_s30  ;;  %v2217_v25 = vcombine.low %v1017_v13, %v1027_v19  ;;  %v916_v26 = vrot.slane %v915_v14, 4  ;;  %v1178_v27 = vsel %vm2628_vm2, %v2248_v11, %v1177_v15  ;;  %v1179_v28 = vrot.slane %v1177_v15, 4 }
  0x8d   : > { %v925_v31 = vor.u32 %v924_v20, %v920_v4  ;;  %v1149_v32 = vrot.slane %v2225_v5, 5  ;;  %v1152_v33 = vrot.slane %v2226_v6, 5  ;;  %v2249_v34 = vrot.slane %v2239_v12, 9 }
  0x8e   : > { %1056 = vrot.lane.b32.xlu0 %v2212_v1, %s2561_s30  ;;  %v921_v36 = vsel %vm2682_vm5, %v916_v26, %v920_v4  ;;  %v1181_v37 = vsel %vm2628_vm2, %v1179_v28, %v1180_v16  ;;  %v1184_v38 = vrot.slane %v2240_v17, 5  ;;  %v1187_v39 = vrot.slane %v2241_v18, 5  ;;  %v2303_v4 = vld [vmem:[%s2626_s26 + $0x6c] sm:$0xf]  ;;  %v2503_v26 = vld [vmem:[%s2626_s26 + $0x60] sm:$0xff]  }
  0x8f   : > { %v926_v40 = vrot.slane %v925_v31, 4  ;;  %v2256_v41 = vcombine.low %v1178_v27, %v1181_v37  ;;  %v1150_v42 = vsel %vm2628_vm2, %v2244_v22, %v1149_v32  ;;  %v1151_v43 = vrot.slane %v1149_v32, 4  ;;  %v2989_v57 = vpop.permute.xlu1 %789  ;;  %v3002_v15 = vpop.permute.xlu0 %781 }
  0x90   : > { %1066 = vrot.lane.b32.xlu1 %v2217_v25, %s2561_s30  ;;  %v1185_v48 = vsel %vm2628_vm2, %v2249_v34, %v1184_v38  ;;  %v1186_v49 = vrot.slane %v1184_v38, 4  ;;  %v2245_v50 = vrot.slane %v2227_v23, 9  ;;  %v1156_v51 = vrot.slane %v2228_v29, 5 }
  0x91   : > { %v931_v53 = vsel %vm2682_vm5, %v926_v40, %v930_v21  ;;  %v1153_v54 = vsel %vm2628_vm2, %v1151_v43, %v1152_v33  ;;  %v1159_v55 = vrot.slane %v2229_v30, 5  ;;  %v1505_v56 = vshrl.u32 %v2300_v35, 16  ;;  %v2305_v33 = vld [vmem:[%s2626_s26 + $0x74] sm:$0x1]  ;;  %v2291_v40 = vld [vmem:[%s2626_s26 + $0x3c] sm:$0xf] }
  0x92   : > { %v2213_v58 = vcombine.low %v921_v36, %v931_v53  ;;  %v2252_v59 = vcombine.low %v1150_v42, %v1153_v54  ;;  %v1188_v60 = vsel %vm2628_vm2, %v1186_v49, %v1187_v39  ;;  %v1157_v61 = vsel %vm2628_vm2, %v2245_v50, %v1156_v51  ;;  %v2292_v53 = vld [vmem:[%s2626_s26 + $0x40] sm:$0xf] }
  0x93   : > { %v2257_v62 = vcombine.low %v1185_v48, %v1188_v60  ;;  %v1158_v63 = vrot.slane %v1156_v51, 4  ;;  %v1507_v1 = vrot.slane %v1505_v56, 4  ;;  %v1508_v2 = vshll.u32 %v2300_v35, 16  ;;  %v3004_v25 = vpop.permute.xlu1 %697  ;;  %v2505_v48 = vld [vmem:[%s2626_s26 + $0x6c] sm:$0xff]  }
  0x94   : > { %1058 = vrot.lane.b32.xlu0 %v2213_v58, %s2561_s30  ;;  %1225 = vrot.lane.b32.xlu1 %v2256_v41, %s2562_s4  ;;  %v1514_v5 = vshll.u32 %v2301_v44, 16  ;;  %v1518_v6 = vshrl.u32 %v2301_v44, 16  ;;  %v1524_v8 = vshll.u32 %v2302_v45, 16  ;;  %v1409_v9 = vshrl.u32 %v2288_v46, 16  ;;  %v2504_v41 = vld [vmem:[%s2626_s26 + $0x30] sm:$0xff]  }
  0x95   : > { %v1160_v11 = vsel %vm2628_vm2, %v1158_v63, %v1159_v55  ;;  %v1510_v12 = vrot.slane %v1508_v2, 5  ;;  %v1412_v13 = vshll.u32 %v2288_v46, 16  ;;  %v1418_v14 = vshll.u32 %v2289_v52, 16  ;;  %v3014_v46 = vpop.permute.xlu0 %689  ;;  %v2293_v58 = vld [vmem:[%s2626_s26 + $0x44] sm:$0x1] }
  0x96   : > { %v2253_v16 = vcombine.low %v1157_v61, %v1160_v11  ;;  %v1516_v17 = vrot.slane %v1514_v5, 5  ;;  %v1520_v18 = vrot.slane %v1518_v6, 4  ;;  %v1526_v19 = vrot.slane %v1524_v8, 5  ;;  %v2506_v61 = vld [vmem:[%s2626_s26 + $0x3c] sm:$0xff]  }
  0x97   : > { %v1511_v20 = vor.u32 %v1510_v12, %v1507_v1  ;;  %v1411_v21 = vrot.slane %v1409_v9, 4  ;;  %v1414_v22 = vrot.slane %v1412_v13, 5  ;;  %v1420_v23 = vrot.slane %v1418_v14, 5  ;;  %v3025_v60 = vpop.permute.xlu1 %699  ;;  %v2333_v9 = vld [vmem:[%s2626_s26 + $0x64] sm:$0xf] }
  0x98   : > { %1217 = vrot.lane.b32.xlu0 %v2252_v59, %s2562_s4  ;;  %1227 = vrot.lane.b32.xlu1 %v2257_v62, %s2562_s4  ;;  %v1521_v27 = vor.u32 %v1520_v18, %v1516_v17  ;;  %v1422_v28 = vshrl.u32 %v2289_v52, 16  ;;  %v1428_v29 = vshll.u32 %v2290_v3, 16  ;;  %v1529_v30 = vshrl.u32 %v2303_v4, 16  ;;  %v2332_v3 = vld [vmem:[%s2626_s26 + $0x60] sm:$0xe] }
  0x99   : > { %v1512_v31 = vrot.slane %v1511_v20, 4  ;;  %v1415_v32 = vor.u32 %v1414_v22, %v1411_v21  ;;  %v1532_v34 = vshll.u32 %v2303_v4, 16  ;;  %v1538_v35 = vshll.u32 %v2304_v10, 16  ;;  %v2334_v14 = vld [vmem:[%s2626_s26 + $0x68] sm:$0x1] }
  0x9a   : > { %v1522_v36 = vrot.slane %v1521_v27, 4  ;;  %v1424_v37 = vrot.slane %v1422_v28, 4  ;;  %v1430_v38 = vrot.slane %v1428_v29, 5  ;;  %v1531_v39 = vrot.slane %v1529_v30, 4  ;;  %v2321_v21 = vld [vmem:[%s2626_s26 + $0x34] sm:$0xf] }
  0x9b   : > { %v1517_v42 = vsel %vm2682_vm5, %v1512_v31, %v1516_v17  ;;  %v1416_v43 = vrot.slane %v1415_v32, 4  ;;  %v1534_v44 = vrot.slane %v1532_v34, 5  ;;  %v1540_v45 = vrot.slane %v1538_v35, 5  ;;  %v2322_v22 = vld [vmem:[%s2626_s26 + $0x38] sm:$0x1] }
  0x9c   : > { %1219 = vrot.lane.b32.xlu0 %v2253_v16, %s2562_s4  ;;  %1315 = vrot.lane.b32.xlu1 %v2503_v26, %s2563_s5  ;;  %v1527_v49 = vsel %vm2682_vm5, %v1522_v36, %v1526_v19  ;;  %v1425_v50 = vor.u32 %v1424_v37, %v1420_v23  ;;  %v1542_v51 = vshrl.u32 %v2304_v10, 16  ;;  %v1548_v52 = vshll.u32 %v2305_v33, 16  ;;  %v2320_v16 = vld [vmem:[%s2626_s26 + $0x30] sm:$0xe]  ;;  %v2335_v30 = vld [vmem:[%s2626_s26 + $0x6c] sm:$0xe] }
  0x9d   : > { %v2312_v54 = vcombine.low %v1517_v42, %v1527_v49  ;;  %v1421_v55 = vsel %vm2682_vm5, %v1416_v43, %v1420_v23  ;;  %v1535_v56 = vor.u32 %v1534_v44, %v1531_v39  ;;  %v1433_v59 = vshrl.u32 %v2291_v40, 16  ;;  %v3040_v23 = vpop.permute.xlu0 %691  ;;  %v2336_v35 = vld [vmem:[%s2626_s26 + $0x70] sm:$0xf]  ;;  %v2508_v49 = vld [vmem:[%s2626_s26] sm:$0xff]  }
  0x9e   : > { %v1426_v62 = vrot.slane %v1425_v50, 4  ;;  %v1544_v63 = vrot.slane %v1542_v51, 4  ;;  %v1550_v1 = vrot.slane %v1548_v52, 5  ;;  %v1436_v2 = vshll.u32 %v2291_v40, 16  ;;  %v2509_v50 = vld [vmem:[%s2626_s26 + $0x3c] sm:$0xff]   ;;  %v2510_v51 = vld [vmem:[%s2626_s26 + $0x30] sm:$0xff]  }
  0x9f   : > { %v1536_v4 = vrot.slane %v1535_v56, 4  ;;  %v1435_v5 = vrot.slane %v1433_v59, 4  ;;  %v1442_v6 = vshll.u32 %v2292_v53, 16  ;;  %v1446_v8 = vshrl.u32 %v2292_v53, 16  ;;  %v528_v36 = vpop.permute.xlu1 %527  ;;  %v2511_v52 = vld [vmem:[%s2626_s26 + $0x48] sm:$0xff]   ;;  %v2512_v53 = vld [vmem:[%s2626_s26 + $0x18] sm:$0xff]  }
  0xa0   : > { %1307 = vrot.lane.b32.xlu0 %v2504_v41, %s2563_s5  ;;  %1317 = vrot.lane.b32.xlu1 %v2505_v48, %s2563_s5  ;;  %v1431_v10 = vsel %vm2682_vm5, %v1426_v62, %v1430_v38  ;;  %v1545_v11 = vor.u32 %v1544_v63, %v1540_v45  ;;  %v1438_v12 = vrot.slane %v1436_v2, 5  ;;  %v1452_v13 = vshll.u32 %v2293_v58, 16  ;;  %v2337_v41 = vld [vmem:[%s2626_s26 + $0x74] sm:$0x1]  ;;  %v2507_v48 = vld [vmem:[%s2626_s26 + $0xc] sm:$0xff]   ;;  %274 = vst.msk [vmem:[#allocation2] sm:$0xff] %vm273_vm6, %v2508_v49 }
  0xa1   : > { %v2308_v17 = vcombine.low %v1421_v55, %v1431_v10  ;;  %v1541_v18 = vsel %vm2682_vm5, %v1536_v4, %v1540_v45  ;;  %v1444_v19 = vrot.slane %v1442_v6, 5  ;;  %v1448_v20 = vrot.slane %v1446_v8, 4  ;;  %v2323_v59 = vld [vmem:[%s2626_s26 + $0x3c] sm:$0xe]  ;;  %v2516_v6 = vld [vmem:[%s2626_s26 + $0x24] sm:$0xff]   ;;  %275 = vst.msk [vmem:[#allocation2 + $0x8] sm:$0xff] %vm273_vm6, %v2507_v48 }
  0xa2   : > { %v1546_v26 = vrot.slane %v1545_v11, 4  ;;  %v1439_v27 = vor.u32 %v1438_v12, %v1435_v5  ;;  %v1454_v28 = vrot.slane %v1452_v13, 5  ;;  %v2344_v29 = vrot.slane %v2332_v3, 9  ;;  %v2325_v3 = vld [vmem:[%s2626_s26 + $0x44] sm:$0x1]  ;;  %v2515_v5 = vld [vmem:[%s2626_s26 + $0x54] sm:$0xff]  }
  0xa3   : > { %v1449_v31 = vor.u32 %v1448_v20, %v1444_v19  ;;  %v1701_v32 = vrot.slane %v2333_v9, 5  ;;  %v1704_v33 = vrot.slane %v2334_v14, 5  ;;  %v2340_v34 = vrot.slane %v2320_v16, 9  ;;  %v526_v4 = vpop.permute.xlu0 %525  ;;  %279 = vst.msk [vmem:[#allocation2 + $0x28] sm:$0xff] %vm273_vm6, %v2509_v50  ;;  %278 = vst.msk [vmem:[#allocation2 + $0x20] sm:$0xff] %vm273_vm6, %v2510_v51 }
  0xa4   : > { %1309 = vrot.lane.b32.xlu0 %v2506_v61, %s2563_s5  ;;  %1588 = vrot.lane.b32.xlu1 %v2312_v54, %s2564_s6  ;;  %v1551_v37 = vsel %vm2682_vm5, %v1546_v26, %v1550_v1  ;;  %v1440_v38 = vrot.slane %v1439_v27, 4  ;;  %v1673_v39 = vrot.slane %v2321_v21, 5  ;;  %v1676_v40 = vrot.slane %v2322_v22, 5  ;;  %v2324_v61 = vld [vmem:[%s2626_s26 + $0x40] sm:$0xf]  ;;  %280 = vst.msk [vmem:[#allocation2 + $0x30] sm:$0xff] %vm273_vm6, %v2511_v52 }
  0xa5   : > { %v2313_v42 = vcombine.low %v1541_v18, %v1551_v37  ;;  %v1450_v43 = vrot.slane %v1449_v31, 4  ;;  %v1702_v44 = vsel %vm2628_vm2, %v2344_v29, %v1701_v32  ;;  %v1703_v45 = vrot.slane %v1701_v32, 4  ;;  %276 = vst.msk [vmem:[#allocation2 + $0x10] sm:$0xff] %vm273_vm6, %v2512_v53  ;;  %281 = vst.msk [vmem:[#allocation2 + $0x38] sm:$0xff] %vm273_vm6, %v2515_v5  ;;  %s2129_s26 = sshll.u32 %s204_s23, 2 }
  0xa6   : > { %v1445_v54 = vsel %vm2682_vm5, %v1440_v38, %v1444_v19  ;;  %v1674_v55 = vsel %vm2628_vm2, %v2340_v34, %v1673_v39  ;;  %v1675_v56 = vrot.slane %v1673_v39, 4  ;;  %v2345_v58 = vrot.slane %v2335_v30, 9  ;;  %277 = vst.msk [vmem:[#allocation2 + $0x18] sm:$0xff] %vm273_vm6, %v2516_v6  ;;  %v2517_v19 = vld [vmem:[%s3246_s1 + $0x10] ss:$0 sps:$4 sm:$0x33]   ;;  %s3183_s27 = scalar_lea.vmem %s3248_s3, %s2129_s26 }
  0xa7   : > { %v1455_v62 = vsel %vm2682_vm5, %v1450_v43, %v1454_v28  ;;  %v1705_v63 = vsel %vm2628_vm2, %v1703_v45, %v1704_v33  ;;  %v1708_v1 = vrot.slane %v2336_v35, 5  ;;  %v1711_v2 = vrot.slane %v2337_v41, 5  ;;  %v536_v14 = vpop.permute.xlu1 %535  ;;  %551 = vst.msk [vmem:[#allocation2 + $0x8] sm:$0xff] %vm549_vm7, %v528_v36  ;;  %550 = vst.msk [vmem:[#allocation2] sm:$0xff] %vm549_vm7, %v526_v4  ;;  %2439 = vmatprep.subr.msk.bf16.mxu0 %vm1830_vm10, %v2517_v19 }
  0xa8   : > { %1580 = vrot.lane.b32.xlu0 %v2308_v17, %s2564_s6  ;;  %1590 = vrot.lane.b32.xlu1 %v2313_v42, %s2564_s6  ;;  %v2309_v8 = vcombine.low %v1445_v54, %v1455_v62  ;;  %v2352_v9 = vcombine.low %v1702_v44, %v1705_v63  ;;  %v1677_v10 = vsel %vm2628_vm2, %v1675_v56, %v1676_v40  ;;  %v2341_v12 = vrot.slane %v2323_v59, 9 }
  0xa9   : > { %v1709_v7 = vsel %vm2628_vm2, %v2345_v58, %v1708_v1  ;;  %v1710_v11 = vrot.slane %v1708_v1, 4  ;;  %v1680_v13 = vrot.slane %v2324_v61, 5  ;;  %v1683_v16 = vrot.slane %v2325_v3, 5  ;;  %555 = vst.msk [vmem:[#allocation2 + $0x28] sm:$0xff] %vm549_vm7, %v536_v14  ;;  %2440 = vmatprep.subr.msk.bf16.mxu1 %vm1830_vm10, %v2517_v19 }
  0xaa   : > { %v2348_v20 = vcombine.low %v1674_v55, %v1677_v10  ;;  %715 = vst.msk [vmem:[#allocation2 + $0x8] sm:$0xff] %vm713_vm8, %v3040_v23  ;;  %714 = vst.msk [vmem:[#allocation2] sm:$0xff] %vm713_vm8, %v3014_v46  ;;  %v1832_v0 = vsel %vm1830_vm10, %v2517_v19, 0 }
  0xab   : > { %v1712_v17 = vsel %vm2628_vm2, %v1710_v11, %v1711_v2  ;;  %v1682_v18 = vrot.slane %v1680_v13, 4  ;;  %v1681_v22 = vsel %vm2628_vm2, %v2341_v12, %v1680_v13  ;;  %719 = vst.msk [vmem:[#allocation2 + $0x28] sm:$0xff] %vm713_vm8, %v3025_v60  ;;  %2416 = vmatpush3.bf16.msra.mxu0 %v1832_v0  ;;  %2438 = vmatpush3.bf16.msra.mxu1 %v1832_v0 }
  0xac   : > { %1582 = vrot.lane.b32.xlu0 %v2309_v8, %s2564_s6  ;;  %1749 = vrot.lane.b32.xlu1 %v2352_v9, %s2565_s9  ;;  %v2353_v21 = vcombine.low %v1709_v7, %v1712_v17  ;;  %804 = vst.msk [vmem:[#allocation2] sm:$0xff] %vm803_vm9, %v2979_v47  ;;  %805 = vst.msk [vmem:[#allocation2 + $0x8] sm:$0xff] %vm803_vm9, %v3002_v15 }
  0xad   : > { %v1684_v26 = vsel %vm2628_vm2, %v1682_v18, %v1683_v16  ;;  %v534_v27 = vpop.permute.xlu0 %533  ;;  %809 = vst.msk [vmem:[#allocation2 + $0x28] sm:$0xff] %vm803_vm9, %v2989_v57 }
  0xae   : > { %554 = vst.msk [vmem:[#allocation2 + $0x20] sm:$0xff] %vm549_vm7, %v534_v27  ;;  %v2349_v46 = vcombine.low %v1681_v22, %v1684_v26  ;;  %v3175_v26 = vld [vmem:[%s3247_s2] ss:$0 sm:$0xff] }
  0xaf   : > { %718 = vst.msk [vmem:[#allocation2 + $0x20] sm:$0xff] %vm713_vm8, %v3004_v25 }
  0xb0   : > { %1741 = vrot.lane.b32.xlu0 %v2348_v20, %s2565_s9  ;;  %1751 = vrot.lane.b32.xlu1 %v2353_v21, %s2565_s9  ;;  %808 = vst.msk [vmem:[#allocation2 + $0x20] sm:$0xff] %vm803_vm9, %v2961_v24 }
  0xb1   : > { %v1061_v47 = vpop.permute.xlu1 %1060 }
  0xb2   : > { %1081 = vst.msk [vmem:[#allocation2 + $0x20] sm:$0xff] %vm1076_vm11, %v1061_v47 }
  0xb4   : > { %1743 = vrot.lane.b32.xlu0 %v2349_v46, %s2565_s9  ;;  %v1053_v57 = vpop.permute.xlu0 %1052 }
  0xb5   : > { %1077 = vst.msk [vmem:[#allocation2] sm:$0xff] %vm1076_vm11, %v1053_v57 }
  0xb9   : > { %v1063_v15 = vpop.permute.xlu1 %1062 }
  0xba   : > { %1082 = vst.msk [vmem:[#allocation2 + $0x28] sm:$0xff] %vm1076_vm11, %v1063_v15 }
  0xbc   : > { %v1055_v25 = vpop.permute.xlu0 %1054 }
  0xbd   : > { %1078 = vst.msk [vmem:[#allocation2 + $0x8] sm:$0xff] %vm1076_vm11, %v1055_v25  ;;  %v1222_v60 = vpop.permute.xlu1 %1221 }
  0xbe   : > { %1242 = vst.msk [vmem:[#allocation2 + $0x20] sm:$0xff] %vm1237_vm12, %v1222_v60 }
  0xc0   : > { %v1214_v24 = vpop.permute.xlu0 %1213 }
  0xc1   : > { %1238 = vst.msk [vmem:[#allocation2] sm:$0xff] %vm1237_vm12, %v1214_v24  ;;  %v1224_v23 = vpop.permute.xlu1 %1223 }
  0xc2   : > { %1243 = vst.msk [vmem:[#allocation2 + $0x28] sm:$0xff] %vm1237_vm12, %v1224_v23 }
  0xc4   : > { %v1216_v28 = vpop.permute.xlu0 %1215 }
  0xc5   : > { %1239 = vst.msk [vmem:[#allocation2 + $0x8] sm:$0xff] %vm1237_vm12, %v1216_v28  ;;  %v1312_v29 = vpop.permute.xlu1 %1311 }
  0xc6   : > { %1332 = vst.msk [vmem:[#allocation2 + $0x20] sm:$0xff] %vm1327_vm13, %v1312_v29 }
  0xc8   : > { %v1304_v30 = vpop.permute.xlu0 %1303 }
  0xc9   : > { %1328 = vst.msk [vmem:[#allocation2] sm:$0xff] %vm1327_vm13, %v1304_v30  ;;  %v1314_v31 = vpop.permute.xlu1 %1313 }
  0xca   : > { %1333 = vst.msk [vmem:[#allocation2 + $0x28] sm:$0xff] %vm1327_vm13, %v1314_v31 }
  0xcc   : > { %v1306_v32 = vpop.permute.xlu0 %1305 }
  0xcd   : > { %1329 = vst.msk [vmem:[#allocation2 + $0x8] sm:$0xff] %vm1327_vm13, %v1306_v32  ;;  %v1585_v33 = vpop.permute.xlu1 %1584 }
  0xce   : > { %1605 = vst.msk [vmem:[#allocation2 + $0x20] sm:$0xff] %vm1600_vm14, %v1585_v33 }
  0xd0   : > { %v1577_v34 = vpop.permute.xlu0 %1576 }
  0xd1   : > { %1601 = vst.msk [vmem:[#allocation2] sm:$0xff] %vm1600_vm14, %v1577_v34  ;;  %v1587_v35 = vpop.permute.xlu1 %1586 }
  0xd2   : > { %1606 = vst.msk [vmem:[#allocation2 + $0x28] sm:$0xff] %vm1600_vm14, %v1587_v35 }
  0xd5   : > { %v1746_v36 = vpop.permute.xlu1 %1745 }
  0xd6   : > { %v1579_v37 = vpop.permute.xlu0 %1578  ;;  %1766 = vst.msk [vmem:[#allocation2 + $0x20] sm:$0xff] %vm1761_vm15, %v1746_v36 }
  0xd7   : > { %1602 = vst.msk [vmem:[#allocation2 + $0x8] sm:$0xff] %vm1600_vm14, %v1579_v37 }
  0xda   : > { %v1738_v38 = vpop.permute.xlu0 %1737 }
  0xdb   : > { %1762 = vst.msk [vmem:[#allocation2] sm:$0xff] %vm1761_vm15, %v1738_v38 }
  0xdd   : > { %v538_v39 = vpop.permute.xlu1 %537  ;;  %v1774_v40 = vld [vmem:[#allocation2 + $0x20] sm:$0xff] }
  0xde   : > { %556 = vst.msk [vmem:[#allocation2 + $0x30] sm:$0xff] %vm549_vm7, %v538_v39  ;;  %2425 = vmatprep.mubr.msk.bf16.mxu1 %vm1805_vm0, %v1774_v40 }
  0xe0   : > { %v530_v41 = vpop.permute.xlu0 %529 }
  0xe1   : > { %552 = vst.msk [vmem:[#allocation2 + $0x10] sm:$0xff] %vm549_vm7, %v530_v41  ;;  %v1748_v42 = vpop.permute.xlu1 %1747 }
  0xe2   : > { %1767 = vst.msk [vmem:[#allocation2 + $0x28] sm:$0xff] %vm1761_vm15, %v1748_v42  ;;  %v1770_v43 = vld [vmem:[#allocation2] sm:$0xff] }
  0xe3   : > { %2417 = vmatprep.mubr.msk.bf16.mxu0 %vm1805_vm0, %v1770_v43 }
  0xe4   : > { %v1740_v44 = vpop.permute.xlu0 %1739 }
  0xe5   : > { %1763 = vst.msk [vmem:[#allocation2 + $0x8] sm:$0xff] %vm1761_vm15, %v1740_v44 }
  0xe9   : > { %v1775_v45 = vld [vmem:[#allocation2 + $0x28] sm:$0xff] }
  0xea   : > { %v540_v48 = vpop.permute.xlu1 %539  ;;  %2426 = vmatmul.mubr.msk.bf16.vlgmr.msra.gmra.mrb[0].mxu1 %vm1805_vm0, %v1775_v45 }
  0xeb   : > { %557 = vst.msk [vmem:[#allocation2 + $0x38] sm:$0xff] %vm549_vm7, %v540_v48 }
  0xec   : > { %v532_v49 = vpop.permute.xlu0 %531  ;;  %v1771_v50 = vld [vmem:[#allocation2 + $0x8] sm:$0xff] }
  0xed   : > { %553 = vst.msk [vmem:[#allocation2 + $0x18] sm:$0xff] %vm549_vm7, %v532_v49  ;;  %2418 = vmatmul.mubr.msk.bf16.vlgmr.msra.gmra.mrb[0].mxu0 %vm1805_vm0, %v1771_v50 }
  0xee   : > { %v702_v51 = vpop.permute.xlu1 %701 }
  0xef   : > { %720 = vst.msk [vmem:[#allocation2 + $0x30] sm:$0xff] %vm713_vm8, %v702_v51 }
  0xf0   : > { %v694_v52 = vpop.permute.xlu0 %693 }
  0xf1   : > { %716 = vst.msk [vmem:[#allocation2 + $0x10] sm:$0xff] %vm713_vm8, %v694_v52 }
  0xf2   : > { %v704_v53 = vpop.permute.xlu1 %703 }
  0xf3   : > { %721 = vst.msk [vmem:[#allocation2 + $0x38] sm:$0xff] %vm713_vm8, %v704_v53 }
  0xf4   : > { %v696_v54 = vpop.permute.xlu0 %695 }
  0xf5   : > { %717 = vst.msk [vmem:[#allocation2 + $0x18] sm:$0xff] %vm713_vm8, %v696_v54 }
  0xf6   : > { %v792_v55 = vpop.permute.xlu1 %791 }
  0xf7   : > { %810 = vst.msk [vmem:[#allocation2 + $0x30] sm:$0xff] %vm803_vm9, %v792_v55 }
  0xf8   : > { %v784_v56 = vpop.permute.xlu0 %783 }
  0xf9   : > { %806 = vst.msk [vmem:[#allocation2 + $0x10] sm:$0xff] %vm803_vm9, %v784_v56 }
  0xfa   : > { %v794_v58 = vpop.permute.xlu1 %793 }
  0xfb   : > { %811 = vst.msk [vmem:[#allocation2 + $0x38] sm:$0xff] %vm803_vm9, %v794_v58 }
  0xfc   : > { %v786_v59 = vpop.permute.xlu0 %785 }
  0xfd   : > { %807 = vst.msk [vmem:[#allocation2 + $0x18] sm:$0xff] %vm803_vm9, %v786_v59 }
  0xfe   : > { %v1065_v61 = vpop.permute.xlu1 %1064 }
  0xff   : > { %1083 = vst.msk [vmem:[#allocation2 + $0x30] sm:$0xff] %vm1076_vm11, %v1065_v61 }
 0x100   : > { %v1057_v62 = vpop.permute.xlu0 %1056 }
 0x101   : > { %1079 = vst.msk [vmem:[#allocation2 + $0x10] sm:$0xff] %vm1076_vm11, %v1057_v62 }
 0x102   : > { %v1067_v63 = vpop.permute.xlu1 %1066 }
 0x103   : > { %1084 = vst.msk [vmem:[#allocation2 + $0x38] sm:$0xff] %vm1076_vm11, %v1067_v63 }
 0x106   : > { %v1059_v1 = vpop.permute.xlu0 %1058  ;;  %v1226_v2 = vpop.permute.xlu1 %1225 }
 0x107   : > { %1080 = vst.msk [vmem:[#allocation2 + $0x18] sm:$0xff] %vm1076_vm11, %v1059_v1 }
 0x108   : > { %1244 = vst.msk [vmem:[#allocation2 + $0x30] sm:$0xff] %vm1237_vm12, %v1226_v2 }
 0x10a   : > { %v1218_v3 = vpop.permute.xlu0 %1217  ;;  %v1228_v4 = vpop.permute.xlu1 %1227 }
 0x10b   : > { %1240 = vst.msk [vmem:[#allocation2 + $0x10] sm:$0xff] %vm1237_vm12, %v1218_v3  ;;  %1245 = vst.msk [vmem:[#allocation2 + $0x38] sm:$0xff] %vm1237_vm12, %v1228_v4 }
 0x10e   : > { %v1220_v5 = vpop.permute.xlu0 %1219  ;;  %v1316_v6 = vpop.permute.xlu1 %1315 }
 0x10f   : > { %1241 = vst.msk [vmem:[#allocation2 + $0x18] sm:$0xff] %vm1237_vm12, %v1220_v5 }
 0x110   : > { %1334 = vst.msk [vmem:[#allocation2 + $0x30] sm:$0xff] %vm1327_vm13, %v1316_v6 }
 0x112   : > { %v1308_v8 = vpop.permute.xlu0 %1307  ;;  %v1318_v9 = vpop.permute.xlu1 %1317 }
 0x113   : > { %1330 = vst.msk [vmem:[#allocation2 + $0x10] sm:$0xff] %vm1327_vm13, %v1308_v8  ;;  %1335 = vst.msk [vmem:[#allocation2 + $0x38] sm:$0xff] %vm1327_vm13, %v1318_v9 }
 0x116   : > { %v1310_v10 = vpop.permute.xlu0 %1309  ;;  %v1589_v7 = vpop.permute.xlu1 %1588 }
 0x117   : > { %1331 = vst.msk [vmem:[#allocation2 + $0x18] sm:$0xff] %vm1327_vm13, %v1310_v10 }
 0x118   : > { %1607 = vst.msk [vmem:[#allocation2 + $0x30] sm:$0xff] %vm1600_vm14, %v1589_v7 }
 0x11a   : > { %v1581_v11 = vpop.permute.xlu0 %1580  ;;  %v1591_v12 = vpop.permute.xlu1 %1590 }
 0x11b   : > { %1603 = vst.msk [vmem:[#allocation2 + $0x10] sm:$0xff] %vm1600_vm14, %v1581_v11  ;;  %1608 = vst.msk [vmem:[#allocation2 + $0x38] sm:$0xff] %vm1600_vm14, %v1591_v12 }
 0x11e   : > { %v1583_v13 = vpop.permute.xlu0 %1582  ;;  %v1750_v14 = vpop.permute.xlu1 %1749 }
 0x11f   : > { %1604 = vst.msk [vmem:[#allocation2 + $0x18] sm:$0xff] %vm1600_vm14, %v1583_v13 }
 0x120   : > { %1768 = vst.msk [vmem:[#allocation2 + $0x30] sm:$0xff] %vm1761_vm15, %v1750_v14 }
 0x122   : > { %v1742_v16 = vpop.permute.xlu0 %1741  ;;  %v1752_v17 = vpop.permute.xlu1 %1751 }
 0x123   : > { %1764 = vst.msk [vmem:[#allocation2 + $0x10] sm:$0xff] %vm1761_vm15, %v1742_v16  ;;  %1769 = vst.msk [vmem:[#allocation2 + $0x38] sm:$0xff] %vm1761_vm15, %v1752_v17 }
 0x126   : > { %v1744_v18 = vpop.permute.xlu0 %1743 }
 0x127   : > { %v1776_v19 = vld [vmem:[#allocation2 + $0x30] sm:$0xff]  ;;  %1765 = vst.msk [vmem:[#allocation2 + $0x18] sm:$0xff] %vm1761_vm15, %v1744_v18 }
 0x128   : > { %2429 = vmatprep.mubr.msk.bf16.mxu1 %vm1805_vm0, %v1776_v19 }
 0x12a   : > { %v1772_v20 = vld [vmem:[#allocation2 + $0x10] sm:$0xff]  ;;  %v1777_v21 = vld [vmem:[#allocation2 + $0x38] sm:$0xff] }
 0x12b   : > { %2421 = vmatprep.mubr.msk.bf16.mxu0 %vm1805_vm0, %v1772_v20  ;;  %2430 = vmatmul.mubr.msk.bf16.gmra.mrb[4].mxu1 %vm1805_vm0, %v1777_v21 }
 0x12e   : > { %v1773_v22 = vld [vmem:[#allocation2 + $0x18] sm:$0xff] }
 0x12f   : > { %2422 = vmatmul.mubr.msk.bf16.gmra.mrb[4].mxu0 %vm1805_vm0, %v1773_v22 }
 0x1bd   : > { %v2427_v27 = vpop.f32.mrb[0].mxu1 }
 0x1be   : > { %v1909_v0 = vadd.f32 %v2427_v27, %v3175_v26  ;;  %v1900_v46 = vpop.f32.mrb[1].mxu1 }
 0x1bf   : > { %v1901_v47 = vadd.f32 %v3175_v26, %v1900_v46  ;;  %v2428_v57 = vpop.f32.mrb[2].mxu1 }
 0x1c0   : > { %v2419_v15 = vpop.f32.mrb[0].mxu0  ;;  %v1941_v25 = vmax.f32 %v1909_v0, 0.0  ;;  %v1912_v60 = vadd.f32 %v2428_v57, %v3175_v26  ;;  %v1903_v24 = vpop.f32.mrb[3].mxu1 }
 0x1c1   : > { %v1877_v23 = vadd.f32 %v2419_v15, %v3175_v26  ;;  %v1868_v28 = vpop.f32.mrb[1].mxu0  ;;  %v1939_v29 = vmax.f32 %v1901_v47, 0.0  ;;  %v1904_v30 = vadd.f32 %v3175_v26, %v1903_v24 }
 0x1c2   : > { %v2394_v31 = vpack.c.bf16 %v1941_v25, %v1941_v25  ;;  %v1869_v32 = vadd.f32 %v3175_v26, %v1868_v28  ;;  %v2420_v33 = vpop.f32.mrb[2].mxu0  ;;  %v1942_v34 = vmax.f32 %v1912_v60, 0.0 }
 0x1c3   : > { %v1933_v35 = vmax.f32 %v1877_v23, 0.0  ;;  %v2392_v36 = vpack.c.bf16 %v1939_v29, %v1939_v29  ;;  %v1880_v37 = vadd.f32 %v2420_v33, %v3175_v26  ;;  %v1871_v38 = vpop.f32.mrb[3].mxu0  ;;  %v1940_v39 = vmax.f32 %v1904_v30, 0.0 }
 0x1c4   : > { %2022 = vst.msk [vmem:[%s3183_s27 + $0x28] sm:$0xf] %vm2011_vm1, %v2394_v31  ;;  %v1931_v40 = vmax.f32 %v1869_v32, 0.0  ;;  %v2395_v41 = vpack.c.bf16 %v1942_v34, %v1942_v34  ;;  %v1872_v42 = vadd.f32 %v3175_v26, %v1871_v38 }
 0x1c5   : > { %v2386_v43 = vpack.c.bf16 %v1933_v35, %v1933_v35  ;;  %2020 = vst.msk [vmem:[%s3183_s27 + $0x20] sm:$0xf] %vm2011_vm1, %v2392_v36  ;;  %v1934_v44 = vmax.f32 %v1880_v37, 0.0  ;;  %v2393_v45 = vpack.c.bf16 %v1940_v39, %v1940_v39 }
 0x1c6   : > { %v2384_v48 = vpack.c.bf16 %v1931_v40, %v1931_v40  ;;  %2023 = vst.msk [vmem:[%s3183_s27 + $0x2c] sm:$0xf] %vm2011_vm1, %v2395_v41  ;;  %v1932_v49 = vmax.f32 %v1872_v42, 0.0 }
 0x1c7   : > { %2014 = vst.msk [vmem:[%s3183_s27 + $0x8] sm:$0xf] %vm2011_vm1, %v2386_v43  ;;  %v2387_v50 = vpack.c.bf16 %v1934_v44, %v1934_v44  ;;  %2021 = vst.msk [vmem:[%s3183_s27 + $0x24] sm:$0xf] %vm2011_vm1, %v2393_v45 }
 0x1c8   : > { %2012 = vst.msk [vmem:[%s3183_s27] sm:$0xf] %vm2011_vm1, %v2384_v48  ;;  %v2385_v51 = vpack.c.bf16 %v1932_v49, %v1932_v49 }
 0x1c9   : > { %2015 = vst.msk [vmem:[%s3183_s27 + $0xc] sm:$0xf] %vm2011_vm1, %v2387_v50 }
 0x1ca   : > { %2013 = vst.msk [vmem:[%s3183_s27 + $0x4] sm:$0xf] %vm2011_vm1, %v2385_v51 }
 0x1fe   : > { %v2431_v52 = vpop.f32.mrb[4].mxu1 }
 0x1ff   : > { %v1925_v53 = vadd.f32 %v2431_v52, %v3175_v26  ;;  %v1916_v54 = vpop.f32.mrb[5].mxu1 }
 0x200   : > { %v1917_v55 = vadd.f32 %v3175_v26, %v1916_v54  ;;  %v2432_v56 = vpop.f32.mrb[6].mxu1 }
 0x201   : > { %v1945_v58 = vmax.f32 %v1925_v53, 0.0  ;;  %v1928_v59 = vadd.f32 %v2432_v56, %v3175_v26  ;;  %v1919_v61 = vpop.f32.mrb[7].mxu1 }
 0x202   : > { %v2423_v62 = vpop.f32.mrb[4].mxu0  ;;  %v1943_v63 = vmax.f32 %v1917_v55, 0.0  ;;  %v1920_v1 = vadd.f32 %v3175_v26, %v1919_v61 }
 0x203   : > { %v1893_v2 = vadd.f32 %v2423_v62, %v3175_v26  ;;  %v2398_v3 = vpack.c.bf16 %v1945_v58, %v1945_v58  ;;  %v1884_v4 = vpop.f32.mrb[5].mxu0  ;;  %v1946_v5 = vmax.f32 %v1928_v59, 0.0 }
 0x204   : > { %v1885_v6 = vadd.f32 %v3175_v26, %v1884_v4  ;;  %v2396_v8 = vpack.c.bf16 %v1943_v63, %v1943_v63  ;;  %v2424_v9 = vpop.f32.mrb[6].mxu0  ;;  %v1944_v10 = vmax.f32 %v1920_v1, 0.0 }
 0x205   : > { %v1937_v7 = vmax.f32 %v1893_v2, 0.0  ;;  %2026 = vst.msk [vmem:[%s3183_s27 + $0x38] sm:$0xf] %vm2011_vm1, %v2398_v3  ;;  %v1896_v11 = vadd.f32 %v2424_v9, %v3175_v26  ;;  %v2399_v12 = vpack.c.bf16 %v1946_v5, %v1946_v5  ;;  %v1887_v13 = vpop.f32.mrb[7].mxu0 }
 0x206   : > { %v1935_v14 = vmax.f32 %v1885_v6, 0.0  ;;  %2024 = vst.msk [vmem:[%s3183_s27 + $0x30] sm:$0xf] %vm2011_vm1, %v2396_v8  ;;  %v1888_v16 = vadd.f32 %v3175_v26, %v1887_v13  ;;  %v2397_v17 = vpack.c.bf16 %v1944_v10, %v1944_v10 }
 0x207   : > { %v2390_v18 = vpack.c.bf16 %v1937_v7, %v1937_v7  ;;  %v1938_v19 = vmax.f32 %v1896_v11, 0.0  ;;  %2027 = vst.msk [vmem:[%s3183_s27 + $0x3c] sm:$0xf] %vm2011_vm1, %v2399_v12 }
 0x208   : > { %v2388_v20 = vpack.c.bf16 %v1935_v14, %v1935_v14  ;;  %v1936_v21 = vmax.f32 %v1888_v16, 0.0  ;;  %2025 = vst.msk [vmem:[%s3183_s27 + $0x34] sm:$0xf] %vm2011_vm1, %v2397_v17 }
 0x209   : > { %2018 = vst.msk [vmem:[%s3183_s27 + $0x18] sm:$0xf] %vm2011_vm1, %v2390_v18  ;;  %v2391_v22 = vpack.c.bf16 %v1938_v19, %v1938_v19 }
 0x20a   : > { %2016 = vst.msk [vmem:[%s3183_s27 + $0x10] sm:$0xf] %vm2011_vm1, %v2388_v20  ;;  %v2389_v27 = vpack.c.bf16 %v1936_v21, %v1936_v21 }
 0x20b   : > { %2019 = vst.msk [vmem:[%s3183_s27 + $0x1c] sm:$0xf] %vm2011_vm1, %v2391_v22 }
 0x20c   : > { %2017 = vst.msk [vmem:[%s3183_s27 + $0x14] sm:$0xf] %vm2011_vm1, %v2389_v27 }
 0x20d PF: > { %s13_s16 = sadd.s32 1, %s2556_s16   ;;  %s3253_s12 = smov %s2548_s14 }
 0x20e   : > { %p10_p8 = scmp.ge.s32.totalorder %s13_s16, 6   ;;  %s3254_s13 = smov %s2552_s15 }
 0x20f   : > { %s3255_s14 = smov %s3258_s17  ;;  %s3256_s15 = smov %s3262_s18 }
 0x210   :  { %12 = sbr.rel (!%p10_p8) target bundleno = 3 (0x3), region = 64 }

</bundles_post_ra>
